<compile_context>
chip_gen: v6e
topology: v6e:2x2x1
jax: 0.10.0
libtpu: 0.0.40
codegen_flags: <defaults>
</compile_context>

<pallas_src>
import jax
import jax.numpy as jnp
import numpy as np
from jax.experimental import pallas as pl
from jax.experimental.pallas import tpu as pltpu


FEATURE_DIM = 64      # conv1 out channels == projector in_features
HIDDEN_DIM = 2048     # projector hidden width
PROJ_DIM = 128        # projection_dim
COUT_PAD = 128        # conv Cout / feature dim padded 64 -> 128 (lane-dense)
P_PAD = 32            # im2col contraction 3*3*3=27 -> 32 (sublane aligned)
BT_MAX = 8            # samples per grid step (bounds per-step VMEM)


# -----------------------------------------------------------------------------
# Fused kernel (one grid step = Bt samples):
#   conv1 (im2col matmul) -> ReLU -> f32 global avg pool -> Linear -> ReLU -> Linear
# -----------------------------------------------------------------------------
def twins_fused_kernel(patches_ref, wconv_ref, w1_ref, b1_ref, w2_ref, b2_ref,
                       feat_ref, proj_ref):
    # patches: (Bt*HW, 32) bf16     wconv: (32, 128) bf16 (cols 64.. are zero)
    # w1: (128, 2048) bf16 (rows 64.. zero)   b1: (1, 2048) f32
    # w2: (2048, 128) bf16                    b2: (1, 128) f32
    # feat_ref: (Bt, 128) f32                 proj_ref: (Bt, 128) f32
    bt, cout = feat_ref.shape
    hw = patches_ref.shape[0] // bt

    # conv1 as one MXU matmul over the Bt-sample tile (f32 accumulation).
    h = jnp.dot(patches_ref[...], wconv_ref[...],
                preferred_element_type=jnp.float32)
    h = jnp.maximum(h, 0.0)                                    # ReLU (f32, VPU)

    # Global average pool as an in-kernel f32 reduction (no pooling matmul).
    # HW is a multiple of 8, so this reshape is tile-boundary aligned (free).
    feat = jnp.sum(h.reshape(bt, hw, cout), axis=1) * (1.0 / hw)
    feat_ref[...] = feat                                       # lane-dense store

    # projector: Linear -> ReLU -> Linear (feature stays VMEM-resident).
    z = jnp.dot(feat.astype(jnp.bfloat16), w1_ref[...],
                preferred_element_type=jnp.float32) + b1_ref[...]
    z = jnp.maximum(z, 0.0)
    proj_ref[...] = jnp.dot(z.astype(jnp.bfloat16), w2_ref[...],
                            preferred_element_type=jnp.float32) + b2_ref[...]


# -----------------------------------------------------------------------------
# twins forward: returns (feature, projection)
# -----------------------------------------------------------------------------
@jax.jit
def twins_forward(x_nchw, params):
    B, Cin, H, W = x_nchw.shape
    Cout, _, KH, KW = params["conv1_w"].shape
    HW = H * W
    P = KH * KW * Cin
    assert HW % 8 == 0, "spatial extent must tile sublanes"

    # Batch tile: Bt samples per grid step; pad batch so the grid divides it.
    if B <= BT_MAX:
        Bt, Bp = B, B
    else:
        Bt = BT_MAX
        Bp = ((B + Bt - 1) // Bt) * Bt
    nb = Bp // Bt

    # ---- XLA glue: NCHW -> NHWC, pad=1, im2col -> (Bp*HW, P_PAD) bf16 ----
    # TODO(synk): for large training batches, move im2col into the kernel
    #             (shifted reads over a VMEM-resident padded NHWC tile) to
    #             avoid the HBM round-trip of the inflated patch tensor.
    x_nhwc = jnp.transpose(x_nchw, (0, 2, 3, 1)).astype(jnp.float32)
    xpad = jnp.pad(x_nhwc, ((0, 0), (1, 1), (1, 1), (0, 0)))
    cols = [xpad[:, dy:dy + H, dx:dx + W, :]
            for dy in range(KH) for dx in range(KW)]           # (ky, kx, ci) order
    patches = jnp.concatenate(cols, axis=-1).reshape(B * HW, P)
    patches = jnp.pad(patches, ((0, (Bp - B) * HW), (0, P_PAD - P)))
    patches = patches.astype(jnp.bfloat16)

    # conv weight in (ky, kx, ci) -> co matmul form, zero-padded to (32, 128).
    w_mat = jnp.transpose(params["conv1_w"], (2, 3, 1, 0)).reshape(P, Cout)
    w_mat = jnp.pad(w_mat, ((0, P_PAD - P), (0, COUT_PAD - Cout)))
    w_mat = w_mat.astype(jnp.bfloat16)

    # Projector weights: w1 row-padded 64 -> 128 (zero rows hit zero feat cols).
    w1 = jnp.pad(params["proj_w1"],
                 ((0, COUT_PAD - Cout), (0, 0))).astype(jnp.bfloat16)
    b1 = params["proj_b1"].reshape(1, HIDDEN_DIM).astype(jnp.float32)
    w2 = params["proj_w2"].astype(jnp.bfloat16)
    b2 = params["proj_b2"].reshape(1, PROJ_DIM).astype(jnp.float32)

    flops = 2 * (Bp * HW * P_PAD * COUT_PAD          # conv matmul
                 + Bp * COUT_PAD * HIDDEN_DIM        # fc1
                 + Bp * HIDDEN_DIM * PROJ_DIM)       # fc2
    bytes_accessed = sum(int(np.prod(a.shape)) * a.dtype.itemsize
                         for a in (patches, w_mat, w1, b1, w2, b2))
    bytes_accessed += Bp * COUT_PAD * 4 + Bp * PROJ_DIM * 4

    feat_padded, proj = pl.pallas_call(
        twins_fused_kernel,
        grid=(nb,),
        in_specs=[
            # Per-step patch tile: the only per-step DMA of consequence.
            pl.BlockSpec((Bt * HW, P_PAD), lambda i: (i, 0)),
            # Weights / biases: constant index maps -> DMA'd once, VMEM-resident.
            pl.BlockSpec((P_PAD, COUT_PAD), lambda i: (0, 0)),
            pl.BlockSpec((COUT_PAD, HIDDEN_DIM), lambda i: (0, 0)),
            pl.BlockSpec((1, HIDDEN_DIM), lambda i: (0, 0)),
            pl.BlockSpec((HIDDEN_DIM, PROJ_DIM), lambda i: (0, 0)),
            pl.BlockSpec((1, PROJ_DIM), lambda i: (0, 0)),
        ],
        out_specs=(pl.BlockSpec((Bt, COUT_PAD), lambda i: (i, 0)),
                   pl.BlockSpec((Bt, PROJ_DIM), lambda i: (i, 0))),
        out_shape=(jax.ShapeDtypeStruct((Bp, COUT_PAD), jnp.float32),
                   jax.ShapeDtypeStruct((Bp, PROJ_DIM), jnp.float32)),
        compiler_params=pltpu.CompilerParams(
            dimension_semantics=("parallel",)),      # v7x: both TCs take blocks
        cost_estimate=pl.CostEstimate(flops=flops, transcendentals=0,
                                      bytes_accessed=bytes_accessed),
    )(patches, w_mat, w1, b1, w2, b2)

    feature = feat_padded[:B, :Cout]     # drop batch padding + zero Cout columns
    projection = proj[:B]
    return feature, projection


# -----------------------------------------------------------------------------
# Params / reference
# -----------------------------------------------------------------------------
def init_params(key, feature_dim=FEATURE_DIM, projection_dim=PROJ_DIM,
                hidden=HIDDEN_DIM):
    ks = jax.random.split(key, 5)
    # conv1: Conv2d(3, 64, 3, stride=1, pad=1, bias=False) -> weight [64, 3, 3, 3]
    conv1_w = jax.random.normal(ks[0], (64, 3, 3, 3), jnp.float32) * 0.1
    # projector Linears stored as [in, out]
    proj_w1 = jax.random.normal(ks[1], (feature_dim, hidden), jnp.float32) * 0.05
    proj_b1 = jax.random.normal(ks[2], (hidden,), jnp.float32) * 0.01
    proj_w2 = jax.random.normal(ks[3], (hidden, projection_dim), jnp.float32) * 0.05
    proj_b2 = jax.random.normal(ks[4], (projection_dim,), jnp.float32) * 0.01
    return {"conv1_w": conv1_w, "proj_w1": proj_w1, "proj_b1": proj_b1,
            "proj_w2": proj_w2, "proj_b2": proj_b2}


def reference_forward(x, params):
    """Plain-JAX f32 reference for correctness checking."""
    out = jax.lax.conv_general_dilated(
        x.astype(jnp.float32), params["conv1_w"],
        window_strides=(1, 1), padding=((1, 1), (1, 1)),
        dimension_numbers=("NCHW", "OIHW", "NCHW"))
    out = jnp.maximum(out, 0.0)
    feature = jnp.mean(out, axis=(2, 3))                       # global avg pool
    h = jnp.maximum(feature @ params["proj_w1"] + params["proj_b1"], 0.0)
    proj = h @ params["proj_w2"] + params["proj_b2"]
    return feature, proj


if __name__ == "__main__":
    key = jax.random.PRNGKey(0)
    kx, kp = jax.random.split(key)

    # size=32 branch of twins: 32x32 RGB images, NCHW
    x = jax.random.normal(kx, (2, 3, 32, 32), jnp.float32)
    params = init_params(kp)

    feature, projection = twins_forward(x, params)
    jax.block_until_ready((feature, projection))

    feat_ref, proj_ref = reference_forward(x, params)
    # bf16 MXU operands (f32 accumulation / f32 pooling): loosened tolerance
    # vs the full-f32 reference.
    np.testing.assert_allclose(np.asarray(feature), np.asarray(feat_ref),
                               rtol=2e-2, atol=2e-2)
    np.testing.assert_allclose(np.asarray(projection), np.asarray(proj_ref),
                               rtol=2e-2, atol=2e-2)

    assert feature.shape == (2, 64) and projection.shape == (2, 128)
    print("KERNEL_OK")
</pallas_src>

<mosaic_0001>
module attributes {stable_mosaic.version = 11 : i64} {
  func.func @twins_fused_kernel(%arg0: i32, %arg1: memref<2048x32xbf16, #tpu.memory_space<vmem>>, %arg2: memref<32x128xbf16, #tpu.memory_space<vmem>>, %arg3: memref<128x2048xbf16, #tpu.memory_space<vmem>>, %arg4: memref<1x2048xf32, #tpu.memory_space<vmem>>, %arg5: memref<2048x128xbf16, #tpu.memory_space<vmem>>, %arg6: memref<1x128xf32, #tpu.memory_space<vmem>>, %arg7: memref<2x128xf32, #tpu.memory_space<vmem>>, %arg8: memref<2x128xf32, #tpu.memory_space<vmem>>) attributes {dimension_semantics = [#tpu.dimension_semantics<parallel>], iteration_bounds = array<i64: 1>, scalar_prefetch = 0 : i64, scratch_operands = 0 : i64, tpu.core_type = #tpu.core_type<tc>, window_params = [{transform_indices = @transform_0, window_bounds = array<i64: 2048, 32>}, {pipeline_mode = #tpu.pipeline_mode<synchronous>, transform_indices = @transform_1, window_bounds = array<i64: 32, 128>}, {pipeline_mode = #tpu.pipeline_mode<synchronous>, transform_indices = @transform_2, window_bounds = array<i64: 128, 2048>}, {pipeline_mode = #tpu.pipeline_mode<synchronous>, transform_indices = @transform_3, window_bounds = array<i64: 1, 2048>}, {pipeline_mode = #tpu.pipeline_mode<synchronous>, transform_indices = @transform_4, window_bounds = array<i64: 2048, 128>}, {pipeline_mode = #tpu.pipeline_mode<synchronous>, transform_indices = @transform_5, window_bounds = array<i64: 1, 128>}, {transform_indices = @transform_6, window_bounds = array<i64: 2, 128>}, {transform_indices = @transform_7, window_bounds = array<i64: 2, 128>}]} {
    %c0 = arith.constant 0 : index
    %c0_0 = arith.constant 0 : index
    %0 = vector.load %arg1[%c0, %c0_0] : memref<2048x32xbf16, #tpu.memory_space<vmem>>, vector<2048x32xbf16>
    %c0_1 = arith.constant 0 : index
    %c0_2 = arith.constant 0 : index
    %1 = vector.load %arg2[%c0_1, %c0_2] : memref<32x128xbf16, #tpu.memory_space<vmem>>, vector<32x128xbf16>
    %cst = arith.constant dense<0.000000e+00> : vector<2048x128xf32>
    %2 = tpu.matmul %0, %1, %cst {dimension_numbers = #tpu.dot_dimension_numbers<[1], [0], [0], [1], [0, 0, 1, 1], [], []>} : vector<2048x32xbf16>, vector<32x128xbf16>, vector<2048x128xf32> -> vector<2048x128xf32>
    %cst_3 = arith.constant 0.000000e+00 : f32
    %3 = vector.broadcast %cst_3 : f32 to vector<2048x128xf32>
    %4 = arith.maximumf %2, %3 : vector<2048x128xf32>
    %5 = vector.shape_cast %4 : vector<2048x128xf32> to vector<2x1024x128xf32>
    %cst_4 = arith.constant dense<0.000000e+00> : vector<2x128xf32>
    %6 = vector.multi_reduction <add>, %5, %cst_4 [1] : vector<2x1024x128xf32> to vector<2x128xf32>
    %cst_5 = arith.constant 9.765625E-4 : f32
    %7 = vector.broadcast %cst_5 : f32 to vector<2x128xf32>
    %8 = arith.mulf %6, %7 : vector<2x128xf32>
    %c0_6 = arith.constant 0 : index
    %c0_7 = arith.constant 0 : index
    %9 = vector.load %arg7[%c0_6, %c0_7] : memref<2x128xf32, #tpu.memory_space<vmem>>, vector<2x128xf32>
    tpu.vector_store %arg7[%c0_6, %c0_7], %8 {strides = array<i32>} : memref<2x128xf32, #tpu.memory_space<vmem>>, vector<2x128xf32>,
    %10 = arith.truncf %8 : vector<2x128xf32> to vector<2x128xbf16>
    %c0_8 = arith.constant 0 : index
    %c0_9 = arith.constant 0 : index
    %11 = vector.load %arg3[%c0_8, %c0_9] : memref<128x2048xbf16, #tpu.memory_space<vmem>>, vector<128x2048xbf16>
    %cst_10 = arith.constant dense<0.000000e+00> : vector<2x2048xf32>
    %12 = tpu.matmul %10, %11, %cst_10 {dimension_numbers = #tpu.dot_dimension_numbers<[1], [0], [0], [1], [0, 0, 1, 1], [], []>} : vector<2x128xbf16>, vector<128x2048xbf16>, vector<2x2048xf32> -> vector<2x2048xf32>
    %c0_11 = arith.constant 0 : index
    %c0_12 = arith.constant 0 : index
    %13 = vector.load %arg4[%c0_11, %c0_12] : memref<1x2048xf32, #tpu.memory_space<vmem>>, vector<1x2048xf32>
    %14 = vector.broadcast %13 : vector<1x2048xf32> to vector<2x2048xf32>
    %15 = arith.addf %12, %14 : vector<2x2048xf32>
    %cst_13 = arith.constant 0.000000e+00 : f32
    %16 = vector.broadcast %cst_13 : f32 to vector<2x2048xf32>
    %17 = arith.maximumf %15, %16 : vector<2x2048xf32>
    %18 = arith.truncf %17 : vector<2x2048xf32> to vector<2x2048xbf16>
    %c0_14 = arith.constant 0 : index
    %c0_15 = arith.constant 0 : index
    %19 = vector.load %arg5[%c0_14, %c0_15] : memref<2048x128xbf16, #tpu.memory_space<vmem>>, vector<2048x128xbf16>
    %cst_16 = arith.constant dense<0.000000e+00> : vector<2x128xf32>
    %20 = tpu.matmul %18, %19, %cst_16 {dimension_numbers = #tpu.dot_dimension_numbers<[1], [0], [0], [1], [0, 0, 1, 1], [], []>} : vector<2x2048xbf16>, vector<2048x128xbf16>, vector<2x128xf32> -> vector<2x128xf32>
    %c0_17 = arith.constant 0 : index
    %c0_18 = arith.constant 0 : index
    %21 = vector.load %arg6[%c0_17, %c0_18] : memref<1x128xf32, #tpu.memory_space<vmem>>, vector<1x128xf32>
    %22 = vector.broadcast %21 : vector<1x128xf32> to vector<2x128xf32>
    %23 = arith.addf %20, %22 : vector<2x128xf32>
    %c0_19 = arith.constant 0 : index
    %c0_20 = arith.constant 0 : index
    %24 = vector.load %arg8[%c0_19, %c0_20] : memref<2x128xf32, #tpu.memory_space<vmem>>, vector<2x128xf32>
    tpu.vector_store %arg8[%c0_19, %c0_20], %23 {strides = array<i32>} : memref<2x128xf32, #tpu.memory_space<vmem>>, vector<2x128xf32>,
    return
  }
  func.func @transform_0(%arg0: i32) -> (i32, i32) {
    %c0_i32 = arith.constant 0 : i32
    %c0_i32_0 = arith.constant 0 : i32
    return %arg0, %c0_i32 : i32, i32
  }
  func.func @transform_1(%arg0: i32) -> (i32, i32) {
    %c0_i32 = arith.constant 0 : i32
    %c0_i32_0 = arith.constant 0 : i32
    %c0_i32_1 = arith.constant 0 : i32
    return %c0_i32, %c0_i32_0 : i32, i32
  }
  func.func @transform_2(%arg0: i32) -> (i32, i32) {
    %c0_i32 = arith.constant 0 : i32
    %c0_i32_0 = arith.constant 0 : i32
    %c0_i32_1 = arith.constant 0 : i32
    return %c0_i32, %c0_i32_0 : i32, i32
  }
  func.func @transform_3(%arg0: i32) -> (i32, i32) {
    %c0_i32 = arith.constant 0 : i32
    %c0_i32_0 = arith.constant 0 : i32
    %c0_i32_1 = arith.constant 0 : i32
    return %c0_i32, %c0_i32_0 : i32, i32
  }
  func.func @transform_4(%arg0: i32) -> (i32, i32) {
    %c0_i32 = arith.constant 0 : i32
    %c0_i32_0 = arith.constant 0 : i32
    %c0_i32_1 = arith.constant 0 : i32
    return %c0_i32, %c0_i32_0 : i32, i32
  }
  func.func @transform_5(%arg0: i32) -> (i32, i32) {
    %c0_i32 = arith.constant 0 : i32
    %c0_i32_0 = arith.constant 0 : i32
    %c0_i32_1 = arith.constant 0 : i32
    return %c0_i32, %c0_i32_0 : i32, i32
  }
  func.func @transform_6(%arg0: i32) -> (i32, i32) {
    %c0_i32 = arith.constant 0 : i32
    %c0_i32_0 = arith.constant 0 : i32
    return %arg0, %c0_i32 : i32, i32
  }
  func.func @transform_7(%arg0: i32) -> (i32, i32) {
    %c0_i32 = arith.constant 0 : i32
    %c0_i32_0 = arith.constant 0 : i32
    return %arg0, %c0_i32 : i32, i32
  }
}

</mosaic_0001>

<bundles_post_ra>
// kernel: twins_forward.1
= control target key start
LH: loop header
LB: loop body
LE: loop exit
PB: predicated region body
PF: predicated region fallthrough
CT: control target
= control target key end

     0   :  { %13 = vsyncpa [#allocation3], 0  ;;  %vm940_vm0 = vcmask 261120   ;;  %s8362_s0 = inlined_call_operand.vmem [shape: bf16[2048,32], index: 0, kind: input, shape index: {}]   ;;  %s8363_s1 = inlined_call_operand.vmem [shape: bf16[32,128], index: 1, kind: input, shape index: {}]   ;;  %s8364_s2 = inlined_call_operand.vmem [shape: bf16[128,2048], index: 2, kind: input, shape index: {}]   ;;  %s8365_s3 = inlined_call_operand.vmem [shape: f32[1,2048], index: 3, kind: input, shape index: {}]   ;;  %s8366_s4 = inlined_call_operand.vmem [shape: bf16[2048,128], index: 4, kind: input, shape index: {}]   ;;  %s8367_s5 = inlined_call_operand.vmem [shape: f32[1,128], index: 5, kind: input, shape index: {}]   ;;  %s8368_s6 = inlined_call_operand.hbm [shape: f32[2,128], index: 6, kind: output, shape index: {0}]   ;;  %s8369_s7 = inlined_call_operand.hbm [shape: f32[2,128], index: 7, kind: output, shape index: {1}]  }
   0x1   :  { %v6597_v0 = vld [vmem:[%s8363_s1 + $0x8] sm:$0xff]   ;;  %v6598_v1 = vld [vmem:[%s8363_s1] sm:$0xff]   ;;  %v6601_v4 = vld [vmem:[%s8362_s0 + $0x10] sm:$0xff]  }
   0x2   :  { %6334 = vmatprep.subr.bf16.mxu0 %v6597_v0  ;;  %v6599_v2 = vld [vmem:[%s8362_s0] sm:$0xff]   ;;  %v6600_v3 = vld [vmem:[%s8362_s0 + $0x8] sm:$0xff]   ;;  %v6602_v5 = vld [vmem:[%s8362_s0 + $0x18] sm:$0xff]  }
   0x3   :  { %6335 = vmatpush3.bf16.msra.mxu0 %v6597_v0  ;;  %6338 = vmatprep.mubr.msk.bf16.mxu0 %vm940_vm0, %v6599_v2  ;;  %v6603_v6 = vld [vmem:[%s8362_s0 + $0x20] sm:$0xff]   ;;  %v6604_v7 = vld [vmem:[%s8362_s0 + $0x28] sm:$0xff]   ;;  %v6605_v8 = vld [vmem:[%s8362_s0 + $0x30] sm:$0xff]  }
   0x4   :  { %6336 = vmatprep.subr.bf16.mxu0 %v6598_v1  ;;  %v6606_v9 = vld [vmem:[%s8362_s0 + $0x38] sm:$0xff]   ;;  %v6607_v10 = vld [vmem:[%s8362_s0 + $0x40] sm:$0xff]   ;;  %v6608_v11 = vld [vmem:[%s8362_s0 + $0x48] sm:$0xff]  }
   0x5   :  { %v6609_v12 = vld [vmem:[%s8362_s0 + $0x50] sm:$0xff]   ;;  %v6610_v13 = vld [vmem:[%s8362_s0 + $0x58] sm:$0xff]   ;;  %v6611_v14 = vld [vmem:[%s8362_s0 + $0x60] sm:$0xff]  }
   0x6   :  { %v6612_v15 = vld [vmem:[%s8362_s0 + $0x68] sm:$0xff]   ;;  %v6613_v16 = vld [vmem:[%s8362_s0 + $0x70] sm:$0xff]   ;;  %v6614_v17 = vld [vmem:[%s8362_s0 + $0x78] sm:$0xff]  }
   0x7   :  { %6337 = vmatpush3.bf16.msra.mxu0 %v6598_v1  ;;  %v6615_v18 = vld [vmem:[%s8362_s0 + $0x80] sm:$0xff]   ;;  %v6616_v19 = vld [vmem:[%s8362_s0 + $0x88] sm:$0xff]   ;;  %v6617_v20 = vld [vmem:[%s8362_s0 + $0x90] sm:$0xff]  }
   0x8   :  { %v6618_v21 = vld [vmem:[%s8362_s0 + $0x98] sm:$0xff]   ;;  %v6619_v22 = vld [vmem:[%s8362_s0 + $0xa0] sm:$0xff]   ;;  %v6620_v23 = vld [vmem:[%s8362_s0 + $0xa8] sm:$0xff]  }
   0x9   :  { %v6621_v24 = vld [vmem:[%s8362_s0 + $0xb0] sm:$0xff]   ;;  %v6622_v25 = vld [vmem:[%s8362_s0 + $0xb8] sm:$0xff]   ;;  %v6623_v26 = vld [vmem:[%s8362_s0 + $0xc0] sm:$0xff]  }
   0xa   :  { %6339 = vmatmul.mubr.msk.bf16.vlgmr.msra.gmra.mxu0 %vm940_vm0, %v6600_v3  ;;  %v6624_v27 = vld [vmem:[%s8362_s0 + $0xc8] sm:$0xff]   ;;  %v6625_v28 = vld [vmem:[%s8362_s0 + $0xd0] sm:$0xff]   ;;  %v6626_v29 = vld [vmem:[%s8362_s0 + $0xd8] sm:$0xff]  }
   0xb   :  { %6342 = vmatprep.mubr.msk.bf16.mxu0 %vm940_vm0, %v6601_v4  ;;  %v6627_v30 = vld [vmem:[%s8362_s0 + $0xe0] sm:$0xff]   ;;  %v6628_v31 = vld [vmem:[%s8362_s0 + $0xe8] sm:$0xff]   ;;  %v6629_v32 = vld [vmem:[%s8362_s0 + $0xf0] sm:$0xff]  }
   0xc   :  { %v6630_v33 = vld [vmem:[%s8362_s0 + $0xf8] sm:$0xff]   ;;  %v6631_v34 = vld [vmem:[%s8362_s0 + $0x100] sm:$0xff]   ;;  %v6632_v35 = vld [vmem:[%s8362_s0 + $0x108] sm:$0xff]  }
   0xd   :  { %v6633_v36 = vld [vmem:[%s8362_s0 + $0x110] sm:$0xff]   ;;  %v6634_v37 = vld [vmem:[%s8362_s0 + $0x118] sm:$0xff]   ;;  %v6635_v38 = vld [vmem:[%s8362_s0 + $0x120] sm:$0xff]  }
   0xe   :  { %v6636_v39 = vld [vmem:[%s8362_s0 + $0x128] sm:$0xff]   ;;  %v6637_v40 = vld [vmem:[%s8362_s0 + $0x130] sm:$0xff]   ;;  %v6638_v41 = vld [vmem:[%s8362_s0 + $0x138] sm:$0xff]  }
   0xf   :  { %v6639_v42 = vld [vmem:[%s8362_s0 + $0x140] sm:$0xff]   ;;  %v6640_v43 = vld [vmem:[%s8362_s0 + $0x148] sm:$0xff]   ;;  %v6641_v44 = vld [vmem:[%s8362_s0 + $0x150] sm:$0xff]  }
  0x10   :  { %v6642_v45 = vld [vmem:[%s8362_s0 + $0x158] sm:$0xff]   ;;  %v6643_v46 = vld [vmem:[%s8362_s0 + $0x160] sm:$0xff]   ;;  %v6644_v47 = vld [vmem:[%s8362_s0 + $0x168] sm:$0xff]  }
  0x11   :  { %v6645_v48 = vld [vmem:[%s8362_s0 + $0x170] sm:$0xff]   ;;  %v6646_v49 = vld [vmem:[%s8362_s0 + $0x178] sm:$0xff]   ;;  %v6647_v50 = vld [vmem:[%s8362_s0 + $0x180] sm:$0xff]  }
  0x12   :  { %6343 = vmatmul.mubr.msk.bf16.gmra.mxu0 %vm940_vm0, %v6602_v5  ;;  %v6648_v51 = vld [vmem:[%s8362_s0 + $0x188] sm:$0xff]   ;;  %v6649_v52 = vld [vmem:[%s8362_s0 + $0x190] sm:$0xff]  }
  0x13   :  { %6346 = vmatprep.mubr.msk.bf16.mxu0 %vm940_vm0, %v6603_v6 }
  0x1a   :  { %6347 = vmatmul.mubr.msk.bf16.gmra.mxu0 %vm940_vm0, %v6604_v7 }
  0x1b   :  { %6350 = vmatprep.mubr.msk.bf16.mxu0 %vm940_vm0, %v6605_v8 }
  0x22   :  { %6351 = vmatmul.mubr.msk.bf16.gmra.mxu0 %vm940_vm0, %v6606_v9 }
  0x23   :  { %6354 = vmatprep.mubr.msk.bf16.mxu0 %vm940_vm0, %v6607_v10 }
  0x2a   :  { %6355 = vmatmul.mubr.msk.bf16.gmra.mxu0 %vm940_vm0, %v6608_v11 }
  0x2b   :  { %6358 = vmatprep.mubr.msk.bf16.mxu0 %vm940_vm0, %v6609_v12 }
  0x32   :  { %6359 = vmatmul.mubr.msk.bf16.gmra.mxu0 %vm940_vm0, %v6610_v13 }
  0x33   :  { %6362 = vmatprep.mubr.msk.bf16.mxu0 %vm940_vm0, %v6611_v14 }
  0x3a   :  { %6363 = vmatmul.mubr.msk.bf16.gmra.mxu0 %vm940_vm0, %v6612_v15 }
  0x3b   :  { %6366 = vmatprep.mubr.msk.bf16.mxu0 %vm940_vm0, %v6613_v16 }
  0x42   :  { %6367 = vmatmul.mubr.msk.bf16.gmra.mxu0 %vm940_vm0, %v6614_v17 }
  0x43   :  { %6370 = vmatprep.mubr.msk.bf16.mxu0 %vm940_vm0, %v6615_v18 }
  0x4a   :  { %6371 = vmatmul.mubr.msk.bf16.gmra.mxu0 %vm940_vm0, %v6616_v19 }
  0x4b   :  { %6374 = vmatprep.mubr.msk.bf16.mxu0 %vm940_vm0, %v6617_v20 }
  0x52   :  { %6375 = vmatmul.mubr.msk.bf16.gmra.mxu0 %vm940_vm0, %v6618_v21 }
  0x53   :  { %6378 = vmatprep.mubr.msk.bf16.mxu0 %vm940_vm0, %v6619_v22 }
  0x5a   :  { %6379 = vmatmul.mubr.msk.bf16.gmra.mxu0 %vm940_vm0, %v6620_v23 }
  0x5b   :  { %6382 = vmatprep.mubr.msk.bf16.mxu0 %vm940_vm0, %v6621_v24 }
  0x62   :  { %6383 = vmatmul.mubr.msk.bf16.gmra.mxu0 %vm940_vm0, %v6622_v25 }
  0x63   :  { %6386 = vmatprep.mubr.msk.bf16.mxu0 %vm940_vm0, %v6623_v26 }
  0x6a   :  { %6387 = vmatmul.mubr.msk.bf16.gmra.mxu0 %vm940_vm0, %v6624_v27 }
  0x6b   :  { %6390 = vmatprep.mubr.msk.bf16.mxu0 %vm940_vm0, %v6625_v28 }
  0x72   :  { %6391 = vmatmul.mubr.msk.bf16.gmra.mxu0 %vm940_vm0, %v6626_v29 }
  0x73   :  { %6394 = vmatprep.mubr.msk.bf16.mxu0 %vm940_vm0, %v6627_v30 }
  0x7a   :  { %6395 = vmatmul.mubr.msk.bf16.gmra.mxu0 %vm940_vm0, %v6628_v31 }
  0x7b   :  { %6398 = vmatprep.mubr.msk.bf16.mxu0 %vm940_vm0, %v6629_v32 }
  0x82   :  { %6399 = vmatmul.mubr.msk.bf16.gmra.mxu0 %vm940_vm0, %v6630_v33 }
  0x83   :  { %6402 = vmatprep.mubr.msk.bf16.mxu0 %vm940_vm0, %v6631_v34 }
  0x8a   :  { %6403 = vmatmul.mubr.msk.bf16.gmra.mxu0 %vm940_vm0, %v6632_v35 }
  0x8b   :  { %6406 = vmatprep.mubr.msk.bf16.mxu0 %vm940_vm0, %v6633_v36 }
  0x92   :  { %6407 = vmatmul.mubr.msk.bf16.gmra.mxu0 %vm940_vm0, %v6634_v37 }
  0x93   :  { %6410 = vmatprep.mubr.msk.bf16.mxu0 %vm940_vm0, %v6635_v38 }
  0x9a   :  { %6411 = vmatmul.mubr.msk.bf16.gmra.mxu0 %vm940_vm0, %v6636_v39 }
  0x9b   :  { %6414 = vmatprep.mubr.msk.bf16.mxu0 %vm940_vm0, %v6637_v40 }
  0xa2   :  { %6415 = vmatmul.mubr.msk.bf16.gmra.mxu0 %vm940_vm0, %v6638_v41 }
  0xa3   :  { %6418 = vmatprep.mubr.msk.bf16.mxu0 %vm940_vm0, %v6639_v42 }
  0xaa   :  { %6419 = vmatmul.mubr.msk.bf16.gmra.mxu0 %vm940_vm0, %v6640_v43 }
  0xab   :  { %6422 = vmatprep.mubr.msk.bf16.mxu0 %vm940_vm0, %v6641_v44 }
  0xb2   :  { %6423 = vmatmul.mubr.msk.bf16.gmra.mxu0 %vm940_vm0, %v6642_v45 }
  0xb3   :  { %6426 = vmatprep.mubr.msk.bf16.mxu0 %vm940_vm0, %v6643_v46 }
  0xba   :  { %6427 = vmatmul.mubr.msk.bf16.gmra.mxu0 %vm940_vm0, %v6644_v47 }
  0xbb   :  { %6430 = vmatprep.mubr.msk.bf16.mxu0 %vm940_vm0, %v6645_v48 }
  0xc2   :  { %6431 = vmatmul.mubr.msk.bf16.gmra.mxu0 %vm940_vm0, %v6646_v49 }
  0xc3   :  { %6434 = vmatprep.mubr.msk.bf16.mxu0 %vm940_vm0, %v6647_v50 }
  0xc4   :  { %14 = vsyncpa [#allocation5], 0  ;;  %v6650_v56 = vld [vmem:[%s8362_s0 + $0x198] sm:$0xff]   ;;  %v6651_v57 = vld [vmem:[%s8362_s0 + $0x1a0] sm:$0xff]   ;;  %vm2908_vm1 = vcmask 1041409  }
  0xc5   :  { %v6652_v4 = vld [vmem:[%s8362_s0 + $0x1a8] sm:$0xff]   ;;  %v6653_v7 = vld [vmem:[%s8362_s0 + $0x1b0] sm:$0xff]   ;;  %v6654_v18 = vld [vmem:[%s8362_s0 + $0x1b8] sm:$0xff]  }
  0xc6   :  { %v6655_v21 = vld [vmem:[%s8362_s0 + $0x1c0] sm:$0xff]   ;;  %v6656_v32 = vld [vmem:[%s8362_s0 + $0x1c8] sm:$0xff]   ;;  %v6657_v35 = vld [vmem:[%s8362_s0 + $0x1d0] sm:$0xff]  }
  0xc7   :  { %v6658_v46 = vld [vmem:[%s8362_s0 + $0x1d8] sm:$0xff]   ;;  %v6659_v49 = vld [vmem:[%s8362_s0 + $0x1e0] sm:$0xff]  }
  0xca   :  { %v6340_v53 = vpop.f32.mrf.mxu0  ;;  %6435 = vmatmul.mubr.msk.bf16.gmra.mxu0 %vm940_vm0, %v6648_v51 }
  0xcb   :  { %6438 = vmatprep.mubr.msk.bf16.mxu0 %vm940_vm0, %v6649_v52  ;;  %v2384_v62 = vmax.f32 %v6340_v53, 0.0 }
  0xcc   :  { %v1359_v54 = vpop.f32.mrf.mxu0 }
  0xcd   :  { %v2382_v59 = vmax.f32 %v1359_v54, 0.0 }
  0xce   :  { %v6341_v55 = vpop.f32.mrf.mxu0 }
  0xcf   :  { %v2385_v1 = vmax.f32 %v6341_v55, 0.0 }
  0xd0   :  { %v1362_v58 = vpop.f32.mrf.mxu0 }
  0xd1   :  { %v2383_v60 = vmax.f32 %v1362_v58, 0.0 }
  0xd2   :  { %v6344_v61 = vpop.f32.mrf.mxu0  ;;  %6439 = vmatmul.mubr.msk.bf16.gmra.mxu0 %vm940_vm0, %v6650_v56 }
  0xd3   :  { %v2638_v63 = vadd.f32 %v2383_v60, %v2382_v59  ;;  %6442 = vmatprep.mubr.msk.bf16.mxu0 %vm940_vm0, %v6651_v57  ;;  %v2388_v12 = vmax.f32 %v6344_v61, 0.0  ;;  %v6660_v60 = vld [vmem:[%s8362_s0 + $0x1e8] sm:$0xff]  }
  0xd4   :  { %v1375_v0 = vpop.f32.mrf.mxu0 }
  0xd5   :  { %v2639_v2 = vadd.f32 %v2638_v63, %v2384_v62  ;;  %v2386_v6 = vmax.f32 %v1375_v0, 0.0  ;;  %v6661_v63 = vld [vmem:[%s8362_s0 + $0x1f0] sm:$0xff]  }
  0xd6   :  { %v6345_v3 = vpop.f32.mrf.mxu0 }
  0xd7   :  { %v2640_v5 = vadd.f32 %v2639_v2, %v2385_v1  ;;  %v2389_v15 = vmax.f32 %v6345_v3, 0.0 }
  0xd8   :  { %v1378_v8 = vpop.f32.mrf.mxu0 }
  0xd9   :  { %v2641_v9 = vadd.f32 %v2640_v5, %v2386_v6  ;;  %v2387_v10 = vmax.f32 %v1378_v8, 0.0 }
  0xda   :  { %v6348_v11 = vpop.f32.mrf.mxu0  ;;  %6443 = vmatmul.mubr.msk.bf16.gmra.mxu0 %vm940_vm0, %v6652_v4 }
  0xdb   :  { %v2642_v13 = vadd.f32 %v2641_v9, %v2387_v10  ;;  %6446 = vmatprep.mubr.msk.bf16.mxu0 %vm940_vm0, %v6653_v7  ;;  %v2392_v26 = vmax.f32 %v6348_v11, 0.0  ;;  %v6662_v10 = vld [vmem:[%s8362_s0 + $0x1f8] sm:$0xff]  }
  0xdc   :  { %v1391_v14 = vpop.f32.mrf.mxu0 }
  0xdd   :  { %v2643_v16 = vadd.f32 %v2642_v13, %v2388_v12  ;;  %v2390_v20 = vmax.f32 %v1391_v14, 0.0  ;;  %v6663_v13 = vld [vmem:[%s8362_s0 + $0x200] sm:$0xff]  }
  0xde   :  { %v6349_v17 = vpop.f32.mrf.mxu0 }
  0xdf   :  { %v2644_v19 = vadd.f32 %v2643_v16, %v2389_v15  ;;  %v2393_v29 = vmax.f32 %v6349_v17, 0.0 }
  0xe0   :  { %v1394_v22 = vpop.f32.mrf.mxu0 }
  0xe1   :  { %v2645_v23 = vadd.f32 %v2644_v19, %v2390_v20  ;;  %v2391_v24 = vmax.f32 %v1394_v22, 0.0 }
  0xe2   :  { %v6352_v25 = vpop.f32.mrf.mxu0  ;;  %6447 = vmatmul.mubr.msk.bf16.gmra.mxu0 %vm940_vm0, %v6654_v18 }
  0xe3   :  { %v2646_v27 = vadd.f32 %v2645_v23, %v2391_v24  ;;  %6450 = vmatprep.mubr.msk.bf16.mxu0 %vm940_vm0, %v6655_v21  ;;  %v2396_v40 = vmax.f32 %v6352_v25, 0.0  ;;  %v6664_v24 = vld [vmem:[%s8362_s0 + $0x208] sm:$0xff]  }
  0xe4   :  { %v1407_v28 = vpop.f32.mrf.mxu0 }
  0xe5   :  { %v2647_v30 = vadd.f32 %v2646_v27, %v2392_v26  ;;  %v2394_v33 = vmax.f32 %v1407_v28, 0.0  ;;  %v6665_v27 = vld [vmem:[%s8362_s0 + $0x210] sm:$0xff]  }
  0xe6   :  { %v6353_v31 = vpop.f32.mrf.mxu0 }
  0xe7   :  { %v2648_v34 = vadd.f32 %v2647_v30, %v2393_v29  ;;  %v2397_v43 = vmax.f32 %v6353_v31, 0.0 }
  0xe8   :  { %v1410_v36 = vpop.f32.mrf.mxu0 }
  0xe9   :  { %v2649_v37 = vadd.f32 %v2648_v34, %v2394_v33  ;;  %v2395_v38 = vmax.f32 %v1410_v36, 0.0 }
  0xea   :  { %v6356_v39 = vpop.f32.mrf.mxu0  ;;  %6451 = vmatmul.mubr.msk.bf16.gmra.mxu0 %vm940_vm0, %v6656_v32 }
  0xeb   :  { %v2650_v41 = vadd.f32 %v2649_v37, %v2395_v38  ;;  %6454 = vmatprep.mubr.msk.bf16.mxu0 %vm940_vm0, %v6657_v35  ;;  %v2400_v54 = vmax.f32 %v6356_v39, 0.0  ;;  %v6666_v38 = vld [vmem:[%s8362_s0 + $0x218] sm:$0xff]  }
  0xec   :  { %v1423_v42 = vpop.f32.mrf.mxu0 }
  0xed   :  { %v2651_v44 = vadd.f32 %v2650_v41, %v2396_v40  ;;  %v2398_v47 = vmax.f32 %v1423_v42, 0.0  ;;  %v6667_v41 = vld [vmem:[%s8362_s0 + $0x220] sm:$0xff]  }
  0xee   :  { %v6357_v45 = vpop.f32.mrf.mxu0 }
  0xef   :  { %v2652_v48 = vadd.f32 %v2651_v44, %v2397_v43  ;;  %v2401_v57 = vmax.f32 %v6357_v45, 0.0 }
  0xf0   :  { %v1426_v50 = vpop.f32.mrf.mxu0 }
  0xf1   :  { %v2653_v51 = vadd.f32 %v2652_v48, %v2398_v47  ;;  %v2399_v52 = vmax.f32 %v1426_v50, 0.0 }
  0xf2   :  { %v6360_v53 = vpop.f32.mrf.mxu0  ;;  %6455 = vmatmul.mubr.msk.bf16.gmra.mxu0 %vm940_vm0, %v6658_v46 }
  0xf3   :  { %v2654_v55 = vadd.f32 %v2653_v51, %v2399_v52  ;;  %6458 = vmatprep.mubr.msk.bf16.mxu0 %vm940_vm0, %v6659_v49  ;;  %v2404_v4 = vmax.f32 %v6360_v53, 0.0  ;;  %v6668_v52 = vld [vmem:[%s8362_s0 + $0x228] sm:$0xff]  }
  0xf4   :  { %v1439_v56 = vpop.f32.mrf.mxu0 }
  0xf5   :  { %v2655_v58 = vadd.f32 %v2654_v55, %v2400_v54  ;;  %v2402_v61 = vmax.f32 %v1439_v56, 0.0  ;;  %v6669_v55 = vld [vmem:[%s8362_s0 + $0x230] sm:$0xff]  }
  0xf6   :  { %v6361_v59 = vpop.f32.mrf.mxu0 }
  0xf7   :  { %v2656_v62 = vadd.f32 %v2655_v58, %v2401_v57  ;;  %v2405_v7 = vmax.f32 %v6361_v59, 0.0 }
  0xf8   :  { %v1442_v0 = vpop.f32.mrf.mxu0 }
  0xf9   :  { %v2657_v1 = vadd.f32 %v2656_v62, %v2402_v61  ;;  %v2403_v2 = vmax.f32 %v1442_v0, 0.0 }
  0xfa   :  { %v6364_v3 = vpop.f32.mrf.mxu0  ;;  %6459 = vmatmul.mubr.msk.bf16.gmra.mxu0 %vm940_vm0, %v6660_v60 }
  0xfb   :  { %v2658_v5 = vadd.f32 %v2657_v1, %v2403_v2  ;;  %6462 = vmatprep.mubr.msk.bf16.mxu0 %vm940_vm0, %v6661_v63  ;;  %v2408_v18 = vmax.f32 %v6364_v3, 0.0  ;;  %v6670_v2 = vld [vmem:[%s8362_s0 + $0x238] sm:$0xff]  }
  0xfc   :  { %v1455_v6 = vpop.f32.mrf.mxu0 }
  0xfd   :  { %v2659_v8 = vadd.f32 %v2658_v5, %v2404_v4  ;;  %v2406_v11 = vmax.f32 %v1455_v6, 0.0  ;;  %v6671_v5 = vld [vmem:[%s8362_s0 + $0x240] sm:$0xff]  }
  0xfe   :  { %v6365_v9 = vpop.f32.mrf.mxu0 }
  0xff   :  { %v2660_v12 = vadd.f32 %v2659_v8, %v2405_v7  ;;  %v2409_v21 = vmax.f32 %v6365_v9, 0.0 }
 0x100   :  { %v1458_v14 = vpop.f32.mrf.mxu0 }
 0x101   :  { %v2661_v15 = vadd.f32 %v2660_v12, %v2406_v11  ;;  %v2407_v16 = vmax.f32 %v1458_v14, 0.0 }
 0x102   :  { %v6368_v17 = vpop.f32.mrf.mxu0  ;;  %6463 = vmatmul.mubr.msk.bf16.gmra.mxu0 %vm940_vm0, %v6662_v10 }
 0x103   :  { %v2662_v19 = vadd.f32 %v2661_v15, %v2407_v16  ;;  %6466 = vmatprep.mubr.msk.bf16.mxu0 %vm940_vm0, %v6663_v13  ;;  %v2412_v32 = vmax.f32 %v6368_v17, 0.0  ;;  %v6672_v16 = vld [vmem:[%s8362_s0 + $0x248] sm:$0xff]  }
 0x104   :  { %v1471_v20 = vpop.f32.mrf.mxu0 }
 0x105   :  { %v2663_v22 = vadd.f32 %v2662_v19, %v2408_v18  ;;  %v2410_v25 = vmax.f32 %v1471_v20, 0.0  ;;  %v6673_v19 = vld [vmem:[%s8362_s0 + $0x250] sm:$0xff]  }
 0x106   :  { %v6369_v23 = vpop.f32.mrf.mxu0 }
 0x107   :  { %v2664_v26 = vadd.f32 %v2663_v22, %v2409_v21  ;;  %v2413_v35 = vmax.f32 %v6369_v23, 0.0 }
 0x108   :  { %v1474_v28 = vpop.f32.mrf.mxu0 }
 0x109   :  { %v2665_v29 = vadd.f32 %v2664_v26, %v2410_v25  ;;  %v2411_v30 = vmax.f32 %v1474_v28, 0.0 }
 0x10a   :  { %v6372_v31 = vpop.f32.mrf.mxu0  ;;  %6467 = vmatmul.mubr.msk.bf16.gmra.mxu0 %vm940_vm0, %v6664_v24 }
 0x10b   :  { %v2666_v33 = vadd.f32 %v2665_v29, %v2411_v30  ;;  %6470 = vmatprep.mubr.msk.bf16.mxu0 %vm940_vm0, %v6665_v27  ;;  %v2416_v46 = vmax.f32 %v6372_v31, 0.0  ;;  %v6674_v30 = vld [vmem:[%s8362_s0 + $0x258] sm:$0xff]  }
 0x10c   :  { %v1487_v34 = vpop.f32.mrf.mxu0 }
 0x10d   :  { %v2667_v36 = vadd.f32 %v2666_v33, %v2412_v32  ;;  %v2414_v39 = vmax.f32 %v1487_v34, 0.0  ;;  %v6675_v33 = vld [vmem:[%s8362_s0 + $0x260] sm:$0xff]  }
 0x10e   :  { %v6373_v37 = vpop.f32.mrf.mxu0 }
 0x10f   :  { %v2668_v40 = vadd.f32 %v2667_v36, %v2413_v35  ;;  %v2417_v49 = vmax.f32 %v6373_v37, 0.0 }
 0x110   :  { %v1490_v42 = vpop.f32.mrf.mxu0 }
 0x111   :  { %v2669_v43 = vadd.f32 %v2668_v40, %v2414_v39  ;;  %v2415_v44 = vmax.f32 %v1490_v42, 0.0 }
 0x112   :  { %v6376_v45 = vpop.f32.mrf.mxu0  ;;  %6471 = vmatmul.mubr.msk.bf16.gmra.mxu0 %vm940_vm0, %v6666_v38 }
 0x113   :  { %v2670_v47 = vadd.f32 %v2669_v43, %v2415_v44  ;;  %6474 = vmatprep.mubr.msk.bf16.mxu0 %vm940_vm0, %v6667_v41  ;;  %v2420_v60 = vmax.f32 %v6376_v45, 0.0  ;;  %v6676_v44 = vld [vmem:[%s8362_s0 + $0x268] sm:$0xff]  }
 0x114   :  { %v1503_v48 = vpop.f32.mrf.mxu0 }
 0x115   :  { %v2671_v50 = vadd.f32 %v2670_v47, %v2416_v46  ;;  %v2418_v53 = vmax.f32 %v1503_v48, 0.0  ;;  %v6677_v47 = vld [vmem:[%s8362_s0 + $0x270] sm:$0xff]  }
 0x116   :  { %v6377_v51 = vpop.f32.mrf.mxu0 }
 0x117   :  { %v2672_v54 = vadd.f32 %v2671_v50, %v2417_v49  ;;  %v2421_v63 = vmax.f32 %v6377_v51, 0.0 }
 0x118   :  { %v1506_v56 = vpop.f32.mrf.mxu0 }
 0x119   :  { %v2673_v57 = vadd.f32 %v2672_v54, %v2418_v53  ;;  %v2419_v58 = vmax.f32 %v1506_v56, 0.0 }
 0x11a   :  { %v6380_v59 = vpop.f32.mrf.mxu0  ;;  %6475 = vmatmul.mubr.msk.bf16.gmra.mxu0 %vm940_vm0, %v6668_v52 }
 0x11b   :  { %v2674_v61 = vadd.f32 %v2673_v57, %v2419_v58  ;;  %6478 = vmatprep.mubr.msk.bf16.mxu0 %vm940_vm0, %v6669_v55  ;;  %v2424_v10 = vmax.f32 %v6380_v59, 0.0  ;;  %v6678_v58 = vld [vmem:[%s8362_s0 + $0x278] sm:$0xff]  }
 0x11c   :  { %v1519_v62 = vpop.f32.mrf.mxu0 }
 0x11d   :  { %v2675_v0 = vadd.f32 %v2674_v61, %v2420_v60  ;;  %v2422_v3 = vmax.f32 %v1519_v62, 0.0  ;;  %v6679_v61 = vld [vmem:[%s8362_s0 + $0x280] sm:$0xff]  }
 0x11e   :  { %v6381_v1 = vpop.f32.mrf.mxu0 }
 0x11f   :  { %v2676_v4 = vadd.f32 %v2675_v0, %v2421_v63  ;;  %v2425_v13 = vmax.f32 %v6381_v1, 0.0 }
 0x120   :  { %v1522_v6 = vpop.f32.mrf.mxu0 }
 0x121   :  { %v2677_v7 = vadd.f32 %v2676_v4, %v2422_v3  ;;  %v2423_v8 = vmax.f32 %v1522_v6, 0.0 }
 0x122   :  { %v6384_v9 = vpop.f32.mrf.mxu0  ;;  %6479 = vmatmul.mubr.msk.bf16.gmra.mxu0 %vm940_vm0, %v6670_v2 }
 0x123   :  { %v2678_v11 = vadd.f32 %v2677_v7, %v2423_v8  ;;  %6482 = vmatprep.mubr.msk.bf16.mxu0 %vm940_vm0, %v6671_v5  ;;  %v2428_v24 = vmax.f32 %v6384_v9, 0.0  ;;  %v6680_v8 = vld [vmem:[%s8362_s0 + $0x288] sm:$0xff]  }
 0x124   :  { %v1535_v12 = vpop.f32.mrf.mxu0 }
 0x125   :  { %v2679_v14 = vadd.f32 %v2678_v11, %v2424_v10  ;;  %v2426_v17 = vmax.f32 %v1535_v12, 0.0  ;;  %v6681_v11 = vld [vmem:[%s8362_s0 + $0x290] sm:$0xff]  }
 0x126   :  { %v6385_v15 = vpop.f32.mrf.mxu0 }
 0x127   :  { %v2680_v18 = vadd.f32 %v2679_v14, %v2425_v13  ;;  %v2429_v27 = vmax.f32 %v6385_v15, 0.0 }
 0x128   :  { %v1538_v20 = vpop.f32.mrf.mxu0 }
 0x129   :  { %v2681_v21 = vadd.f32 %v2680_v18, %v2426_v17  ;;  %v2427_v22 = vmax.f32 %v1538_v20, 0.0 }
 0x12a   :  { %v6388_v23 = vpop.f32.mrf.mxu0  ;;  %6483 = vmatmul.mubr.msk.bf16.gmra.mxu0 %vm940_vm0, %v6672_v16 }
 0x12b   :  { %v2682_v25 = vadd.f32 %v2681_v21, %v2427_v22  ;;  %6486 = vmatprep.mubr.msk.bf16.mxu0 %vm940_vm0, %v6673_v19  ;;  %v2432_v38 = vmax.f32 %v6388_v23, 0.0  ;;  %v6682_v22 = vld [vmem:[%s8362_s0 + $0x298] sm:$0xff]  }
 0x12c   :  { %v1551_v26 = vpop.f32.mrf.mxu0 }
 0x12d   :  { %v2683_v28 = vadd.f32 %v2682_v25, %v2428_v24  ;;  %v2430_v31 = vmax.f32 %v1551_v26, 0.0  ;;  %v6683_v25 = vld [vmem:[%s8362_s0 + $0x2a0] sm:$0xff]  }
 0x12e   :  { %v6389_v29 = vpop.f32.mrf.mxu0 }
 0x12f   :  { %v2684_v32 = vadd.f32 %v2683_v28, %v2429_v27  ;;  %v2433_v41 = vmax.f32 %v6389_v29, 0.0 }
 0x130   :  { %v1554_v34 = vpop.f32.mrf.mxu0 }
 0x131   :  { %v2685_v35 = vadd.f32 %v2684_v32, %v2430_v31  ;;  %v2431_v36 = vmax.f32 %v1554_v34, 0.0 }
 0x132   :  { %v6392_v37 = vpop.f32.mrf.mxu0  ;;  %6487 = vmatmul.mubr.msk.bf16.gmra.mxu0 %vm940_vm0, %v6674_v30 }
 0x133   :  { %v2686_v39 = vadd.f32 %v2685_v35, %v2431_v36  ;;  %6490 = vmatprep.mubr.msk.bf16.mxu0 %vm940_vm0, %v6675_v33  ;;  %v2436_v52 = vmax.f32 %v6392_v37, 0.0  ;;  %v6684_v36 = vld [vmem:[%s8362_s0 + $0x2a8] sm:$0xff]  }
 0x134   :  { %v1567_v40 = vpop.f32.mrf.mxu0 }
 0x135   :  { %v2687_v42 = vadd.f32 %v2686_v39, %v2432_v38  ;;  %v2434_v45 = vmax.f32 %v1567_v40, 0.0  ;;  %v6685_v39 = vld [vmem:[%s8362_s0 + $0x2b0] sm:$0xff]  }
 0x136   :  { %v6393_v43 = vpop.f32.mrf.mxu0 }
 0x137   :  { %v2688_v46 = vadd.f32 %v2687_v42, %v2433_v41  ;;  %v2437_v55 = vmax.f32 %v6393_v43, 0.0 }
 0x138   :  { %v1570_v48 = vpop.f32.mrf.mxu0 }
 0x139   :  { %v2689_v49 = vadd.f32 %v2688_v46, %v2434_v45  ;;  %v2435_v50 = vmax.f32 %v1570_v48, 0.0 }
 0x13a   :  { %v6396_v51 = vpop.f32.mrf.mxu0  ;;  %6491 = vmatmul.mubr.msk.bf16.gmra.mxu0 %vm940_vm0, %v6676_v44 }
 0x13b   :  { %v2690_v53 = vadd.f32 %v2689_v49, %v2435_v50  ;;  %6494 = vmatprep.mubr.msk.bf16.mxu0 %vm940_vm0, %v6677_v47  ;;  %v2440_v2 = vmax.f32 %v6396_v51, 0.0  ;;  %v6686_v50 = vld [vmem:[%s8362_s0 + $0x2b8] sm:$0xff]  }
 0x13c   :  { %v1583_v54 = vpop.f32.mrf.mxu0 }
 0x13d   :  { %v2691_v56 = vadd.f32 %v2690_v53, %v2436_v52  ;;  %v2438_v59 = vmax.f32 %v1583_v54, 0.0  ;;  %v6687_v53 = vld [vmem:[%s8362_s0 + $0x2c0] sm:$0xff]  }
 0x13e   :  { %v6397_v57 = vpop.f32.mrf.mxu0 }
 0x13f   :  { %v2692_v60 = vadd.f32 %v2691_v56, %v2437_v55  ;;  %v2441_v5 = vmax.f32 %v6397_v57, 0.0 }
 0x140   :  { %v1586_v62 = vpop.f32.mrf.mxu0 }
 0x141   :  { %v2693_v63 = vadd.f32 %v2692_v60, %v2438_v59  ;;  %v2439_v0 = vmax.f32 %v1586_v62, 0.0 }
 0x142   :  { %v6400_v1 = vpop.f32.mrf.mxu0  ;;  %6495 = vmatmul.mubr.msk.bf16.gmra.mxu0 %vm940_vm0, %v6678_v58 }
 0x143   :  { %v2694_v3 = vadd.f32 %v2693_v63, %v2439_v0  ;;  %6498 = vmatprep.mubr.msk.bf16.mxu0 %vm940_vm0, %v6679_v61  ;;  %v2444_v16 = vmax.f32 %v6400_v1, 0.0  ;;  %v6688_v0 = vld [vmem:[%s8362_s0 + $0x2c8] sm:$0xff]  }
 0x144   :  { %v1599_v4 = vpop.f32.mrf.mxu0 }
 0x145   :  { %v2695_v6 = vadd.f32 %v2694_v3, %v2440_v2  ;;  %v2442_v9 = vmax.f32 %v1599_v4, 0.0  ;;  %v6689_v3 = vld [vmem:[%s8362_s0 + $0x2d0] sm:$0xff]  }
 0x146   :  { %v6401_v7 = vpop.f32.mrf.mxu0 }
 0x147   :  { %v2696_v10 = vadd.f32 %v2695_v6, %v2441_v5  ;;  %v2445_v19 = vmax.f32 %v6401_v7, 0.0 }
 0x148   :  { %v1602_v12 = vpop.f32.mrf.mxu0 }
 0x149   :  { %v2697_v13 = vadd.f32 %v2696_v10, %v2442_v9  ;;  %v2443_v14 = vmax.f32 %v1602_v12, 0.0 }
 0x14a   :  { %v6404_v15 = vpop.f32.mrf.mxu0  ;;  %6499 = vmatmul.mubr.msk.bf16.gmra.mxu0 %vm940_vm0, %v6680_v8 }
 0x14b   :  { %v2698_v17 = vadd.f32 %v2697_v13, %v2443_v14  ;;  %6502 = vmatprep.mubr.msk.bf16.mxu0 %vm940_vm0, %v6681_v11  ;;  %v2448_v30 = vmax.f32 %v6404_v15, 0.0  ;;  %v6690_v14 = vld [vmem:[%s8362_s0 + $0x2d8] sm:$0xff]  }
 0x14c   :  { %v1615_v18 = vpop.f32.mrf.mxu0 }
 0x14d   :  { %v2699_v20 = vadd.f32 %v2698_v17, %v2444_v16  ;;  %v2446_v23 = vmax.f32 %v1615_v18, 0.0  ;;  %v6691_v17 = vld [vmem:[%s8362_s0 + $0x2e0] sm:$0xff]  }
 0x14e   :  { %v6405_v21 = vpop.f32.mrf.mxu0 }
 0x14f   :  { %v2700_v24 = vadd.f32 %v2699_v20, %v2445_v19  ;;  %v2449_v33 = vmax.f32 %v6405_v21, 0.0 }
 0x150   :  { %v1618_v26 = vpop.f32.mrf.mxu0 }
 0x151   :  { %v2701_v27 = vadd.f32 %v2700_v24, %v2446_v23  ;;  %v2447_v28 = vmax.f32 %v1618_v26, 0.0 }
 0x152   :  { %v6408_v29 = vpop.f32.mrf.mxu0  ;;  %6503 = vmatmul.mubr.msk.bf16.gmra.mxu0 %vm940_vm0, %v6682_v22 }
 0x153   :  { %v2702_v31 = vadd.f32 %v2701_v27, %v2447_v28  ;;  %6506 = vmatprep.mubr.msk.bf16.mxu0 %vm940_vm0, %v6683_v25  ;;  %v2452_v44 = vmax.f32 %v6408_v29, 0.0  ;;  %v6692_v28 = vld [vmem:[%s8362_s0 + $0x2e8] sm:$0xff]  }
 0x154   :  { %v1631_v32 = vpop.f32.mrf.mxu0 }
 0x155   :  { %v2703_v34 = vadd.f32 %v2702_v31, %v2448_v30  ;;  %v2450_v37 = vmax.f32 %v1631_v32, 0.0  ;;  %v6693_v31 = vld [vmem:[%s8362_s0 + $0x2f0] sm:$0xff]  }
 0x156   :  { %v6409_v35 = vpop.f32.mrf.mxu0 }
 0x157   :  { %v2704_v38 = vadd.f32 %v2703_v34, %v2449_v33  ;;  %v2453_v47 = vmax.f32 %v6409_v35, 0.0 }
 0x158   :  { %v1634_v40 = vpop.f32.mrf.mxu0 }
 0x159   :  { %v2705_v41 = vadd.f32 %v2704_v38, %v2450_v37  ;;  %v2451_v42 = vmax.f32 %v1634_v40, 0.0 }
 0x15a   :  { %v6412_v43 = vpop.f32.mrf.mxu0  ;;  %6507 = vmatmul.mubr.msk.bf16.gmra.mxu0 %vm940_vm0, %v6684_v36 }
 0x15b   :  { %v2706_v45 = vadd.f32 %v2705_v41, %v2451_v42  ;;  %6510 = vmatprep.mubr.msk.bf16.mxu0 %vm940_vm0, %v6685_v39  ;;  %v2456_v58 = vmax.f32 %v6412_v43, 0.0  ;;  %v6694_v42 = vld [vmem:[%s8362_s0 + $0x2f8] sm:$0xff]  }
 0x15c   :  { %v1647_v46 = vpop.f32.mrf.mxu0 }
 0x15d   :  { %v2707_v48 = vadd.f32 %v2706_v45, %v2452_v44  ;;  %v2454_v51 = vmax.f32 %v1647_v46, 0.0  ;;  %v6695_v45 = vld [vmem:[%s8362_s0 + $0x300] sm:$0xff]  }
 0x15e   :  { %v6413_v49 = vpop.f32.mrf.mxu0 }
 0x15f   :  { %v2708_v52 = vadd.f32 %v2707_v48, %v2453_v47  ;;  %v2457_v61 = vmax.f32 %v6413_v49, 0.0 }
 0x160   :  { %v1650_v54 = vpop.f32.mrf.mxu0 }
 0x161   :  { %v2709_v55 = vadd.f32 %v2708_v52, %v2454_v51  ;;  %v2455_v56 = vmax.f32 %v1650_v54, 0.0 }
 0x162   :  { %v6416_v57 = vpop.f32.mrf.mxu0  ;;  %6511 = vmatmul.mubr.msk.bf16.gmra.mxu0 %vm940_vm0, %v6686_v50 }
 0x163   :  { %v2710_v59 = vadd.f32 %v2709_v55, %v2455_v56  ;;  %6514 = vmatprep.mubr.msk.bf16.mxu0 %vm940_vm0, %v6687_v53  ;;  %v2460_v8 = vmax.f32 %v6416_v57, 0.0  ;;  %v6696_v56 = vld [vmem:[%s8362_s0 + $0x308] sm:$0xff]  }
 0x164   :  { %v1663_v60 = vpop.f32.mrf.mxu0 }
 0x165   :  { %v2711_v62 = vadd.f32 %v2710_v59, %v2456_v58  ;;  %v2458_v1 = vmax.f32 %v1663_v60, 0.0  ;;  %v6697_v59 = vld [vmem:[%s8362_s0 + $0x310] sm:$0xff]  }
 0x166   :  { %v6417_v63 = vpop.f32.mrf.mxu0 }
 0x167   :  { %v2712_v2 = vadd.f32 %v2711_v62, %v2457_v61  ;;  %v2461_v11 = vmax.f32 %v6417_v63, 0.0 }
 0x168   :  { %v1666_v4 = vpop.f32.mrf.mxu0 }
 0x169   :  { %v2713_v5 = vadd.f32 %v2712_v2, %v2458_v1  ;;  %v2459_v6 = vmax.f32 %v1666_v4, 0.0 }
 0x16a   :  { %v6420_v7 = vpop.f32.mrf.mxu0  ;;  %6515 = vmatmul.mubr.msk.bf16.gmra.mxu0 %vm940_vm0, %v6688_v0 }
 0x16b   :  { %v2714_v9 = vadd.f32 %v2713_v5, %v2459_v6  ;;  %6518 = vmatprep.mubr.msk.bf16.mxu0 %vm940_vm0, %v6689_v3  ;;  %v2464_v22 = vmax.f32 %v6420_v7, 0.0  ;;  %v6698_v6 = vld [vmem:[%s8362_s0 + $0x318] sm:$0xff]  }
 0x16c   :  { %v1679_v10 = vpop.f32.mrf.mxu0 }
 0x16d   :  { %v2715_v12 = vadd.f32 %v2714_v9, %v2460_v8  ;;  %v2462_v15 = vmax.f32 %v1679_v10, 0.0  ;;  %v6699_v9 = vld [vmem:[%s8362_s0 + $0x320] sm:$0xff]  }
 0x16e   :  { %v6421_v13 = vpop.f32.mrf.mxu0 }
 0x16f   :  { %v2716_v16 = vadd.f32 %v2715_v12, %v2461_v11  ;;  %v2465_v25 = vmax.f32 %v6421_v13, 0.0 }
 0x170   :  { %v1682_v18 = vpop.f32.mrf.mxu0 }
 0x171   :  { %v2717_v19 = vadd.f32 %v2716_v16, %v2462_v15  ;;  %v2463_v20 = vmax.f32 %v1682_v18, 0.0 }
 0x172   :  { %v6424_v21 = vpop.f32.mrf.mxu0  ;;  %6519 = vmatmul.mubr.msk.bf16.gmra.mxu0 %vm940_vm0, %v6690_v14 }
 0x173   :  { %v2718_v23 = vadd.f32 %v2717_v19, %v2463_v20  ;;  %6522 = vmatprep.mubr.msk.bf16.mxu0 %vm940_vm0, %v6691_v17  ;;  %v2468_v36 = vmax.f32 %v6424_v21, 0.0  ;;  %v6700_v20 = vld [vmem:[%s8362_s0 + $0x328] sm:$0xff]  }
 0x174   :  { %v1695_v24 = vpop.f32.mrf.mxu0 }
 0x175   :  { %v2719_v26 = vadd.f32 %v2718_v23, %v2464_v22  ;;  %v2466_v29 = vmax.f32 %v1695_v24, 0.0  ;;  %v6701_v23 = vld [vmem:[%s8362_s0 + $0x330] sm:$0xff]  }
 0x176   :  { %v6425_v27 = vpop.f32.mrf.mxu0 }
 0x177   :  { %v2720_v30 = vadd.f32 %v2719_v26, %v2465_v25  ;;  %v2469_v39 = vmax.f32 %v6425_v27, 0.0 }
 0x178   :  { %v1698_v32 = vpop.f32.mrf.mxu0 }
 0x179   :  { %v2721_v33 = vadd.f32 %v2720_v30, %v2466_v29  ;;  %v2467_v34 = vmax.f32 %v1698_v32, 0.0 }
 0x17a   :  { %v6428_v35 = vpop.f32.mrf.mxu0  ;;  %6523 = vmatmul.mubr.msk.bf16.gmra.mxu0 %vm940_vm0, %v6692_v28 }
 0x17b   :  { %v2722_v37 = vadd.f32 %v2721_v33, %v2467_v34  ;;  %6526 = vmatprep.mubr.msk.bf16.mxu0 %vm940_vm0, %v6693_v31  ;;  %v2472_v50 = vmax.f32 %v6428_v35, 0.0  ;;  %v6702_v34 = vld [vmem:[%s8362_s0 + $0x338] sm:$0xff]  }
 0x17c   :  { %v1711_v38 = vpop.f32.mrf.mxu0 }
 0x17d   :  { %v2723_v40 = vadd.f32 %v2722_v37, %v2468_v36  ;;  %v2470_v43 = vmax.f32 %v1711_v38, 0.0  ;;  %v6703_v37 = vld [vmem:[%s8362_s0 + $0x340] sm:$0xff]  }
 0x17e   :  { %v6429_v41 = vpop.f32.mrf.mxu0 }
 0x17f   :  { %v2724_v44 = vadd.f32 %v2723_v40, %v2469_v39  ;;  %v2473_v53 = vmax.f32 %v6429_v41, 0.0 }
 0x180   :  { %v1714_v46 = vpop.f32.mrf.mxu0 }
 0x181   :  { %v2725_v47 = vadd.f32 %v2724_v44, %v2470_v43  ;;  %v2471_v48 = vmax.f32 %v1714_v46, 0.0 }
 0x182   :  { %v6432_v49 = vpop.f32.mrf.mxu0  ;;  %6527 = vmatmul.mubr.msk.bf16.gmra.mxu0 %vm940_vm0, %v6694_v42 }
 0x183   :  { %v2726_v51 = vadd.f32 %v2725_v47, %v2471_v48  ;;  %6530 = vmatprep.mubr.msk.bf16.mxu0 %vm940_vm0, %v6695_v45  ;;  %v2476_v0 = vmax.f32 %v6432_v49, 0.0  ;;  %v6704_v48 = vld [vmem:[%s8362_s0 + $0x348] sm:$0xff]  }
 0x184   :  { %v1727_v52 = vpop.f32.mrf.mxu0 }
 0x185   :  { %v2727_v54 = vadd.f32 %v2726_v51, %v2472_v50  ;;  %v2474_v57 = vmax.f32 %v1727_v52, 0.0  ;;  %v6705_v51 = vld [vmem:[%s8362_s0 + $0x350] sm:$0xff]  }
 0x186   :  { %v6433_v55 = vpop.f32.mrf.mxu0 }
 0x187   :  { %v2728_v58 = vadd.f32 %v2727_v54, %v2473_v53  ;;  %v2477_v3 = vmax.f32 %v6433_v55, 0.0 }
 0x188   :  { %v1730_v60 = vpop.f32.mrf.mxu0 }
 0x189   :  { %v2729_v61 = vadd.f32 %v2728_v58, %v2474_v57  ;;  %v2475_v62 = vmax.f32 %v1730_v60, 0.0 }
 0x18a   :  { %v6436_v63 = vpop.f32.mrf.mxu0  ;;  %6531 = vmatmul.mubr.msk.bf16.gmra.mxu0 %vm940_vm0, %v6696_v56 }
 0x18b   :  { %v2730_v1 = vadd.f32 %v2729_v61, %v2475_v62  ;;  %6534 = vmatprep.mubr.msk.bf16.mxu0 %vm940_vm0, %v6697_v59  ;;  %v2480_v14 = vmax.f32 %v6436_v63, 0.0  ;;  %v6706_v62 = vld [vmem:[%s8362_s0 + $0x358] sm:$0xff]  }
 0x18c   :  { %v1743_v2 = vpop.f32.mrf.mxu0 }
 0x18d   :  { %v2731_v4 = vadd.f32 %v2730_v1, %v2476_v0  ;;  %v2478_v7 = vmax.f32 %v1743_v2, 0.0  ;;  %v6707_v1 = vld [vmem:[%s8362_s0 + $0x360] sm:$0xff]  }
 0x18e   :  { %v6437_v5 = vpop.f32.mrf.mxu0 }
 0x18f   :  { %v2732_v8 = vadd.f32 %v2731_v4, %v2477_v3  ;;  %v2481_v17 = vmax.f32 %v6437_v5, 0.0 }
 0x190   :  { %v1746_v10 = vpop.f32.mrf.mxu0 }
 0x191   :  { %v2733_v11 = vadd.f32 %v2732_v8, %v2478_v7  ;;  %v2479_v12 = vmax.f32 %v1746_v10, 0.0 }
 0x192   :  { %v6440_v13 = vpop.f32.mrf.mxu0  ;;  %6535 = vmatmul.mubr.msk.bf16.gmra.mxu0 %vm940_vm0, %v6698_v6 }
 0x193   :  { %v2734_v15 = vadd.f32 %v2733_v11, %v2479_v12  ;;  %6538 = vmatprep.mubr.msk.bf16.mxu0 %vm940_vm0, %v6699_v9  ;;  %v2484_v28 = vmax.f32 %v6440_v13, 0.0  ;;  %v6708_v12 = vld [vmem:[%s8362_s0 + $0x368] sm:$0xff]  }
 0x194   :  { %v1759_v16 = vpop.f32.mrf.mxu0 }
 0x195   :  { %v2735_v18 = vadd.f32 %v2734_v15, %v2480_v14  ;;  %v2482_v21 = vmax.f32 %v1759_v16, 0.0  ;;  %v6709_v15 = vld [vmem:[%s8362_s0 + $0x370] sm:$0xff]  }
 0x196   :  { %v6441_v19 = vpop.f32.mrf.mxu0 }
 0x197   :  { %v2736_v22 = vadd.f32 %v2735_v18, %v2481_v17  ;;  %v2485_v31 = vmax.f32 %v6441_v19, 0.0 }
 0x198   :  { %v1762_v24 = vpop.f32.mrf.mxu0 }
 0x199   :  { %v2737_v25 = vadd.f32 %v2736_v22, %v2482_v21  ;;  %v2483_v26 = vmax.f32 %v1762_v24, 0.0 }
 0x19a   :  { %v6444_v27 = vpop.f32.mrf.mxu0  ;;  %6539 = vmatmul.mubr.msk.bf16.gmra.mxu0 %vm940_vm0, %v6700_v20 }
 0x19b   :  { %v2738_v29 = vadd.f32 %v2737_v25, %v2483_v26  ;;  %6542 = vmatprep.mubr.msk.bf16.mxu0 %vm940_vm0, %v6701_v23  ;;  %v2488_v42 = vmax.f32 %v6444_v27, 0.0  ;;  %v6710_v26 = vld [vmem:[%s8362_s0 + $0x378] sm:$0xff]  }
 0x19c   :  { %v1775_v30 = vpop.f32.mrf.mxu0 }
 0x19d   :  { %v2739_v32 = vadd.f32 %v2738_v29, %v2484_v28  ;;  %v2486_v35 = vmax.f32 %v1775_v30, 0.0  ;;  %v6711_v29 = vld [vmem:[%s8362_s0 + $0x380] sm:$0xff]  }
 0x19e   :  { %v6445_v33 = vpop.f32.mrf.mxu0 }
 0x19f   :  { %v2740_v36 = vadd.f32 %v2739_v32, %v2485_v31  ;;  %v2489_v45 = vmax.f32 %v6445_v33, 0.0 }
 0x1a0   :  { %v1778_v38 = vpop.f32.mrf.mxu0 }
 0x1a1   :  { %v2741_v39 = vadd.f32 %v2740_v36, %v2486_v35  ;;  %v2487_v40 = vmax.f32 %v1778_v38, 0.0 }
 0x1a2   :  { %v6448_v41 = vpop.f32.mrf.mxu0  ;;  %6543 = vmatmul.mubr.msk.bf16.gmra.mxu0 %vm940_vm0, %v6702_v34 }
 0x1a3   :  { %v2742_v43 = vadd.f32 %v2741_v39, %v2487_v40  ;;  %6546 = vmatprep.mubr.msk.bf16.mxu0 %vm940_vm0, %v6703_v37  ;;  %v2492_v56 = vmax.f32 %v6448_v41, 0.0  ;;  %v6712_v40 = vld [vmem:[%s8362_s0 + $0x388] sm:$0xff]  }
 0x1a4   :  { %v1791_v44 = vpop.f32.mrf.mxu0 }
 0x1a5   :  { %v2743_v46 = vadd.f32 %v2742_v43, %v2488_v42  ;;  %v2490_v49 = vmax.f32 %v1791_v44, 0.0  ;;  %v6713_v43 = vld [vmem:[%s8362_s0 + $0x390] sm:$0xff]  }
 0x1a6   :  { %v6449_v47 = vpop.f32.mrf.mxu0 }
 0x1a7   :  { %v2744_v50 = vadd.f32 %v2743_v46, %v2489_v45  ;;  %v2493_v59 = vmax.f32 %v6449_v47, 0.0 }
 0x1a8   :  { %v1794_v52 = vpop.f32.mrf.mxu0 }
 0x1a9   :  { %v2745_v53 = vadd.f32 %v2744_v50, %v2490_v49  ;;  %v2491_v54 = vmax.f32 %v1794_v52, 0.0 }
 0x1aa   :  { %v6452_v55 = vpop.f32.mrf.mxu0  ;;  %6547 = vmatmul.mubr.msk.bf16.gmra.mxu0 %vm940_vm0, %v6704_v48 }
 0x1ab   :  { %v2746_v57 = vadd.f32 %v2745_v53, %v2491_v54  ;;  %6550 = vmatprep.mubr.msk.bf16.mxu0 %vm940_vm0, %v6705_v51  ;;  %v2496_v6 = vmax.f32 %v6452_v55, 0.0  ;;  %v6714_v54 = vld [vmem:[%s8362_s0 + $0x398] sm:$0xff]  }
 0x1ac   :  { %v1807_v58 = vpop.f32.mrf.mxu0 }
 0x1ad   :  { %v2747_v60 = vadd.f32 %v2746_v57, %v2492_v56  ;;  %v2494_v63 = vmax.f32 %v1807_v58, 0.0  ;;  %v6715_v56 = vld [vmem:[%s8362_s0 + $0x3a0] sm:$0xff]  }
 0x1ae   :  { %v6453_v61 = vpop.f32.mrf.mxu0 }
 0x1af   :  { %v2748_v0 = vadd.f32 %v2747_v60, %v2493_v59  ;;  %v2497_v9 = vmax.f32 %v6453_v61, 0.0 }
 0x1b0   :  { %v1810_v2 = vpop.f32.mrf.mxu0 }
 0x1b1   :  { %v2749_v3 = vadd.f32 %v2748_v0, %v2494_v63  ;;  %v2495_v4 = vmax.f32 %v1810_v2, 0.0 }
 0x1b2   :  { %v6456_v5 = vpop.f32.mrf.mxu0  ;;  %6551 = vmatmul.mubr.msk.bf16.gmra.mxu0 %vm940_vm0, %v6706_v62 }
 0x1b3   :  { %v2750_v7 = vadd.f32 %v2749_v3, %v2495_v4  ;;  %6554 = vmatprep.mubr.msk.bf16.mxu0 %vm940_vm0, %v6707_v1  ;;  %v2500_v20 = vmax.f32 %v6456_v5, 0.0  ;;  %v6716_v3 = vld [vmem:[%s8362_s0 + $0x3a8] sm:$0xff]  }
 0x1b4   :  { %v1823_v8 = vpop.f32.mrf.mxu0 }
 0x1b5   :  { %v2751_v10 = vadd.f32 %v2750_v7, %v2496_v6  ;;  %v2498_v13 = vmax.f32 %v1823_v8, 0.0  ;;  %v6717_v6 = vld [vmem:[%s8362_s0 + $0x3b0] sm:$0xff]  }
 0x1b6   :  { %v6457_v11 = vpop.f32.mrf.mxu0 }
 0x1b7   :  { %v2752_v14 = vadd.f32 %v2751_v10, %v2497_v9  ;;  %v2501_v23 = vmax.f32 %v6457_v11, 0.0 }
 0x1b8   :  { %v1826_v16 = vpop.f32.mrf.mxu0 }
 0x1b9   :  { %v2753_v17 = vadd.f32 %v2752_v14, %v2498_v13  ;;  %v2499_v18 = vmax.f32 %v1826_v16, 0.0 }
 0x1ba   :  { %v6460_v19 = vpop.f32.mrf.mxu0  ;;  %6555 = vmatmul.mubr.msk.bf16.gmra.mxu0 %vm940_vm0, %v6708_v12 }
 0x1bb   :  { %v2754_v21 = vadd.f32 %v2753_v17, %v2499_v18  ;;  %6558 = vmatprep.mubr.msk.bf16.mxu0 %vm940_vm0, %v6709_v15  ;;  %v2504_v34 = vmax.f32 %v6460_v19, 0.0  ;;  %v6718_v17 = vld [vmem:[%s8362_s0 + $0x3b8] sm:$0xff]  }
 0x1bc   :  { %v1839_v22 = vpop.f32.mrf.mxu0 }
 0x1bd   :  { %v2755_v24 = vadd.f32 %v2754_v21, %v2500_v20  ;;  %v2502_v27 = vmax.f32 %v1839_v22, 0.0  ;;  %v6719_v20 = vld [vmem:[%s8362_s0 + $0x3c0] sm:$0xff]  }
 0x1be   :  { %v6461_v25 = vpop.f32.mrf.mxu0 }
 0x1bf   :  { %v2756_v28 = vadd.f32 %v2755_v24, %v2501_v23  ;;  %v2505_v37 = vmax.f32 %v6461_v25, 0.0 }
 0x1c0   :  { %v1842_v30 = vpop.f32.mrf.mxu0 }
 0x1c1   :  { %v2757_v31 = vadd.f32 %v2756_v28, %v2502_v27  ;;  %v2503_v32 = vmax.f32 %v1842_v30, 0.0 }
 0x1c2   :  { %v6464_v33 = vpop.f32.mrf.mxu0  ;;  %6559 = vmatmul.mubr.msk.bf16.gmra.mxu0 %vm940_vm0, %v6710_v26 }
 0x1c3   :  { %v2758_v35 = vadd.f32 %v2757_v31, %v2503_v32  ;;  %6562 = vmatprep.mubr.msk.bf16.mxu0 %vm940_vm0, %v6711_v29  ;;  %v2508_v48 = vmax.f32 %v6464_v33, 0.0  ;;  %v6720_v31 = vld [vmem:[%s8362_s0 + $0x3c8] sm:$0xff]  }
 0x1c4   :  { %v1855_v36 = vpop.f32.mrf.mxu0 }
 0x1c5   :  { %v2759_v38 = vadd.f32 %v2758_v35, %v2504_v34  ;;  %v2506_v41 = vmax.f32 %v1855_v36, 0.0  ;;  %v6721_v34 = vld [vmem:[%s8362_s0 + $0x3d0] sm:$0xff]  }
 0x1c6   :  { %v6465_v39 = vpop.f32.mrf.mxu0 }
 0x1c7   :  { %v2760_v42 = vadd.f32 %v2759_v38, %v2505_v37  ;;  %v2509_v51 = vmax.f32 %v6465_v39, 0.0 }
 0x1c8   :  { %v1858_v44 = vpop.f32.mrf.mxu0 }
 0x1c9   :  { %v2761_v45 = vadd.f32 %v2760_v42, %v2506_v41  ;;  %v2507_v46 = vmax.f32 %v1858_v44, 0.0 }
 0x1ca   :  { %v6468_v47 = vpop.f32.mrf.mxu0  ;;  %6563 = vmatmul.mubr.msk.bf16.gmra.mxu0 %vm940_vm0, %v6712_v40 }
 0x1cb   :  { %v2762_v49 = vadd.f32 %v2761_v45, %v2507_v46  ;;  %6566 = vmatprep.mubr.msk.bf16.mxu0 %vm940_vm0, %v6713_v43  ;;  %v2512_v61 = vmax.f32 %v6468_v47, 0.0  ;;  %v6722_v45 = vld [vmem:[%s8362_s0 + $0x3d8] sm:$0xff]  }
 0x1cc   :  { %v1871_v50 = vpop.f32.mrf.mxu0 }
 0x1cd   :  { %v2763_v52 = vadd.f32 %v2762_v49, %v2508_v48  ;;  %v2510_v58 = vmax.f32 %v1871_v50, 0.0  ;;  %v6723_v48 = vld [vmem:[%s8362_s0 + $0x3e0] sm:$0xff]  }
 0x1ce   :  { %v6469_v53 = vpop.f32.mrf.mxu0 }
 0x1cf   :  { %v7411_v55 = vadd.f32 %v2763_v52, %v2509_v51  ;;  %v2513_v0 = vmax.f32 %v6469_v53, 0.0 }
 0x1d0   :  { %v1874_v57 = vpop.f32.mrf.mxu0 }
 0x1d1   :  { %v2511_v59 = vmax.f32 %v1874_v57, 0.0 }
 0x1d2   :  { %v6472_v60 = vpop.f32.mrf.mxu0  ;;  %6567 = vmatmul.mubr.msk.bf16.gmra.mxu0 %vm940_vm0, %v6714_v54 }
 0x1d3   :  { %v2771_v62 = vadd.f32 %v2511_v59, %v2510_v58  ;;  %6570 = vmatprep.mubr.msk.bf16.mxu0 %vm940_vm0, %v6715_v56  ;;  %v2516_v11 = vmax.f32 %v6472_v60, 0.0  ;;  %v6724_v60 = vld [vmem:[%s8362_s0 + $0x3e8] sm:$0xff]  }
 0x1d4   :  { %v1887_v63 = vpop.f32.mrf.mxu0 }
 0x1d5   :  { %v2772_v1 = vadd.f32 %v2771_v62, %v2512_v61  ;;  %v2514_v5 = vmax.f32 %v1887_v63, 0.0  ;;  %v6725_v63 = vld [vmem:[%s8362_s0 + $0x3f0] sm:$0xff]  }
 0x1d6   :  { %v6473_v2 = vpop.f32.mrf.mxu0 }
 0x1d7   :  { %v2773_v4 = vadd.f32 %v2772_v1, %v2513_v0  ;;  %v2517_v14 = vmax.f32 %v6473_v2, 0.0 }
 0x1d8   :  { %v1890_v7 = vpop.f32.mrf.mxu0 }
 0x1d9   :  { %v2774_v8 = vadd.f32 %v2773_v4, %v2514_v5  ;;  %v2515_v9 = vmax.f32 %v1890_v7, 0.0 }
 0x1da   :  { %v6476_v10 = vpop.f32.mrf.mxu0  ;;  %6571 = vmatmul.mubr.msk.bf16.gmra.mxu0 %vm940_vm0, %v6716_v3 }
 0x1db   :  { %v2775_v12 = vadd.f32 %v2774_v8, %v2515_v9  ;;  %6574 = vmatprep.mubr.msk.bf16.mxu0 %vm940_vm0, %v6717_v6  ;;  %v2520_v25 = vmax.f32 %v6476_v10, 0.0  ;;  %v6726_v10 = vld [vmem:[%s8362_s0 + $0x3f8] sm:$0xff]  }
 0x1dc   :  { %v1903_v13 = vpop.f32.mrf.mxu0 }
 0x1dd   :  { %v2776_v15 = vadd.f32 %v2775_v12, %v2516_v11  ;;  %v2518_v19 = vmax.f32 %v1903_v13, 0.0 }
 0x1de   :  { %v6477_v16 = vpop.f32.mrf.mxu0 }
 0x1df   :  { %v2777_v18 = vadd.f32 %v2776_v15, %v2517_v14  ;;  %v2521_v28 = vmax.f32 %v6477_v16, 0.0 }
 0x1e0   :  { %v1906_v21 = vpop.f32.mrf.mxu0 }
 0x1e1   :  { %v2778_v22 = vadd.f32 %v2777_v18, %v2518_v19  ;;  %v2519_v23 = vmax.f32 %v1906_v21, 0.0 }
 0x1e2   :  { %v6480_v24 = vpop.f32.mrf.mxu0  ;;  %6575 = vmatmul.mubr.msk.bf16.gmra.mxu0 %vm940_vm0, %v6718_v17 }
 0x1e3   :  { %v2779_v26 = vadd.f32 %v2778_v22, %v2519_v23  ;;  %6578 = vmatprep.mubr.msk.bf16.mxu0 %vm940_vm0, %v6719_v20  ;;  %v2524_v39 = vmax.f32 %v6480_v24, 0.0 }
 0x1e4   :  { %v1919_v27 = vpop.f32.mrf.mxu0 }
 0x1e5   :  { %v2780_v29 = vadd.f32 %v2779_v26, %v2520_v25  ;;  %v2522_v33 = vmax.f32 %v1919_v27, 0.0 }
 0x1e6   :  { %v6481_v30 = vpop.f32.mrf.mxu0 }
 0x1e7   :  { %v2781_v32 = vadd.f32 %v2780_v29, %v2521_v28  ;;  %v2525_v42 = vmax.f32 %v6481_v30, 0.0 }
 0x1e8   :  { %v1922_v35 = vpop.f32.mrf.mxu0 }
 0x1e9   :  { %v2782_v36 = vadd.f32 %v2781_v32, %v2522_v33  ;;  %v2523_v37 = vmax.f32 %v1922_v35, 0.0 }
 0x1ea   :  { %v6484_v38 = vpop.f32.mrf.mxu0  ;;  %6579 = vmatmul.mubr.msk.bf16.gmra.mxu0 %vm940_vm0, %v6720_v31 }
 0x1eb   :  { %v2783_v40 = vadd.f32 %v2782_v36, %v2523_v37  ;;  %6582 = vmatprep.mubr.msk.bf16.mxu0 %vm940_vm0, %v6721_v34  ;;  %v2528_v53 = vmax.f32 %v6484_v38, 0.0 }
 0x1ec   :  { %v1935_v41 = vpop.f32.mrf.mxu0 }
 0x1ed   :  { %v2784_v43 = vadd.f32 %v2783_v40, %v2524_v39  ;;  %v2526_v47 = vmax.f32 %v1935_v41, 0.0 }
 0x1ee   :  { %v6485_v44 = vpop.f32.mrf.mxu0 }
 0x1ef   :  { %v2785_v46 = vadd.f32 %v2784_v43, %v2525_v42  ;;  %v2529_v57 = vmax.f32 %v6485_v44, 0.0 }
 0x1f0   :  { %v1938_v49 = vpop.f32.mrf.mxu0 }
 0x1f1   :  { %v2786_v50 = vadd.f32 %v2785_v46, %v2526_v47  ;;  %v2527_v51 = vmax.f32 %v1938_v49, 0.0 }
 0x1f2   :  { %v6488_v52 = vpop.f32.mrf.mxu0  ;;  %6583 = vmatmul.mubr.msk.bf16.gmra.mxu0 %vm940_vm0, %v6722_v45 }
 0x1f3   :  { %v2787_v54 = vadd.f32 %v2786_v50, %v2527_v51  ;;  %6586 = vmatprep.mubr.msk.bf16.mxu0 %vm940_vm0, %v6723_v48  ;;  %v2532_v4 = vmax.f32 %v6488_v52, 0.0 }
 0x1f4   :  { %v1951_v56 = vpop.f32.mrf.mxu0 }
 0x1f5   :  { %v2788_v58 = vadd.f32 %v2787_v54, %v2528_v53  ;;  %v2530_v62 = vmax.f32 %v1951_v56, 0.0 }
 0x1f6   :  { %v6489_v59 = vpop.f32.mrf.mxu0 }
 0x1f7   :  { %v2789_v61 = vadd.f32 %v2788_v58, %v2529_v57  ;;  %v2533_v7 = vmax.f32 %v6489_v59, 0.0 }
 0x1f8   :  { %v1954_v0 = vpop.f32.mrf.mxu0 }
 0x1f9   :  { %v2790_v1 = vadd.f32 %v2789_v61, %v2530_v62  ;;  %v2531_v2 = vmax.f32 %v1954_v0, 0.0 }
 0x1fa   :  { %v6492_v3 = vpop.f32.mrf.mxu0  ;;  %6587 = vmatmul.mubr.msk.bf16.gmra.mxu0 %vm940_vm0, %v6724_v60 }
 0x1fb   :  { %v2791_v5 = vadd.f32 %v2790_v1, %v2531_v2  ;;  %6590 = vmatprep.mubr.msk.bf16.mxu0 %vm940_vm0, %v6725_v63  ;;  %v2536_v17 = vmax.f32 %v6492_v3, 0.0 }
 0x1fc   :  { %v1967_v6 = vpop.f32.mrf.mxu0 }
 0x1fd   :  { %v2792_v8 = vadd.f32 %v2791_v5, %v2532_v4  ;;  %v2534_v12 = vmax.f32 %v1967_v6, 0.0 }
 0x1fe   :  { %v6493_v9 = vpop.f32.mrf.mxu0 }
 0x1ff   :  { %v2793_v11 = vadd.f32 %v2792_v8, %v2533_v7  ;;  %v2537_v20 = vmax.f32 %v6493_v9, 0.0 }
 0x200   :  { %v1970_v13 = vpop.f32.mrf.mxu0 }
 0x201   :  { %v2794_v14 = vadd.f32 %v2793_v11, %v2534_v12  ;;  %v2535_v15 = vmax.f32 %v1970_v13, 0.0 }
 0x202   :  { %v6496_v16 = vpop.f32.mrf.mxu0  ;;  %6591 = vmatmul.mubr.msk.bf16.gmra.mxu0 %vm940_vm0, %v6726_v10 }
 0x203   :  { %v2795_v18 = vadd.f32 %v2794_v14, %v2535_v15  ;;  %v2540_v29 = vmax.f32 %v6496_v16, 0.0 }
 0x204   :  { %v1983_v19 = vpop.f32.mrf.mxu0 }
 0x205   :  { %v2796_v21 = vadd.f32 %v2795_v18, %v2536_v17  ;;  %v2538_v24 = vmax.f32 %v1983_v19, 0.0 }
 0x206   :  { %v6497_v22 = vpop.f32.mrf.mxu0 }
 0x207   :  { %v2797_v23 = vadd.f32 %v2796_v21, %v2537_v20  ;;  %v2541_v32 = vmax.f32 %v6497_v22, 0.0 }
 0x208   :  { %v1986_v25 = vpop.f32.mrf.mxu0 }
 0x209   :  { %v2798_v26 = vadd.f32 %v2797_v23, %v2538_v24  ;;  %v2539_v27 = vmax.f32 %v1986_v25, 0.0 }
 0x20a   :  { %v6500_v28 = vpop.f32.mrf.mxu0 }
 0x20b   :  { %v2799_v30 = vadd.f32 %v2798_v26, %v2539_v27  ;;  %v2544_v41 = vmax.f32 %v6500_v28, 0.0 }
 0x20c   :  { %v1999_v31 = vpop.f32.mrf.mxu0 }
 0x20d   :  { %v2800_v33 = vadd.f32 %v2799_v30, %v2540_v29  ;;  %v2542_v36 = vmax.f32 %v1999_v31, 0.0 }
 0x20e   :  { %v6501_v34 = vpop.f32.mrf.mxu0 }
 0x20f   :  { %v2801_v35 = vadd.f32 %v2800_v33, %v2541_v32  ;;  %v2545_v44 = vmax.f32 %v6501_v34, 0.0 }
 0x210   :  { %v2002_v37 = vpop.f32.mrf.mxu0 }
 0x211   :  { %v2802_v38 = vadd.f32 %v2801_v35, %v2542_v36  ;;  %v2543_v39 = vmax.f32 %v2002_v37, 0.0 }
 0x212   :  { %v6504_v40 = vpop.f32.mrf.mxu0 }
 0x213   :  { %v2803_v42 = vadd.f32 %v2802_v38, %v2543_v39  ;;  %v2548_v53 = vmax.f32 %v6504_v40, 0.0 }
 0x214   :  { %v2015_v43 = vpop.f32.mrf.mxu0 }
 0x215   :  { %v2804_v45 = vadd.f32 %v2803_v42, %v2544_v41  ;;  %v2546_v48 = vmax.f32 %v2015_v43, 0.0 }
 0x216   :  { %v6505_v46 = vpop.f32.mrf.mxu0 }
 0x217   :  { %v2805_v47 = vadd.f32 %v2804_v45, %v2545_v44  ;;  %v2549_v57 = vmax.f32 %v6505_v46, 0.0 }
 0x218   :  { %v2018_v49 = vpop.f32.mrf.mxu0 }
 0x219   :  { %v2806_v50 = vadd.f32 %v2805_v47, %v2546_v48  ;;  %v2547_v51 = vmax.f32 %v2018_v49, 0.0 }
 0x21a   :  { %v6508_v52 = vpop.f32.mrf.mxu0 }
 0x21b   :  { %v2807_v54 = vadd.f32 %v2806_v50, %v2547_v51  ;;  %v2552_v2 = vmax.f32 %v6508_v52, 0.0  ;;  %v3026_v50 = vld [vmem:[%s8364_s2 + $0x380] sm:$0xff] }
 0x21c   :  { %v2031_v56 = vpop.f32.mrf.mxu0  ;;  %v3034_v51 = vld [vmem:[%s8364_s2 + $0x3c0] sm:$0xff] }
 0x21d   :  { %v2808_v58 = vadd.f32 %v2807_v54, %v2548_v53  ;;  %v2550_v61 = vmax.f32 %v2031_v56, 0.0  ;;  %v5884_v54 = vcombine.high %v3026_v50, %v3034_v51 }
 0x21e   :  { %v6509_v59 = vpop.f32.mrf.mxu0 }
 0x21f   :  { %v2809_v60 = vadd.f32 %v2808_v58, %v2549_v57  ;;  %v2553_v5 = vmax.f32 %v6509_v59, 0.0  ;;  %v5883_v57 = vcombine.low %v3026_v50, %v3034_v51  ;;  %3773 = vmatprep.subr.bf16.mxu1 %v5884_v54 }
 0x220   :  { %v2034_v62 = vpop.f32.mrf.mxu0 }
 0x221   :  { %v2810_v63 = vadd.f32 %v2809_v60, %v2550_v61  ;;  %v2551_v0 = vmax.f32 %v2034_v62, 0.0  ;;  %3774 = vmatpush1.bf16.msra.mxu1 %v5883_v57  ;;  %v3010_v61 = vld [vmem:[%s8364_s2 + $0x300] sm:$0xff] }
 0x222   :  { %v6512_v1 = vpop.f32.mrf.mxu0  ;;  %v3018_v62 = vld [vmem:[%s8364_s2 + $0x340] sm:$0xff] }
 0x223   :  { %v2811_v3 = vadd.f32 %v2810_v63, %v2551_v0  ;;  %v2556_v14 = vmax.f32 %v6512_v1, 0.0  ;;  %v5868_v1 = vcombine.high %v3010_v61, %v3018_v62 }
 0x224   :  { %v2047_v4 = vpop.f32.mrf.mxu0 }
 0x225   :  { %v2812_v6 = vadd.f32 %v2811_v3, %v2552_v2  ;;  %v2554_v9 = vmax.f32 %v2047_v4, 0.0  ;;  %v5867_v3 = vcombine.low %v3010_v61, %v3018_v62  ;;  %3775 = vmatprep.subr.bf16.mxu1 %v5868_v1 }
 0x226   :  { %v6513_v7 = vpop.f32.mrf.mxu0 }
 0x227   :  { %v2813_v8 = vadd.f32 %v2812_v6, %v2553_v5  ;;  %v2557_v17 = vmax.f32 %v6513_v7, 0.0  ;;  %3776 = vmatpush1.bf16.msra.mxu1 %v5867_v3  ;;  %v2994_v7 = vld [vmem:[%s8364_s2 + $0x280] sm:$0xff] }
 0x228   :  { %v2050_v10 = vpop.f32.mrf.mxu0 }
 0x229   :  { %v2814_v11 = vadd.f32 %v2813_v8, %v2554_v9  ;;  %v2555_v12 = vmax.f32 %v2050_v10, 0.0  ;;  %v3002_v8 = vld [vmem:[%s8364_s2 + $0x2c0] sm:$0xff] }
 0x22a   :  { %v6516_v13 = vpop.f32.mrf.mxu0 }
 0x22b   :  { %v2815_v15 = vadd.f32 %v2814_v11, %v2555_v12  ;;  %v2560_v26 = vmax.f32 %v6516_v13, 0.0  ;;  %v5852_v11 = vcombine.high %v2994_v7, %v3002_v8  ;;  %v5851_v13 = vcombine.low %v2994_v7, %v3002_v8 }
 0x22c   :  { %v2063_v16 = vpop.f32.mrf.mxu0 }
 0x22d   :  { %v2816_v18 = vadd.f32 %v2815_v15, %v2556_v14  ;;  %v2558_v21 = vmax.f32 %v2063_v16, 0.0  ;;  %3777 = vmatprep.subr.bf16.mxu1 %v5852_v11 }
 0x22e   :  { %v6517_v19 = vpop.f32.mrf.mxu0  ;;  %3778 = vmatpush1.bf16.msra.mxu1 %v5851_v13  ;;  %v6899_v13 = vmov 0  }
 0x22f   :  { %v2817_v20 = vadd.f32 %v2816_v18, %v2557_v17  ;;  %v2561_v29 = vmax.f32 %v6517_v19, 0.0  ;;  %v2978_v17 = vld [vmem:[%s8364_s2 + $0x200] sm:$0xff]  ;;  %3805 = vmatprep.mubr.bf16.mxu1 %v6899_v13 }
 0x230   :  { %v2066_v22 = vpop.f32.mrf.mxu0  ;;  %v2986_v18 = vld [vmem:[%s8364_s2 + $0x240] sm:$0xff] }
 0x231   :  { %v2818_v23 = vadd.f32 %v2817_v20, %v2558_v21  ;;  %v2559_v24 = vmax.f32 %v2066_v22, 0.0  ;;  %v5836_v21 = vcombine.high %v2978_v17, %v2986_v18 }
 0x232   :  { %v6520_v25 = vpop.f32.mrf.mxu0 }
 0x233   :  { %v2819_v27 = vadd.f32 %v2818_v23, %v2559_v24  ;;  %v2564_v38 = vmax.f32 %v6520_v25, 0.0  ;;  %v5835_v23 = vcombine.low %v2978_v17, %v2986_v18  ;;  %3779 = vmatprep.subr.bf16.mxu1 %v5836_v21 }
 0x234   :  { %v2079_v28 = vpop.f32.mrf.mxu0 }
 0x235   :  { %v2820_v30 = vadd.f32 %v2819_v27, %v2560_v26  ;;  %v2562_v33 = vmax.f32 %v2079_v28, 0.0  ;;  %3780 = vmatpush1.bf16.msra.mxu1 %v5835_v23  ;;  %v2962_v27 = vld [vmem:[%s8364_s2 + $0x180] sm:$0xff] }
 0x236   :  { %v6521_v31 = vpop.f32.mrf.mxu0  ;;  %v2970_v28 = vld [vmem:[%s8364_s2 + $0x1c0] sm:$0xff] }
 0x237   :  { %v2821_v32 = vadd.f32 %v2820_v30, %v2561_v29  ;;  %v2565_v41 = vmax.f32 %v6521_v31, 0.0  ;;  %v5820_v31 = vcombine.high %v2962_v27, %v2970_v28 }
 0x238   :  { %v2082_v34 = vpop.f32.mrf.mxu0 }
 0x239   :  { %v2822_v35 = vadd.f32 %v2821_v32, %v2562_v33  ;;  %v2563_v36 = vmax.f32 %v2082_v34, 0.0  ;;  %v5819_v33 = vcombine.low %v2962_v27, %v2970_v28  ;;  %3781 = vmatprep.subr.bf16.mxu1 %v5820_v31 }
 0x23a   :  { %v6524_v37 = vpop.f32.mrf.mxu0 }
 0x23b   :  { %v2823_v39 = vadd.f32 %v2822_v35, %v2563_v36  ;;  %v2568_v52 = vmax.f32 %v6524_v37, 0.0  ;;  %3782 = vmatpush1.bf16.msra.mxu1 %v5819_v33  ;;  %v2946_v37 = vld [vmem:[%s8364_s2 + $0x100] sm:$0xff] }
 0x23c   :  { %v2095_v40 = vpop.f32.mrf.mxu0 }
 0x23d   :  { %v2824_v42 = vadd.f32 %v2823_v39, %v2564_v38  ;;  %v2566_v45 = vmax.f32 %v2095_v40, 0.0  ;;  %v2954_v38 = vld [vmem:[%s8364_s2 + $0x140] sm:$0xff] }
 0x23e   :  { %v6525_v43 = vpop.f32.mrf.mxu0 }
 0x23f   :  { %v2825_v44 = vadd.f32 %v2824_v42, %v2565_v41  ;;  %v2569_v58 = vmax.f32 %v6525_v43, 0.0  ;;  %v5804_v41 = vcombine.high %v2946_v37, %v2954_v38  ;;  %v5803_v43 = vcombine.low %v2946_v37, %v2954_v38 }
 0x240   :  { %v2098_v46 = vpop.f32.mrf.mxu0 }
 0x241   :  { %v2826_v47 = vadd.f32 %v2825_v44, %v2566_v45  ;;  %v2567_v48 = vmax.f32 %v2098_v46, 0.0  ;;  %3783 = vmatprep.subr.bf16.mxu1 %v5804_v41 }
 0x242   :  { %v6528_v49 = vpop.f32.mrf.mxu0  ;;  %3784 = vmatpush1.bf16.msra.mxu1 %v5803_v43 }
 0x243   :  { %v2827_v53 = vadd.f32 %v2826_v47, %v2567_v48  ;;  %v2572_v9 = vmax.f32 %v6528_v49, 0.0  ;;  %v2930_v47 = vld [vmem:[%s8364_s2 + $0x80] sm:$0xff] }
 0x244   :  { %v2111_v56 = vpop.f32.mrf.mxu0  ;;  %v2938_v48 = vld [vmem:[%s8364_s2 + $0xc0] sm:$0xff] }
 0x245   :  { %v2828_v59 = vadd.f32 %v2827_v53, %v2568_v52  ;;  %v2570_v0 = vmax.f32 %v2111_v56, 0.0  ;;  %v5788_v51 = vcombine.high %v2930_v47, %v2938_v48  ;;  %v5787_v53 = vcombine.low %v2930_v47, %v2938_v48 }
 0x246   :  { %v6529_v60 = vpop.f32.mrf.mxu0 }
 0x247   :  { %v2829_v63 = vadd.f32 %v2828_v59, %v2569_v58  ;;  %v2573_v14 = vmax.f32 %v6529_v60, 0.0  ;;  %3785 = vmatprep.subr.bf16.mxu1 %v5788_v51  ;;  %v2914_v58 = vld [vmem:[%s8364_s2] sm:$0xff] }
 0x248   :  { %v2114_v2 = vpop.f32.mrf.mxu0  ;;  %3786 = vmatpush1.bf16.msra.mxu1 %v5787_v53  ;;  %v2922_v59 = vld [vmem:[%s8364_s2 + $0x40] sm:$0xff] }
 0x249   :  { %v2830_v4 = vadd.f32 %v2829_v63, %v2570_v0  ;;  %v2571_v5 = vmax.f32 %v2114_v2, 0.0  ;;  %v5772_v62 = vcombine.high %v2914_v58, %v2922_v59  ;;  %v5771_v0 = vcombine.low %v2914_v58, %v2922_v59 }
 0x24a   :  { %v6532_v6 = vpop.f32.mrf.mxu0 }
 0x24b   :  { %v2831_v10 = vadd.f32 %v2830_v4, %v2571_v5  ;;  %v2576_v29 = vmax.f32 %v6532_v6, 0.0  ;;  %3787 = vmatprep.subr.bf16.mxu1 %v5772_v62  ;;  %v7513_v4 = vld [vmem:[%s8364_s2 + $0x388] sm:$0xff] }
 0x24c   :  { %v2127_v12 = vpop.f32.mrf.mxu0  ;;  %3788 = vmatpush1.bf16.msra.mxu1 %v5771_v0  ;;  %v7518_v5 = vld [vmem:[%s8364_s2 + $0x3c8] sm:$0xff] }
 0x24d   :  { %v2832_v15 = vadd.f32 %v2831_v10, %v2572_v9  ;;  %v2574_v20 = vmax.f32 %v2127_v12, 0.0  ;;  %v5886_v8 = vcombine.high %v7513_v4, %v7518_v5  ;;  %v5885_v10 = vcombine.low %v7513_v4, %v7518_v5  ;;  %v2963_v4 = vld [vmem:[%s8364_s2 + $0x188] sm:$0xff] }
 0x24e   :  { %v6533_v16 = vpop.f32.mrf.mxu0  ;;  %v2971_v5 = vld [vmem:[%s8364_s2 + $0x1c8] sm:$0xff] }
 0x24f   :  { %v2833_v19 = vadd.f32 %v2832_v15, %v2573_v14  ;;  %v2577_v34 = vmax.f32 %v6533_v16, 0.0  ;;  %3814 = vmatprep.subr.bf16.mxu1 %v5886_v8 }
 0x250   :  { %v2130_v22 = vpop.f32.mrf.mxu0 }
 0x251   :  { %v2834_v24 = vadd.f32 %v2833_v19, %v2574_v20  ;;  %v2575_v25 = vmax.f32 %v2130_v22, 0.0 }
 0x252   :  { %v6536_v26 = vpop.f32.mrf.mxu0 }
 0x253   :  { %v2835_v30 = vadd.f32 %v2834_v24, %v2575_v25  ;;  %v2580_v49 = vmax.f32 %v6536_v26, 0.0 }
 0x254   :  { %v2143_v32 = vpop.f32.mrf.mxu0 }
 0x255   :  { %v2836_v35 = vadd.f32 %v2835_v30, %v2576_v29  ;;  %v2578_v39 = vmax.f32 %v2143_v32, 0.0 }
 0x256   :  { %v6537_v36 = vpop.f32.mrf.mxu0 }
 0x257   :  { %v2837_v40 = vadd.f32 %v2836_v35, %v2577_v34  ;;  %v2581_v54 = vmax.f32 %v6537_v36, 0.0 }
 0x258   :  { %v2146_v42 = vpop.f32.mrf.mxu0 }
 0x259   :  { %v2838_v44 = vadd.f32 %v2837_v40, %v2578_v39  ;;  %v2579_v45 = vmax.f32 %v2146_v42, 0.0 }
 0x25a   :  { %v6540_v46 = vpop.f32.mrf.mxu0 }
 0x25b   :  { %v2839_v50 = vadd.f32 %v2838_v44, %v2579_v45  ;;  %v2584_v6 = vmax.f32 %v6540_v46, 0.0 }
 0x25c   :  { %v2159_v52 = vpop.f32.mrf.mxu0 }
 0x25d   :  { %v2840_v56 = vadd.f32 %v2839_v50, %v2580_v49  ;;  %v2582_v60 = vmax.f32 %v2159_v52, 0.0 }
 0x25e   :  { %v6541_v57 = vpop.f32.mrf.mxu0 }
 0x25f   :  { %v2841_v61 = vadd.f32 %v2840_v56, %v2581_v54  ;;  %v2585_v11 = vmax.f32 %v6541_v57, 0.0 }
 0x260   :  { %v2162_v63 = vpop.f32.mrf.mxu0 }
 0x261   :  { %v2842_v1 = vadd.f32 %v2841_v61, %v2582_v60  ;;  %v2583_v2 = vmax.f32 %v2162_v63, 0.0 }
 0x262   :  { %v6544_v3 = vpop.f32.mrf.mxu0 }
 0x263   :  { %v2843_v7 = vadd.f32 %v2842_v1, %v2583_v2  ;;  %v2588_v21 = vmax.f32 %v6544_v3, 0.0 }
 0x264   :  { %v2175_v9 = vpop.f32.mrf.mxu0 }
 0x265   :  { %v2844_v12 = vadd.f32 %v2843_v7, %v2584_v6  ;;  %v2586_v15 = vmax.f32 %v2175_v9, 0.0 }
 0x266   :  { %v6545_v14 = vpop.f32.mrf.mxu0 }
 0x267   :  { %v2845_v16 = vadd.f32 %v2844_v12, %v2585_v11  ;;  %v2589_v24 = vmax.f32 %v6545_v14, 0.0 }
 0x268   :  { %v2178_v17 = vpop.f32.mrf.mxu0 }
 0x269   :  { %v2846_v18 = vadd.f32 %v2845_v16, %v2586_v15  ;;  %v2587_v19 = vmax.f32 %v2178_v17, 0.0 }
 0x26a   :  { %v6548_v20 = vpop.f32.mrf.mxu0 }
 0x26b   :  { %v2847_v22 = vadd.f32 %v2846_v18, %v2587_v19  ;;  %v2592_v33 = vmax.f32 %v6548_v20, 0.0 }
 0x26c   :  { %v2191_v23 = vpop.f32.mrf.mxu0 }
 0x26d   :  { %v2848_v25 = vadd.f32 %v2847_v22, %v2588_v21  ;;  %v2590_v27 = vmax.f32 %v2191_v23, 0.0 }
 0x26e   :  { %v6549_v26 = vpop.f32.mrf.mxu0 }
 0x26f   :  { %v2849_v28 = vadd.f32 %v2848_v25, %v2589_v24  ;;  %v2593_v36 = vmax.f32 %v6549_v26, 0.0 }
 0x270   :  { %v2194_v29 = vpop.f32.mrf.mxu0 }
 0x271   :  { %v2850_v30 = vadd.f32 %v2849_v28, %v2590_v27  ;;  %v2591_v31 = vmax.f32 %v2194_v29, 0.0 }
 0x272   :  { %v6552_v32 = vpop.f32.mrf.mxu0 }
 0x273   :  { %v2851_v34 = vadd.f32 %v2850_v30, %v2591_v31  ;;  %v2596_v45 = vmax.f32 %v6552_v32, 0.0 }
 0x274   :  { %v2207_v35 = vpop.f32.mrf.mxu0 }
 0x275   :  { %v2852_v37 = vadd.f32 %v2851_v34, %v2592_v33  ;;  %v2594_v39 = vmax.f32 %v2207_v35, 0.0 }
 0x276   :  { %v6553_v38 = vpop.f32.mrf.mxu0 }
 0x277   :  { %v2853_v40 = vadd.f32 %v2852_v37, %v2593_v36  ;;  %v2597_v48 = vmax.f32 %v6553_v38, 0.0 }
 0x278   :  { %v2210_v41 = vpop.f32.mrf.mxu0 }
 0x279   :  { %v2854_v42 = vadd.f32 %v2853_v40, %v2594_v39  ;;  %v2595_v43 = vmax.f32 %v2210_v41, 0.0 }
 0x27a   :  { %v6556_v44 = vpop.f32.mrf.mxu0 }
 0x27b   :  { %v2855_v46 = vadd.f32 %v2854_v42, %v2595_v43  ;;  %v2600_v58 = vmax.f32 %v6556_v44, 0.0 }
 0x27c   :  { %v2223_v47 = vpop.f32.mrf.mxu0 }
 0x27d   :  { %v2856_v49 = vadd.f32 %v2855_v46, %v2596_v45  ;;  %v2598_v51 = vmax.f32 %v2223_v47, 0.0 }
 0x27e   :  { %v6557_v50 = vpop.f32.mrf.mxu0 }
 0x27f   :  { %v2857_v52 = vadd.f32 %v2856_v49, %v2597_v48  ;;  %v2601_v61 = vmax.f32 %v6557_v50, 0.0 }
 0x280   :  { %v2226_v53 = vpop.f32.mrf.mxu0 }
 0x281   :  { %v2858_v54 = vadd.f32 %v2857_v52, %v2598_v51  ;;  %v2599_v56 = vmax.f32 %v2226_v53, 0.0 }
 0x282   :  { %v6560_v57 = vpop.f32.mrf.mxu0 }
 0x283   :  { %v2859_v59 = vadd.f32 %v2858_v54, %v2599_v56  ;;  %v2604_v8 = vmax.f32 %v6560_v57, 0.0 }
 0x284   :  { %v2239_v60 = vpop.f32.mrf.mxu0 }
 0x285   :  { %v2860_v62 = vadd.f32 %v2859_v59, %v2600_v58  ;;  %v2602_v0 = vmax.f32 %v2239_v60, 0.0 }
 0x286   :  { %v6561_v63 = vpop.f32.mrf.mxu0 }
 0x287   :  { %v2861_v1 = vadd.f32 %v2860_v62, %v2601_v61  ;;  %v2605_v12 = vmax.f32 %v6561_v63, 0.0 }
 0x288   :  { %v2242_v2 = vpop.f32.mrf.mxu0 }
 0x289   :  { %v2862_v3 = vadd.f32 %v2861_v1, %v2602_v0  ;;  %v2603_v6 = vmax.f32 %v2242_v2, 0.0 }
 0x28a   :  { %v6564_v7 = vpop.f32.mrf.mxu0 }
 0x28b   :  { %v2863_v9 = vadd.f32 %v2862_v3, %v2603_v6  ;;  %v2608_v22 = vmax.f32 %v6564_v7, 0.0 }
 0x28c   :  { %v2255_v11 = vpop.f32.mrf.mxu0 }
 0x28d   :  { %v2864_v14 = vadd.f32 %v2863_v9, %v2604_v8  ;;  %v2606_v16 = vmax.f32 %v2255_v11, 0.0 }
 0x28e   :  { %v6565_v15 = vpop.f32.mrf.mxu0 }
 0x28f   :  { %v2865_v17 = vadd.f32 %v2864_v14, %v2605_v12  ;;  %v2609_v25 = vmax.f32 %v6565_v15, 0.0 }
 0x290   :  { %v2258_v18 = vpop.f32.mrf.mxu0 }
 0x291   :  { %v2866_v19 = vadd.f32 %v2865_v17, %v2606_v16  ;;  %v2607_v20 = vmax.f32 %v2258_v18, 0.0 }
 0x292   :  { %v6568_v21 = vpop.f32.mrf.mxu0 }
 0x293   :  { %v2867_v23 = vadd.f32 %v2866_v19, %v2607_v20  ;;  %v2612_v34 = vmax.f32 %v6568_v21, 0.0 }
 0x294   :  { %v2271_v24 = vpop.f32.mrf.mxu0 }
 0x295   :  { %v2868_v26 = vadd.f32 %v2867_v23, %v2608_v22  ;;  %v2610_v28 = vmax.f32 %v2271_v24, 0.0 }
 0x296   :  { %v6569_v27 = vpop.f32.mrf.mxu0 }
 0x297   :  { %v2869_v29 = vadd.f32 %v2868_v26, %v2609_v25  ;;  %v2613_v37 = vmax.f32 %v6569_v27, 0.0 }
 0x298   :  { %v2274_v30 = vpop.f32.mrf.mxu0 }
 0x299   :  { %v2870_v31 = vadd.f32 %v2869_v29, %v2610_v28  ;;  %v2611_v32 = vmax.f32 %v2274_v30, 0.0 }
 0x29a   :  { %v6572_v33 = vpop.f32.mrf.mxu0 }
 0x29b   :  { %v2871_v35 = vadd.f32 %v2870_v31, %v2611_v32  ;;  %v2616_v46 = vmax.f32 %v6572_v33, 0.0  ;;  %v2765_v32 = vrot.slane %v7411_v55, 4 }
 0x29c   :  { %v2287_v36 = vpop.f32.mrf.mxu0 }
 0x29d   :  { %v2872_v38 = vadd.f32 %v2871_v35, %v2612_v34  ;;  %v2614_v40 = vmax.f32 %v2287_v36, 0.0 }
 0x29e   :  { %v6573_v39 = vpop.f32.mrf.mxu0 }
 0x29f   :  { %v2873_v41 = vadd.f32 %v2872_v38, %v2613_v37  ;;  %v2617_v49 = vmax.f32 %v6573_v39, 0.0  ;;  %v2766_v39 = vadd.f32 %v2765_v32, %v7411_v55  ;;  %v2915_v32 = vld [vmem:[%s8364_s2 + $0x8] sm:$0xff] }
 0x2a0   :  { %v2290_v42 = vpop.f32.mrf.mxu0 }
 0x2a1   :  { %v2874_v43 = vadd.f32 %v2873_v41, %v2614_v40  ;;  %v2615_v44 = vmax.f32 %v2290_v42, 0.0 }
 0x2a2   :  { %v6576_v45 = vpop.f32.mrf.mxu0 }
 0x2a3   :  { %v2875_v47 = vadd.f32 %v2874_v43, %v2615_v44  ;;  %v2620_v59 = vmax.f32 %v6576_v45, 0.0 }
 0x2a4   :  { %v2303_v48 = vpop.f32.mrf.mxu0 }
 0x2a5   :  { %v2876_v50 = vadd.f32 %v2875_v47, %v2616_v46  ;;  %v2618_v52 = vmax.f32 %v2303_v48, 0.0  ;;  %v2767_v46 = vrot.slane %v2766_v39, 2 }
 0x2a6   :  { %v6577_v51 = vpop.f32.mrf.mxu0 }
 0x2a7   :  { %v2877_v53 = vadd.f32 %v2876_v50, %v2617_v49  ;;  %v2621_v62 = vmax.f32 %v6577_v51, 0.0  ;;  %v2768_v51 = vadd.f32 %v2767_v46, %v2766_v39 }
 0x2a8   :  { %v2306_v54 = vpop.f32.mrf.mxu0 }
 0x2a9   :  { %v2878_v56 = vadd.f32 %v2877_v53, %v2618_v52  ;;  %v2619_v57 = vmax.f32 %v2306_v54, 0.0 }
 0x2aa   :  { %v6580_v58 = vpop.f32.mrf.mxu0 }
 0x2ab   :  { %v2879_v60 = vadd.f32 %v2878_v56, %v2619_v57  ;;  %v2624_v9 = vmax.f32 %v6580_v58, 0.0  ;;  %v2769_v56 = vrot.slane %v2768_v51, 1 }
 0x2ac   :  { %v2319_v61 = vpop.f32.mrf.mxu0 }
 0x2ad   :  { %v2880_v63 = vadd.f32 %v2879_v60, %v2620_v59  ;;  %v2622_v1 = vmax.f32 %v2319_v61, 0.0  ;;  %v2770_v59 = vadd.f32 %v2769_v56, %v2768_v51 }
 0x2ae   :  { %v6581_v0 = vpop.f32.mrf.mxu0 }
 0x2af   :  { %v2881_v2 = vadd.f32 %v2880_v63, %v2621_v62  ;;  %v2625_v14 = vmax.f32 %v6581_v0, 0.0  ;;  %v2904_v61 = vmul.f32 0.0009765625, %v2770_v59 }
 0x2b0   :  { %v2322_v3 = vpop.f32.mrf.mxu0 }
 0x2b1   :  { %v2882_v6 = vadd.f32 %v2881_v2, %v2622_v1  ;;  %v2623_v7 = vmax.f32 %v2322_v3, 0.0  ;;  %v2912_v0 = vpack.c.bf16 %v2904_v61, %v2904_v61 }
 0x2b2   :  { %v6584_v8 = vpop.f32.mrf.mxu0 }
 0x2b3   :  { %v2883_v11 = vadd.f32 %v2882_v6, %v2623_v7  ;;  %v2628_v23 = vmax.f32 %v6584_v8, 0.0  ;;  %v3128_v6 = vunpack.c.l.b16 %v2912_v0  ;;  %v3011_v8 = vld [vmem:[%s8364_s2 + $0x308] sm:$0xff]  ;;  %v2916_v0 = vld [vmem:[%s8364_s2 + $0x10] sm:$0xff] }
 0x2b4   :  { %v2335_v12 = vpop.f32.mrf.mxu0 }
 0x2b5   :  { %v2884_v15 = vadd.f32 %v2883_v11, %v2624_v9  ;;  %v2626_v17 = vmax.f32 %v2335_v12, 0.0  ;;  %v3019_v9 = vld [vmem:[%s8364_s2 + $0x348] sm:$0xff] }
 0x2b6   :  { %v6585_v16 = vpop.f32.mrf.mxu0 }
 0x2b7   :  { %v2885_v18 = vadd.f32 %v2884_v15, %v2625_v14  ;;  %v2629_v26 = vmax.f32 %v6585_v16, 0.0  ;;  %v5870_v14 = vcombine.high %v3011_v8, %v3019_v9  ;;  %v2995_v15 = vld [vmem:[%s8364_s2 + $0x288] sm:$0xff] }
 0x2b8   :  { %v2338_v19 = vpop.f32.mrf.mxu0  ;;  %v3003_v16 = vld [vmem:[%s8364_s2 + $0x2c8] sm:$0xff] }
 0x2b9   :  { %v2886_v20 = vadd.f32 %v2885_v18, %v2626_v17  ;;  %v2627_v21 = vmax.f32 %v2338_v19, 0.0  ;;  %v5869_v17 = vcombine.low %v3011_v8, %v3019_v9  ;;  %v5854_v18 = vcombine.high %v2995_v15, %v3003_v16  ;;  %v2979_v19 = vld [vmem:[%s8364_s2 + $0x208] sm:$0xff] }
 0x2ba   :  { %v6588_v22 = vpop.f32.mrf.mxu0 }
 0x2bb   :  { %v2887_v24 = vadd.f32 %v2886_v20, %v2627_v21  ;;  %v2632_v36 = vmax.f32 %v6588_v22, 0.0  ;;  %v2987_v20 = vld [vmem:[%s8364_s2 + $0x248] sm:$0xff]  ;;  %v5853_v21 = vcombine.low %v2995_v15, %v3003_v16 }
 0x2bc   :  { %v2351_v25 = vpop.f32.mrf.mxu0  ;;  %v5838_v22 = vcombine.high %v2979_v19, %v2987_v20 }
 0x2bd   :  { %v2888_v27 = vadd.f32 %v2887_v24, %v2628_v23  ;;  %v2630_v29 = vmax.f32 %v2351_v25, 0.0  ;;  %v5822_v23 = vcombine.high %v2963_v4, %v2971_v5  ;;  %v2947_v24 = vld [vmem:[%s8364_s2 + $0x108] sm:$0xff] }
 0x2be   :  { %v6589_v28 = vpop.f32.mrf.mxu0  ;;  %v2955_v25 = vld [vmem:[%s8364_s2 + $0x148] sm:$0xff] }
 0x2bf   :  { %v2889_v30 = vadd.f32 %v2888_v27, %v2629_v26  ;;  %v2633_v40 = vmax.f32 %v6589_v28, 0.0  ;;  %v5821_v26 = vcombine.low %v2963_v4, %v2971_v5  ;;  %v5806_v27 = vcombine.high %v2947_v24, %v2955_v25  ;;  %v2931_v28 = vld [vmem:[%s8364_s2 + $0x88] sm:$0xff] }
 0x2c0   :  { %v2354_v31 = vpop.f32.mrf.mxu0 }
 0x2c1   :  { %v2890_v33 = vadd.f32 %v2889_v30, %v2630_v29  ;;  %v2631_v34 = vmax.f32 %v2354_v31, 0.0  ;;  %v2939_v29 = vld [vmem:[%s8364_s2 + $0xc8] sm:$0xff]  ;;  %v5805_v30 = vcombine.low %v2947_v24, %v2955_v25 }
 0x2c2   :  { %v6592_v35 = vpop.f32.mrf.mxu0  ;;  %v5790_v31 = vcombine.high %v2931_v28, %v2939_v29 }
 0x2c3   :  { %v2891_v37 = vadd.f32 %v2890_v33, %v2631_v34  ;;  %v2636_v49 = vmax.f32 %v6592_v35, 0.0  ;;  %v2923_v33 = vld [vmem:[%s8364_s2 + $0x48] sm:$0xff]  ;;  %v5789_v34 = vcombine.low %v2931_v28, %v2939_v29 }
 0x2c4   :  { %v2367_v38 = vpop.f32.mrf.mxu0  ;;  %v5774_v35 = vcombine.high %v2915_v32, %v2923_v33 }
 0x2c5   :  { %v2892_v41 = vadd.f32 %v2891_v37, %v2632_v36  ;;  %v2634_v43 = vmax.f32 %v2367_v38, 0.0  ;;  %v3028_v36 = vld [vmem:[%s8364_s2 + $0x390] sm:$0xff]  ;;  %v5773_v38 = vcombine.low %v2915_v32, %v2923_v33 }
 0x2c6   :  { %v6593_v42 = vpop.f32.mrf.mxu0  ;;  %v3036_v37 = vld [vmem:[%s8364_s2 + $0x3d0] sm:$0xff] }
 0x2c7   :  { %v2893_v44 = vadd.f32 %v2892_v41, %v2633_v40  ;;  %v2637_v52 = vmax.f32 %v6593_v42, 0.0  ;;  %v5888_v39 = vcombine.high %v3028_v36, %v3036_v37  ;;  %v3012_v40 = vld [vmem:[%s8364_s2 + $0x310] sm:$0xff]  ;;  %v5887_v42 = vcombine.low %v3028_v36, %v3036_v37 }
 0x2c8   :  { %v2370_v45 = vpop.f32.mrf.mxu0  ;;  %v3020_v41 = vld [vmem:[%s8364_s2 + $0x350] sm:$0xff] }
 0x2c9   :  { %v2894_v47 = vadd.f32 %v2893_v44, %v2634_v43  ;;  %v2635_v48 = vmax.f32 %v2370_v45, 0.0  ;;  %v5872_v43 = vcombine.high %v3012_v40, %v3020_v41  ;;  %v2996_v44 = vld [vmem:[%s8364_s2 + $0x290] sm:$0xff]  ;;  %v5871_v46 = vcombine.low %v3012_v40, %v3020_v41 }
 0x2ca   :  { %v3004_v45 = vld [vmem:[%s8364_s2 + $0x2d0] sm:$0xff] }
 0x2cb   :  { %v2895_v50 = vadd.f32 %v2894_v47, %v2635_v48  ;;  %v5856_v47 = vcombine.high %v2996_v44, %v3004_v45  ;;  %v2980_v48 = vld [vmem:[%s8364_s2 + $0x210] sm:$0xff] }
 0x2cd   :  { %v2896_v53 = vadd.f32 %v2895_v50, %v2636_v49  ;;  %v2988_v49 = vld [vmem:[%s8364_s2 + $0x250] sm:$0xff]  ;;  %v5855_v50 = vcombine.low %v2996_v44, %v3004_v45 }
 0x2ce   :  { %v5840_v51 = vcombine.high %v2980_v48, %v2988_v49 }
 0x2cf   :  { %v2897_v54 = vadd.f32 %v2896_v53, %v2637_v52  ;;  %v2964_v52 = vld [vmem:[%s8364_s2 + $0x190] sm:$0xff] }
 0x2d0   :  { %v2972_v53 = vld [vmem:[%s8364_s2 + $0x1d0] sm:$0xff] }
 0x2d1   :  { %v2898_v57 = vrot.slane %v2897_v54, 4  ;;  %v5824_v56 = vcombine.high %v2964_v52, %v2972_v53  ;;  %v5823_v59 = vcombine.low %v2964_v52, %v2972_v53 }
 0x2d3   :  { %v2899_v58 = vadd.f32 %v2898_v57, %v2897_v54  ;;  %v5839_v54 = vcombine.low %v2980_v48, %v2988_v49  ;;  %v2948_v57 = vld [vmem:[%s8364_s2 + $0x110] sm:$0xff] }
 0x2d5   :  { %v2900_v55 = vrot.slane %v2899_v58, 2 }
 0x2d7   :  { %v2901_v60 = vadd.f32 %v2900_v55, %v2899_v58  ;;  %v2956_v58 = vld [vmem:[%s8364_s2 + $0x150] sm:$0xff] }
 0x2d8   :  { %v5808_v55 = vcombine.high %v2948_v57, %v2956_v58 }
 0x2d9   :  { %v2902_v62 = vrot.slane %v2901_v60, 1 }
 0x2db   :  { %v2903_v63 = vadd.f32 %v2902_v62, %v2901_v60  ;;  %v2932_v60 = vld [vmem:[%s8364_s2 + $0x90] sm:$0xff]  ;;  %v5807_v62 = vcombine.low %v2948_v57, %v2956_v58 }
 0x2dd   :  { %v2905_v1 = vmul.f32 0.0009765625, %v2903_v63 }
 0x2df   :  { %v2913_v2 = vpack.c.bf16 %v2905_v1, %v2905_v1  ;;  %v2909_v3 = vsel %vm2908_vm1, %v2905_v1, %v2904_v61  ;;  %v2940_v61 = vld [vmem:[%s8364_s2 + $0xd0] sm:$0xff] }
 0x2e0   :  { %2911 = vst [vmem:[#allocation2] sm:$0x3] %v2909_v3  ;;  %v5792_v63 = vcombine.high %v2932_v60, %v2940_v61  ;;  %v2924_v1 = vld [vmem:[%s8364_s2 + $0x50] sm:$0xff] }
 0x2e1   :  { %v3129_v7 = vunpack.c.l.b16 %v2913_v2  ;;  %v5791_v2 = vcombine.low %v2932_v60, %v2940_v61  ;;  %v5776_v3 = vcombine.high %v2916_v0, %v2924_v1  ;;  %v5775_v8 = vcombine.low %v2916_v0, %v2924_v1 }
 0x2e3   :  { %v3130_v11 = vsel %vm2908_vm1, %v3129_v7, %v3128_v6  ;;  %v3029_v6 = vld [vmem:[%s8364_s2 + $0x398] sm:$0xff] }
 0x2e4   :  { %v7533_v12 = vpack.c.b16 %v3130_v11, %v3130_v11  ;;  %v3037_v7 = vld [vmem:[%s8364_s2 + $0x3d8] sm:$0xff] }
 0x2e5   :  { %v5890_v9 = vcombine.high %v3029_v6, %v3037_v7  ;;  %v3013_v11 = vld [vmem:[%s8364_s2 + $0x318] sm:$0xff]  ;;  %v5889_v15 = vcombine.low %v3029_v6, %v3037_v7 }
 0x2e6   :  { %3806 = vmatmul.mubr.bf16.vlgmr.msra.gmra.mxu1 %v7533_v12 }
 0x2e7   :  { %3815 = vmatpush1.bf16.msra.mxu1 %v5885_v10  ;;  %3846 = vmatprep.mubr.bf16.mxu1 %v6899_v13  ;;  %v5837_v10 = vcombine.low %v2979_v19, %v2987_v20 }
 0x2e8   :  { %3816 = vmatprep.subr.bf16.mxu1 %v5870_v14  ;;  %v3021_v14 = vld [vmem:[%s8364_s2 + $0x358] sm:$0xff] }
 0x2e9   :  { %v5874_v16 = vcombine.high %v3013_v11, %v3021_v14  ;;  %v5873_v19 = vcombine.low %v3013_v11, %v3021_v14 }
 0x2eb   :  { %3817 = vmatpush1.bf16.msra.mxu1 %v5869_v17  ;;  %v2997_v17 = vld [vmem:[%s8364_s2 + $0x298] sm:$0xff] }
 0x2ec   :  { %3818 = vmatprep.subr.bf16.mxu1 %v5854_v18  ;;  %v3005_v18 = vld [vmem:[%s8364_s2 + $0x2d8] sm:$0xff] }
 0x2ed   :  { %v5858_v20 = vcombine.high %v2997_v17, %v3005_v18  ;;  %v5857_v4 = vcombine.low %v2997_v17, %v3005_v18 }
 0x2ef   :  { %3819 = vmatpush1.bf16.msra.mxu1 %v5853_v21  ;;  %v2981_v21 = vld [vmem:[%s8364_s2 + $0x218] sm:$0xff] }
 0x2f0   :  { %3820 = vmatprep.subr.bf16.mxu1 %v5838_v22  ;;  %v2989_v22 = vld [vmem:[%s8364_s2 + $0x258] sm:$0xff] }
 0x2f1   :  { %v5842_v5 = vcombine.high %v2981_v21, %v2989_v22  ;;  %v5841_v24 = vcombine.low %v2981_v21, %v2989_v22 }
 0x2f3   :  { %3821 = vmatpush1.bf16.msra.mxu1 %v5837_v10  ;;  %v2965_v10 = vld [vmem:[%s8364_s2 + $0x198] sm:$0xff] }
 0x2f4   :  { %3822 = vmatprep.subr.bf16.mxu1 %v5822_v23  ;;  %v2973_v23 = vld [vmem:[%s8364_s2 + $0x1d8] sm:$0xff] }
 0x2f5   :  { %v5826_v25 = vcombine.high %v2965_v10, %v2973_v23  ;;  %v5825_v28 = vcombine.low %v2965_v10, %v2973_v23 }
 0x2f7   :  { %3823 = vmatpush1.bf16.msra.mxu1 %v5821_v26  ;;  %v2949_v26 = vld [vmem:[%s8364_s2 + $0x118] sm:$0xff] }
 0x2f8   :  { %3824 = vmatprep.subr.bf16.mxu1 %v5806_v27  ;;  %v2957_v27 = vld [vmem:[%s8364_s2 + $0x158] sm:$0xff] }
 0x2f9   :  { %v5810_v29 = vcombine.high %v2949_v26, %v2957_v27  ;;  %v5809_v32 = vcombine.low %v2949_v26, %v2957_v27 }
 0x2fb   :  { %3825 = vmatpush1.bf16.msra.mxu1 %v5805_v30  ;;  %v2933_v30 = vld [vmem:[%s8364_s2 + $0x98] sm:$0xff] }
 0x2fc   :  { %3826 = vmatprep.subr.bf16.mxu1 %v5790_v31  ;;  %v2941_v31 = vld [vmem:[%s8364_s2 + $0xd8] sm:$0xff] }
 0x2fd   :  { %v5794_v33 = vcombine.high %v2933_v30, %v2941_v31  ;;  %v5793_v36 = vcombine.low %v2933_v30, %v2941_v31 }
 0x2ff   :  { %3827 = vmatpush1.bf16.msra.mxu1 %v5789_v34  ;;  %v2917_v34 = vld [vmem:[%s8364_s2 + $0x18] sm:$0xff] }
 0x300   :  { %3828 = vmatprep.subr.bf16.mxu1 %v5774_v35  ;;  %v2925_v35 = vld [vmem:[%s8364_s2 + $0x58] sm:$0xff] }
 0x301   :  { %v5778_v37 = vcombine.high %v2917_v34, %v2925_v35  ;;  %v5777_v40 = vcombine.low %v2917_v34, %v2925_v35 }
 0x303   :  { %3829 = vmatpush1.bf16.msra.mxu1 %v5773_v38  ;;  %v3030_v38 = vld [vmem:[%s8364_s2 + $0x3a0] sm:$0xff] }
 0x304   :  { %3855 = vmatprep.subr.bf16.mxu1 %v5888_v39  ;;  %v3038_v39 = vld [vmem:[%s8364_s2 + $0x3e0] sm:$0xff] }
 0x305   :  { %v5892_v41 = vcombine.high %v3030_v38, %v3038_v39  ;;  %v5891_v44 = vcombine.low %v3030_v38, %v3038_v39 }
 0x306   :  { %3847 = vmatmul.mubr.bf16.vlgmr.msra.gmra.mxu1 %v7533_v12 }
 0x307   :  { %3856 = vmatpush1.bf16.msra.mxu1 %v5887_v42  ;;  %3887 = vmatprep.mubr.bf16.mxu1 %v6899_v13  ;;  %v3014_v42 = vld [vmem:[%s8364_s2 + $0x320] sm:$0xff] }
 0x308   :  { %3857 = vmatprep.subr.bf16.mxu1 %v5872_v43  ;;  %v3022_v43 = vld [vmem:[%s8364_s2 + $0x360] sm:$0xff] }
 0x309   :  { %v5876_v45 = vcombine.high %v3014_v42, %v3022_v43  ;;  %v5875_v48 = vcombine.low %v3014_v42, %v3022_v43 }
 0x30b   :  { %3858 = vmatpush1.bf16.msra.mxu1 %v5871_v46  ;;  %v2998_v46 = vld [vmem:[%s8364_s2 + $0x2a0] sm:$0xff] }
 0x30c   :  { %3859 = vmatprep.subr.bf16.mxu1 %v5856_v47  ;;  %v3006_v47 = vld [vmem:[%s8364_s2 + $0x2e0] sm:$0xff] }
 0x30d   :  { %v5860_v49 = vcombine.high %v2998_v46, %v3006_v47  ;;  %v5859_v52 = vcombine.low %v2998_v46, %v3006_v47 }
 0x30f   :  { %3860 = vmatpush1.bf16.msra.mxu1 %v5855_v50  ;;  %v2982_v50 = vld [vmem:[%s8364_s2 + $0x220] sm:$0xff] }
 0x310   :  { %3861 = vmatprep.subr.bf16.mxu1 %v5840_v51  ;;  %v2990_v51 = vld [vmem:[%s8364_s2 + $0x260] sm:$0xff] }
 0x311   :  { %v5844_v53 = vcombine.high %v2982_v50, %v2990_v51  ;;  %v5843_v57 = vcombine.low %v2982_v50, %v2990_v51 }
 0x313   :  { %3862 = vmatpush1.bf16.msra.mxu1 %v5839_v54  ;;  %v2966_v54 = vld [vmem:[%s8364_s2 + $0x1a0] sm:$0xff] }
 0x314   :  { %3863 = vmatprep.subr.bf16.mxu1 %v5824_v56  ;;  %v2974_v56 = vld [vmem:[%s8364_s2 + $0x1e0] sm:$0xff] }
 0x315   :  { %v5828_v58 = vcombine.high %v2966_v54, %v2974_v56  ;;  %v5827_v60 = vcombine.low %v2966_v54, %v2974_v56 }
 0x317   :  { %3864 = vmatpush1.bf16.msra.mxu1 %v5823_v59  ;;  %v2950_v59 = vld [vmem:[%s8364_s2 + $0x120] sm:$0xff] }
 0x318   :  { %3865 = vmatprep.subr.bf16.mxu1 %v5808_v55  ;;  %v2958_v55 = vld [vmem:[%s8364_s2 + $0x160] sm:$0xff] }
 0x319   :  { %v5812_v61 = vcombine.high %v2950_v59, %v2958_v55  ;;  %v5811_v0 = vcombine.low %v2950_v59, %v2958_v55 }
 0x31b   :  { %3866 = vmatpush1.bf16.msra.mxu1 %v5807_v62  ;;  %v2934_v62 = vld [vmem:[%s8364_s2 + $0xa0] sm:$0xff] }
 0x31c   :  { %3867 = vmatprep.subr.bf16.mxu1 %v5792_v63  ;;  %v2942_v63 = vld [vmem:[%s8364_s2 + $0xe0] sm:$0xff] }
 0x31d   :  { %v5796_v1 = vcombine.high %v2934_v62, %v2942_v63  ;;  %v5795_v6 = vcombine.low %v2934_v62, %v2942_v63 }
 0x31f   :  { %3868 = vmatpush1.bf16.msra.mxu1 %v5791_v2  ;;  %v2918_v2 = vld [vmem:[%s8364_s2 + $0x20] sm:$0xff] }
 0x320   :  { %3869 = vmatprep.subr.bf16.mxu1 %v5776_v3  ;;  %v2926_v3 = vld [vmem:[%s8364_s2 + $0x60] sm:$0xff] }
 0x321   :  { %v5780_v7 = vcombine.high %v2918_v2, %v2926_v3  ;;  %v5779_v11 = vcombine.low %v2918_v2, %v2926_v3 }
 0x323   :  { %3870 = vmatpush1.bf16.msra.mxu1 %v5775_v8  ;;  %v3031_v8 = vld [vmem:[%s8364_s2 + $0x3a8] sm:$0xff] }
 0x324   :  { %3896 = vmatprep.subr.bf16.mxu1 %v5890_v9  ;;  %v3039_v9 = vld [vmem:[%s8364_s2 + $0x3e8] sm:$0xff] }
 0x325   :  { %v5894_v14 = vcombine.high %v3031_v8, %v3039_v9  ;;  %v5893_v17 = vcombine.low %v3031_v8, %v3039_v9 }
 0x326   :  { %3888 = vmatmul.mubr.bf16.vlgmr.msra.gmra.mxu1 %v7533_v12 }
 0x327   :  { %3897 = vmatpush1.bf16.msra.mxu1 %v5889_v15  ;;  %3928 = vmatprep.mubr.bf16.mxu1 %v6899_v13  ;;  %v3015_v15 = vld [vmem:[%s8364_s2 + $0x328] sm:$0xff] }
 0x328   :  { %3898 = vmatprep.subr.bf16.mxu1 %v5874_v16  ;;  %v3023_v16 = vld [vmem:[%s8364_s2 + $0x368] sm:$0xff] }
 0x329   :  { %v5878_v18 = vcombine.high %v3015_v15, %v3023_v16  ;;  %v5877_v21 = vcombine.low %v3015_v15, %v3023_v16 }
 0x32b   :  { %3899 = vmatpush1.bf16.msra.mxu1 %v5873_v19  ;;  %v2999_v19 = vld [vmem:[%s8364_s2 + $0x2a8] sm:$0xff] }
 0x32c   :  { %3900 = vmatprep.subr.bf16.mxu1 %v5858_v20  ;;  %v3007_v20 = vld [vmem:[%s8364_s2 + $0x2e8] sm:$0xff] }
 0x32d   :  { %v5862_v22 = vcombine.high %v2999_v19, %v3007_v20  ;;  %v5861_v10 = vcombine.low %v2999_v19, %v3007_v20 }
 0x32f   :  { %3901 = vmatpush1.bf16.msra.mxu1 %v5857_v4  ;;  %v2983_v4 = vld [vmem:[%s8364_s2 + $0x228] sm:$0xff] }
 0x330   :  { %3902 = vmatprep.subr.bf16.mxu1 %v5842_v5  ;;  %v2991_v5 = vld [vmem:[%s8364_s2 + $0x268] sm:$0xff] }
 0x331   :  { %v5846_v23 = vcombine.high %v2983_v4, %v2991_v5  ;;  %v5845_v26 = vcombine.low %v2983_v4, %v2991_v5 }
 0x333   :  { %3903 = vmatpush1.bf16.msra.mxu1 %v5841_v24  ;;  %v2967_v24 = vld [vmem:[%s8364_s2 + $0x1a8] sm:$0xff] }
 0x334   :  { %3904 = vmatprep.subr.bf16.mxu1 %v5826_v25  ;;  %v2975_v25 = vld [vmem:[%s8364_s2 + $0x1e8] sm:$0xff] }
 0x335   :  { %v5830_v27 = vcombine.high %v2967_v24, %v2975_v25  ;;  %v5829_v30 = vcombine.low %v2967_v24, %v2975_v25  ;;  %v2985_v24 = vld [vmem:[%s8364_s2 + $0x238] sm:$0xff] }
 0x336   :  { %v2993_v25 = vld [vmem:[%s8364_s2 + $0x278] sm:$0xff] }
 0x337   :  { %3905 = vmatpush1.bf16.msra.mxu1 %v5825_v28  ;;  %v2951_v28 = vld [vmem:[%s8364_s2 + $0x128] sm:$0xff] }
 0x338   :  { %3906 = vmatprep.subr.bf16.mxu1 %v5810_v29  ;;  %v2959_v29 = vld [vmem:[%s8364_s2 + $0x168] sm:$0xff] }
 0x339   :  { %v5814_v31 = vcombine.high %v2951_v28, %v2959_v29  ;;  %v5813_v34 = vcombine.low %v2951_v28, %v2959_v29  ;;  %v5850_v29 = vcombine.high %v2985_v24, %v2993_v25 }
 0x33b   :  { %3907 = vmatpush1.bf16.msra.mxu1 %v5809_v32  ;;  %v2935_v32 = vld [vmem:[%s8364_s2 + $0xa8] sm:$0xff] }
 0x33c   :  { %3908 = vmatprep.subr.bf16.mxu1 %v5794_v33  ;;  %v2943_v33 = vld [vmem:[%s8364_s2 + $0xe8] sm:$0xff] }
 0x33d   :  { %v5798_v35 = vcombine.high %v2935_v32, %v2943_v33  ;;  %v5797_v38 = vcombine.low %v2935_v32, %v2943_v33  ;;  %v5849_v32 = vcombine.low %v2985_v24, %v2993_v25  ;;  %v6746_v25 = vld [vmem:[%s8366_s4 + $0xb0] sm:$0xff]  }
 0x33f   :  { %3909 = vmatpush1.bf16.msra.mxu1 %v5793_v36  ;;  %v2919_v36 = vld [vmem:[%s8364_s2 + $0x28] sm:$0xff] }
 0x340   :  { %3910 = vmatprep.subr.bf16.mxu1 %v5778_v37  ;;  %v2927_v37 = vld [vmem:[%s8364_s2 + $0x68] sm:$0xff] }
 0x341   :  { %v5782_v39 = vcombine.high %v2919_v36, %v2927_v37  ;;  %v5781_v42 = vcombine.low %v2919_v36, %v2927_v37 }
 0x343   :  { %3911 = vmatpush1.bf16.msra.mxu1 %v5777_v40  ;;  %v3032_v40 = vld [vmem:[%s8364_s2 + $0x3b0] sm:$0xff] }
 0x344   :  { %3937 = vmatprep.subr.bf16.mxu1 %v5892_v41  ;;  %v3040_v41 = vld [vmem:[%s8364_s2 + $0x3f0] sm:$0xff] }
 0x345   :  { %v5896_v43 = vcombine.high %v3032_v40, %v3040_v41  ;;  %v5895_v46 = vcombine.low %v3032_v40, %v3040_v41  ;;  %v2937_v40 = vld [vmem:[%s8364_s2 + $0xb8] sm:$0xff] }
 0x346   :  { %3929 = vmatmul.mubr.bf16.vlgmr.msra.gmra.mxu1 %v7533_v12  ;;  %v2945_v41 = vld [vmem:[%s8364_s2 + $0xf8] sm:$0xff] }
 0x347   :  { %3938 = vmatpush1.bf16.msra.mxu1 %v5891_v44  ;;  %3969 = vmatprep.mubr.bf16.mxu1 %v6899_v13  ;;  %v3016_v44 = vld [vmem:[%s8364_s2 + $0x330] sm:$0xff] }
 0x348   :  { %3939 = vmatprep.subr.bf16.mxu1 %v5876_v45  ;;  %v3024_v45 = vld [vmem:[%s8364_s2 + $0x370] sm:$0xff] }
 0x349   :  { %v5880_v47 = vcombine.high %v3016_v44, %v3024_v45  ;;  %v5879_v50 = vcombine.low %v3016_v44, %v3024_v45  ;;  %v5802_v44 = vcombine.high %v2937_v40, %v2945_v41 }
 0x34b   :  { %3940 = vmatpush1.bf16.msra.mxu1 %v5875_v48  ;;  %v3000_v48 = vld [vmem:[%s8364_s2 + $0x2b0] sm:$0xff] }
 0x34c   :  { %3941 = vmatprep.subr.bf16.mxu1 %v5860_v49  ;;  %v3008_v49 = vld [vmem:[%s8364_s2 + $0x2f0] sm:$0xff] }
 0x34d   :  { %v5864_v51 = vcombine.high %v3000_v48, %v3008_v49  ;;  %v5863_v54 = vcombine.low %v3000_v48, %v3008_v49  ;;  %v5801_v48 = vcombine.low %v2937_v40, %v2945_v41  ;;  %v6755_v41 = vld [vmem:[%s8366_s4 + $0xc8] sm:$0xff]  }
 0x34f   :  { %3942 = vmatpush1.bf16.msra.mxu1 %v5859_v52  ;;  %v2984_v52 = vld [vmem:[%s8364_s2 + $0x230] sm:$0xff] }
 0x350   :  { %3943 = vmatprep.subr.bf16.mxu1 %v5844_v53  ;;  %v2992_v53 = vld [vmem:[%s8364_s2 + $0x270] sm:$0xff] }
 0x351   :  { %v5848_v56 = vcombine.high %v2984_v52, %v2992_v53  ;;  %v5847_v59 = vcombine.low %v2984_v52, %v2992_v53  ;;  %v6727_v52 = vld [vmem:[%s8366_s4 + $0x78] sm:$0xff]  }
 0x353   :  { %3944 = vmatpush1.bf16.msra.mxu1 %v5843_v57  ;;  %v2968_v57 = vld [vmem:[%s8364_s2 + $0x1b0] sm:$0xff] }
 0x354   :  { %3945 = vmatprep.subr.bf16.mxu1 %v5828_v58  ;;  %v2976_v58 = vld [vmem:[%s8364_s2 + $0x1f0] sm:$0xff] }
 0x355   :  { %v5832_v55 = vcombine.high %v2968_v57, %v2976_v58  ;;  %v5831_v62 = vcombine.low %v2968_v57, %v2976_v58 }
 0x357   :  { %3946 = vmatpush1.bf16.msra.mxu1 %v5827_v60  ;;  %v2952_v60 = vld [vmem:[%s8364_s2 + $0x130] sm:$0xff] }
 0x358   :  { %3947 = vmatprep.subr.bf16.mxu1 %v5812_v61  ;;  %v2960_v61 = vld [vmem:[%s8364_s2 + $0x170] sm:$0xff] }
 0x359   :  { %v5816_v63 = vcombine.high %v2952_v60, %v2960_v61  ;;  %v5815_v2 = vcombine.low %v2952_v60, %v2960_v61  ;;  %v6731_v60 = vld [vmem:[%s8366_s4 + $0x68] sm:$0xff]  }
 0x35b   :  { %3948 = vmatpush1.bf16.msra.mxu1 %v5811_v0  ;;  %v2936_v0 = vld [vmem:[%s8364_s2 + $0xb0] sm:$0xff] }
 0x35c   :  { %3949 = vmatprep.subr.bf16.mxu1 %v5796_v1  ;;  %v2944_v1 = vld [vmem:[%s8364_s2 + $0xf0] sm:$0xff] }
 0x35d   :  { %v5800_v3 = vcombine.high %v2936_v0, %v2944_v1  ;;  %v5799_v8 = vcombine.low %v2936_v0, %v2944_v1  ;;  %v6734_v0 = vld [vmem:[%s8366_s4 + $0x20] sm:$0xff]   ;;  %v6735_v1 = vld [vmem:[%s8366_s4 + $0x58] sm:$0xff]  }
 0x35f   :  { %3950 = vmatpush1.bf16.msra.mxu1 %v5795_v6  ;;  %v2920_v6 = vld [vmem:[%s8364_s2 + $0x30] sm:$0xff] }
 0x360   :  { %3951 = vmatprep.subr.bf16.mxu1 %v5780_v7  ;;  %v2928_v7 = vld [vmem:[%s8364_s2 + $0x70] sm:$0xff] }
 0x361   :  { %v5784_v9 = vcombine.high %v2920_v6, %v2928_v7  ;;  %v5783_v15 = vcombine.low %v2920_v6, %v2928_v7  ;;  %v6737_v6 = vld [vmem:[%s8366_s4 + $0x50] sm:$0xff]  }
 0x363   :  { %3952 = vmatpush1.bf16.msra.mxu1 %v5779_v11  ;;  %v3033_v11 = vld [vmem:[%s8364_s2 + $0x3b8] sm:$0xff] }
 0x364   :  { %3978 = vmatprep.subr.bf16.mxu1 %v5894_v14  ;;  %v3041_v14 = vld [vmem:[%s8364_s2 + $0x3f8] sm:$0xff] }
 0x365   :  { %v5898_v16 = vcombine.high %v3033_v11, %v3041_v14  ;;  %v5897_v19 = vcombine.low %v3033_v11, %v3041_v14  ;;  %v6739_v11 = vld [vmem:[%s8366_s4 + $0x48] sm:$0xff]  }
 0x366   :  { %3970 = vmatmul.mubr.bf16.vlgmr.msra.gmra.mxu1 %v7533_v12 }
 0x367   :  { %3979 = vmatpush1.bf16.msra.mxu1 %v5893_v17  ;;  %4010 = vmatprep.mubr.bf16.mxu1 %v6899_v13  ;;  %v3017_v17 = vld [vmem:[%s8364_s2 + $0x338] sm:$0xff] }
 0x368   :  { %3980 = vmatprep.subr.bf16.mxu1 %v5878_v18  ;;  %v3025_v18 = vld [vmem:[%s8364_s2 + $0x378] sm:$0xff] }
 0x369   :  { %v5882_v20 = vcombine.high %v3017_v17, %v3025_v18  ;;  %v5881_v5 = vcombine.low %v3017_v17, %v3025_v18  ;;  %v6741_v17 = vld [vmem:[%s8366_s4 + $0x40] sm:$0xff]  }
 0x36b   :  { %3981 = vmatpush1.bf16.msra.mxu1 %v5877_v21  ;;  %v3001_v21 = vld [vmem:[%s8364_s2 + $0x2b8] sm:$0xff] }
 0x36c   :  { %3982 = vmatprep.subr.bf16.mxu1 %v5862_v22  ;;  %v3009_v22 = vld [vmem:[%s8364_s2 + $0x2f8] sm:$0xff] }
 0x36f   :  { %3983 = vmatpush1.bf16.msra.mxu1 %v5861_v10 }
 0x370   :  { %3984 = vmatprep.subr.bf16.mxu1 %v5846_v23  ;;  %v5866_v23 = vcombine.high %v3001_v21, %v3009_v22 }
 0x373   :  { %3985 = vmatpush1.bf16.msra.mxu1 %v5845_v26 }
 0x374   :  { %3986 = vmatprep.subr.bf16.mxu1 %v5830_v27  ;;  %v5865_v27 = vcombine.low %v3001_v21, %v3009_v22  ;;  %v6743_v21 = vld [vmem:[%s8366_s4 + $0xf8] sm:$0xff]  }
 0x377   :  { %3987 = vmatpush1.bf16.msra.mxu1 %v5829_v30  ;;  %v2977_v30 = vld [vmem:[%s8364_s2 + $0x1f8] sm:$0xff] }
 0x378   :  { %3988 = vmatprep.subr.bf16.mxu1 %v5814_v31  ;;  %v3046_v31 = vlaneseq }
 0x37a   :  { %v7866_v36 = vshrl.u32 %v3046_v31, 7  ;;  %v6750_v31 = vld [vmem:[%s8366_s4 + $0xa0] sm:$0xff]  }
 0x37b   :  { %3989 = vmatpush1.bf16.msra.mxu1 %v5813_v34  ;;  %v2953_v34 = vld [vmem:[%s8364_s2 + $0x138] sm:$0xff] }
 0x37c   :  { %3990 = vmatprep.subr.bf16.mxu1 %v5798_v35  ;;  %v2961_v35 = vld [vmem:[%s8364_s2 + $0x178] sm:$0xff]  ;;  %v3060_v7 = vsub.s32 3, %v7866_v36 }
 0x37f   :  { %3991 = vmatpush1.bf16.msra.mxu1 %v5797_v38  ;;  %v5818_v38 = vcombine.high %v2953_v34, %v2961_v35 }
 0x380   :  { %3992 = vmatprep.subr.bf16.mxu1 %v5782_v39  ;;  %v3052_v39 = vsub.s32 1, %v7866_v36 }
 0x383   :  { %3993 = vmatpush1.bf16.msra.mxu1 %v5781_v42  ;;  %v5817_v42 = vcombine.low %v2953_v34, %v2961_v35  ;;  %v3056_v34 = vsub.s32 2, %v7866_v36  ;;  %v6753_v35 = vld [vmem:[%s8366_s4 + $0xd0] sm:$0xff]  }
 0x384   :  { %4019 = vmatprep.subr.bf16.mxu1 %v5896_v43  ;;  %v7878_v43 = vld [vmem:[%s8365_s3] sm:$0xff] }
 0x385   :  { %v3053_v45 = vrot.slane %v7878_v43, %v3052_v39  ;;  %v3061_v14 = vrot.slane %v7878_v43, %v3060_v7  ;;  %v3057_v40 = vrot.slane %v7878_v43, %v3056_v34 }
 0x386   :  { %4011 = vmatmul.mubr.bf16.vlgmr.msra.gmra.mxu1 %v7533_v12 }
 0x387   :  { %4020 = vmatpush1.bf16.msra.mxu1 %v5895_v46  ;;  %4051 = vmatprep.mubr.bf16.mxu1 %v6899_v13  ;;  %v2921_v46 = vld [vmem:[%s8364_s2 + $0x38] sm:$0xff] }
 0x388   :  { %4021 = vmatprep.subr.bf16.mxu1 %v5880_v47  ;;  %v2929_v47 = vld [vmem:[%s8364_s2 + $0x78] sm:$0xff] }
 0x389   :  { %v5786_v49 = vcombine.high %v2921_v46, %v2929_v47 }
 0x38b   :  { %4022 = vmatpush1.bf16.msra.mxu1 %v5879_v50 }
 0x38c   :  { %4023 = vmatprep.subr.bf16.mxu1 %v5864_v51  ;;  %v5785_v51 = vcombine.low %v2921_v46, %v2929_v47  ;;  %v6757_v46 = vld [vmem:[%s8366_s4 + $0xc0] sm:$0xff]  }
 0x38f   :  { %4024 = vmatpush1.bf16.msra.mxu1 %v5863_v54  ;;  %v6728_v54 = vld [vmem:[%s8366_s4 + $0x38] sm:$0xff]  }
 0x390   :  { %4025 = vmatprep.subr.bf16.mxu1 %v5848_v56  ;;  %v6729_v56 = vld [vmem:[%s8366_s4 + $0x70] sm:$0xff]  }
 0x393   :  { %4026 = vmatpush1.bf16.msra.mxu1 %v5847_v59  ;;  %v6730_v59 = vld [vmem:[%s8366_s4 + $0x30] sm:$0xff]  }
 0x394   :  { %4027 = vmatprep.subr.bf16.mxu1 %v5832_v55 }
 0x397   :  { %4028 = vmatpush1.bf16.msra.mxu1 %v5831_v62  ;;  %v6732_v62 = vld [vmem:[%s8366_s4 + $0x28] sm:$0xff]  }
 0x398   :  { %4029 = vmatprep.subr.bf16.mxu1 %v5816_v63 }
 0x39b   :  { %4030 = vmatpush1.bf16.msra.mxu1 %v5815_v2  ;;  %v6736_v2 = vld [vmem:[%s8366_s4 + $0x18] sm:$0xff]  }
 0x39c   :  { %4031 = vmatprep.subr.bf16.mxu1 %v5800_v3  ;;  %v3048_v3 = vsub.s32 0, %v7866_v36 }
 0x39f   :  { %4032 = vmatpush1.bf16.msra.mxu1 %v5799_v8  ;;  %v6738_v8 = vld [vmem:[%s8366_s4 + $0x10] sm:$0xff]  }
 0x3a0   :  { %4033 = vmatprep.subr.bf16.mxu1 %v5784_v9  ;;  %v3049_v9 = vrot.slane %v7878_v43, %v3048_v3 }
 0x3a3   :  { %4034 = vmatpush1.bf16.msra.mxu1 %v5783_v15  ;;  %v6740_v15 = vld [vmem:[%s8366_s4 + $0x8] sm:$0xff]  }
 0x3a4   :  { %4060 = vmatprep.subr.bf16.mxu1 %v5898_v16 }
 0x3a6   :  { %4052 = vmatmul.mubr.bf16.vlgmr.msra.gmra.mxu1 %v7533_v12  ;;  %v7845_v4 = vpop.f32.mrf.mxu1 }
 0x3a7   :  { %4061 = vmatpush1.bf16.msra.mxu1 %v5897_v19  ;;  %4092 = vmatprep.mubr.bf16.mxu1 %v6899_v13  ;;  %v2969_v13 = vld [vmem:[%s8364_s2 + $0x1b8] sm:$0xff]  ;;  %v3808_v16 = vadd.f32 %v7845_v4, %v3049_v9  ;;  %v6742_v19 = vld [vmem:[%s8366_s4] sm:$0xff]   ;;  %v6770_v9 = vld [vmem:[%s8366_s4 + $0x110] sm:$0xff]  }
 0x3a8   :  { %v3809_v10 = vpop.f32.mrf.mxu1  ;;  %4062 = vmatprep.subr.bf16.mxu1 %v5882_v20  ;;  %v5834_v33 = vcombine.high %v2969_v13, %v2977_v30  ;;  %v5833_v37 = vcombine.low %v2969_v13, %v2977_v30  ;;  %v6744_v4 = vld [vmem:[%s8366_s4 + $0xb8] sm:$0xff]   ;;  %v6749_v30 = vld [vmem:[%s8366_s4 + $0xe0] sm:$0xff]  }
 0x3a9   :  { %v3810_v50 = vadd.f32 %v3809_v10, %v3053_v45  ;;  %v4101_v20 = vmax.f32 %v3808_v16, 0.0  ;;  %v6745_v10 = vld [vmem:[%s8366_s4 + $0xf0] sm:$0xff]   ;;  %v6772_v16 = vld [vmem:[%s8366_s4 + $0x108] sm:$0xff]  }
 0x3aa   :  { %v3811_v26 = vpop.f32.mrf.mxu1 }
 0x3ab   :  { %4063 = vmatpush1.bf16.msra.mxu1 %v5881_v5  ;;  %v4102_v53 = vmax.f32 %v3810_v50, 0.0  ;;  %v4117_v5 = vpack.c.bf16 %v4101_v20, %v4101_v20  ;;  %v6759_v50 = vld [vmem:[%s8366_s4 + $0x178] sm:$0xff]   ;;  %v6774_v20 = vld [vmem:[%s8366_s4 + $0x100] sm:$0xff]  }
 0x3ac   :  { %v3812_v28 = vpop.f32.mrf.mxu1  ;;  %4064 = vmatprep.subr.bf16.mxu1 %v5866_v23 }
 0x3ad   :  { %v4118_v57 = vpack.c.bf16 %v4102_v53, %v4102_v53 }
 0x3af   :  { %4065 = vmatpush1.bf16.msra.mxu1 %v5865_v27  ;;  %v6747_v27 = vld [vmem:[%s8366_s4 + $0xe8] sm:$0xff]  }
 0x3b0   :  { %4066 = vmatprep.subr.bf16.mxu1 %v5850_v29  ;;  %v6748_v29 = vld [vmem:[%s8366_s4 + $0xa8] sm:$0xff]  }
 0x3b3   :  { %4067 = vmatpush1.bf16.msra.mxu1 %v5849_v32  ;;  %v6751_v32 = vld [vmem:[%s8366_s4 + $0xd8] sm:$0xff]  }
 0x3b4   :  { %4068 = vmatprep.subr.bf16.mxu1 %v5834_v33  ;;  %v6752_v33 = vld [vmem:[%s8366_s4 + $0x98] sm:$0xff]  }
 0x3b7   :  { %4069 = vmatpush1.bf16.msra.mxu1 %v5833_v37  ;;  %v3068_v37 = vsub.s32 5, %v7866_v36 }
 0x3b8   :  { %4070 = vmatprep.subr.bf16.mxu1 %v5818_v38  ;;  %v6754_v38 = vld [vmem:[%s8366_s4 + $0x90] sm:$0xff]  }
 0x3bb   :  { %4071 = vmatpush1.bf16.msra.mxu1 %v5817_v42  ;;  %v3069_v42 = vrot.slane %v7878_v43, %v3068_v37 }
 0x3bc   :  { %4072 = vmatprep.subr.bf16.mxu1 %v5802_v44  ;;  %v6756_v44 = vld [vmem:[%s8366_s4 + $0x88] sm:$0xff]  }
 0x3bf   :  { %4073 = vmatpush1.bf16.msra.mxu1 %v5801_v48  ;;  %v6758_v48 = vld [vmem:[%s8366_s4 + $0x80] sm:$0xff]  }
 0x3c0   :  { %4074 = vmatprep.subr.bf16.mxu1 %v5786_v49 }
 0x3c3   :  { %4075 = vmatpush1.bf16.msra.mxu1 %v5785_v51 }
 0x3c4   :  { %6158 = vmatprep.subr.bf16.mxu1 %v6727_v52  ;;  %v6760_v52 = vld [vmem:[%s8366_s4 + $0x138] sm:$0xff]  }
 0x3c6   :  { %v7898_v58 = vpop.f32.mrf.mxu1  ;;  %4093 = vmatmul.mubr.bf16.vlgmr.msra.gmra.mxu1 %v7533_v12  ;;  %v6733_v12 = vld [vmem:[%s8366_s4 + $0x60] sm:$0xff]  }
 0x3c7   :  { %6159 = vmatpush3.bf16.msra.mxu1 %v6728_v54  ;;  %5196 = vmatprep.mubr.bf16.mxu1 %v4118_v57  ;;  %v3849_v45 = vadd.f32 %v7898_v58, %v3057_v40  ;;  %v6761_v54 = vld [vmem:[%s8366_s4 + $0x170] sm:$0xff]  }
 0x3c8   :  { %v3850_v55 = vpop.f32.mrf.mxu1  ;;  %6160 = vmatprep.subr.bf16.mxu1 %v6729_v56  ;;  %v6762_v58 = vld [vmem:[%s8366_s4 + $0x130] sm:$0xff]  }
 0x3c9   :  { %v3851_v18 = vadd.f32 %v3850_v55, %v3061_v14  ;;  %v4103_v49 = vmax.f32 %v3849_v45, 0.0  ;;  %v6763_v55 = vld [vmem:[%s8366_s4 + $0x168] sm:$0xff]   ;;  %v6785_v40 = vld [vmem:[%s8366_s4 + $0x1d0] sm:$0xff]  }
 0x3ca   :  { %v3852_v61 = vpop.f32.mrf.mxu1  ;;  %v6771_v14 = vld [vmem:[%s8366_s4 + $0x148] sm:$0xff]  }
 0x3cb   :  { %6161 = vmatpush3.bf16.msra.mxu1 %v6730_v59  ;;  %v4104_v22 = vmax.f32 %v3851_v18, 0.0  ;;  %v4119_v53 = vpack.c.bf16 %v4103_v49, %v4103_v49  ;;  %v6764_v61 = vld [vmem:[%s8366_s4 + $0x128] sm:$0xff]   ;;  %v6773_v18 = vld [vmem:[%s8366_s4 + $0x140] sm:$0xff]  }
 0x3cc   :  { %v3853_v63 = vpop.f32.mrf.mxu1  ;;  %6162 = vmatprep.subr.bf16.mxu1 %v6731_v60  ;;  %v6787_v45 = vld [vmem:[%s8366_s4 + $0x1c8] sm:$0xff]  }
 0x3cd   :  { %v4120_v23 = vpack.c.bf16 %v4104_v22, %v4104_v22  ;;  %v6765_v63 = vld [vmem:[%s8366_s4 + $0x160] sm:$0xff]   ;;  %v6775_v22 = vld [vmem:[%s8366_s4 + $0x1f8] sm:$0xff]  }
 0x3cf   :  { %6163 = vmatpush3.bf16.msra.mxu1 %v6732_v62 }
 0x3d0   :  { %6164 = vmatprep.subr.bf16.mxu1 %v6733_v12  ;;  %v6766_v12 = vld [vmem:[%s8366_s4 + $0x120] sm:$0xff]  }
 0x3d3   :  { %6165 = vmatpush3.bf16.msra.mxu1 %v6734_v0  ;;  %v6767_v0 = vld [vmem:[%s8366_s4 + $0x158] sm:$0xff]  }
 0x3d4   :  { %6166 = vmatprep.subr.bf16.mxu1 %v6735_v1  ;;  %v6768_v1 = vld [vmem:[%s8366_s4 + $0x118] sm:$0xff]  }
 0x3d7   :  { %6167 = vmatpush3.bf16.msra.mxu1 %v6736_v2  ;;  %v3064_v2 = vsub.s32 4, %v7866_v36 }
 0x3d8   :  { %6168 = vmatprep.subr.bf16.mxu1 %v6737_v6  ;;  %v6769_v6 = vld [vmem:[%s8366_s4 + $0x150] sm:$0xff]  }
 0x3db   :  { %6169 = vmatpush3.bf16.msra.mxu1 %v6738_v8  ;;  %v3076_v8 = vsub.s32 7, %v7866_v36 }
 0x3dc   :  { %6170 = vmatprep.subr.bf16.mxu1 %v6739_v11  ;;  %v3065_v11 = vrot.slane %v7878_v43, %v3064_v2 }
 0x3df   :  { %6171 = vmatpush3.bf16.msra.mxu1 %v6740_v15  ;;  %v3077_v15 = vrot.slane %v7878_v43, %v3076_v8 }
 0x3e0   :  { %6172 = vmatprep.subr.bf16.mxu1 %v6741_v17 }
 0x3e3   :  { %6173 = vmatpush3.bf16.msra.mxu1 %v6742_v19 }
 0x3e4   :  { %6180 = vmatprep.subr.bf16.mxu1 %v6743_v21 }
 0x3e6   :  { %v7958_v24 = vpop.f32.mrf.mxu1  ;;  %5197 = vmatmul.mubr.bf16.vlgmr.msra.gmra.mxu1 %v4117_v5  ;;  %v6776_v5 = vld [vmem:[%s8366_s4 + $0x1b8] sm:$0xff]  }
 0x3e7   :  { %6181 = vmatpush3.bf16.msra.mxu1 %v6744_v4  ;;  %5236 = vmatprep.mubr.bf16.mxu1 %v4120_v23  ;;  %v3890_v17 = vadd.f32 %v7958_v24, %v3065_v11  ;;  %v6777_v23 = vld [vmem:[%s8366_s4 + $0x1f0] sm:$0xff]  }
 0x3e8   :  { %v3891_v26 = vpop.f32.mrf.mxu1  ;;  %6182 = vmatprep.subr.bf16.mxu1 %v6745_v10  ;;  %v6802_v11 = vld [vmem:[%s8366_s4 + $0x210] sm:$0xff]  }
 0x3e9   :  { %v3892_v47 = vadd.f32 %v3891_v26, %v3069_v42  ;;  %v4105_v21 = vmax.f32 %v3890_v17, 0.0  ;;  %v6778_v26 = vld [vmem:[%s8366_s4 + $0x1b0] sm:$0xff]   ;;  %v6804_v17 = vld [vmem:[%s8366_s4 + $0x208] sm:$0xff]  }
 0x3ea   :  { %v3893_v28 = vpop.f32.mrf.mxu1 }
 0x3eb   :  { %6183 = vmatpush3.bf16.msra.mxu1 %v6746_v25  ;;  %v4106_v51 = vmax.f32 %v3892_v47, 0.0  ;;  %v4121_v10 = vpack.c.bf16 %v4105_v21, %v4105_v21  ;;  %v6779_v28 = vld [vmem:[%s8366_s4 + $0x1e8] sm:$0xff]  }
 0x3ec   :  { %v3894_v13 = vpop.f32.mrf.mxu1  ;;  %6184 = vmatprep.subr.bf16.mxu1 %v6747_v27  ;;  %v6788_v47 = vld [vmem:[%s8366_s4 + $0x188] sm:$0xff]  }
 0x3ed   :  { %v4122_v56 = vpack.c.bf16 %v4106_v51, %v4106_v51  ;;  %v6780_v13 = vld [vmem:[%s8366_s4 + $0x1a8] sm:$0xff]  }
 0x3ef   :  { %6185 = vmatpush3.bf16.msra.mxu1 %v6748_v29 }
 0x3f0   :  { %6186 = vmatprep.subr.bf16.mxu1 %v6749_v30 }
 0x3f3   :  { %6187 = vmatpush3.bf16.msra.mxu1 %v6750_v31  ;;  %v6781_v31 = vld [vmem:[%s8366_s4 + $0x1e0] sm:$0xff]  }
 0x3f4   :  { %6188 = vmatprep.subr.bf16.mxu1 %v6751_v32  ;;  %v6782_v32 = vld [vmem:[%s8366_s4 + $0x1a0] sm:$0xff]  }
 0x3f7   :  { %6189 = vmatpush3.bf16.msra.mxu1 %v6752_v33  ;;  %v6783_v33 = vld [vmem:[%s8366_s4 + $0x1d8] sm:$0xff]  }
 0x3f8   :  { %6190 = vmatprep.subr.bf16.mxu1 %v6753_v35  ;;  %v6784_v35 = vld [vmem:[%s8366_s4 + $0x198] sm:$0xff]  }
 0x3fb   :  { %6191 = vmatpush3.bf16.msra.mxu1 %v6754_v38  ;;  %v3072_v38 = vsub.s32 6, %v7866_v36  ;;  %v6854_v36 = vld [vmem:[%s8366_s4 + $0x380] sm:$0xff]  }
 0x3fc   :  { %6192 = vmatprep.subr.bf16.mxu1 %v6755_v41  ;;  %v6786_v41 = vld [vmem:[%s8366_s4 + $0x190] sm:$0xff]  }
 0x3fd   :  { %v3073_v42 = vrot.slane %v7878_v43, %v3072_v38 }
 0x3ff   :  { %6193 = vmatpush3.bf16.msra.mxu1 %v6756_v44  ;;  %v8112_v44 = vld [vmem:[%s8365_s3 + $0x8] sm:$0xff] }
 0x400   :  { %6194 = vmatprep.subr.bf16.mxu1 %v6757_v46  ;;  %v3085_v46 = vrot.slane %v8112_v44, %v3052_v39  ;;  %v6791_v39 = vld [vmem:[%s8366_s4 + $0x278] sm:$0xff]  }
 0x403   :  { %6195 = vmatpush3.bf16.msra.mxu1 %v6758_v48  ;;  %v6789_v48 = vld [vmem:[%s8366_s4 + $0x1c0] sm:$0xff]  }
 0x404   :  { %6202 = vmatprep.subr.bf16.mxu1 %v6759_v50  ;;  %v6790_v50 = vld [vmem:[%s8366_s4 + $0x180] sm:$0xff]  }
 0x406   :  { %v8017_v57 = vpop.f32.mrf.mxu1  ;;  %5237 = vmatmul.mubr.bf16.vlgmr.msra.gmra.mxu1 %v4119_v53  ;;  %v6792_v53 = vld [vmem:[%s8366_s4 + $0x238] sm:$0xff]  }
 0x407   :  { %6203 = vmatpush3.bf16.msra.mxu1 %v6760_v52  ;;  %5276 = vmatprep.mubr.bf16.mxu1 %v4122_v56  ;;  %v3931_v43 = vadd.f32 %v8017_v57, %v3073_v42  ;;  %v6793_v56 = vld [vmem:[%s8366_s4 + $0x270] sm:$0xff]   ;;  %v6819_v42 = vld [vmem:[%s8366_s4 + $0x2c8] sm:$0xff]  }
 0x408   :  { %v3932_v59 = vpop.f32.mrf.mxu1  ;;  %6204 = vmatprep.subr.bf16.mxu1 %v6761_v54 }
 0x409   :  { %v3933_v19 = vadd.f32 %v3932_v59, %v3077_v15  ;;  %v4107_v51 = vmax.f32 %v3931_v43, 0.0  ;;  %v6794_v59 = vld [vmem:[%s8366_s4 + $0x230] sm:$0xff]   ;;  %v6803_v15 = vld [vmem:[%s8366_s4 + $0x248] sm:$0xff]  }
 0x40a   :  { %v3934_v60 = vpop.f32.mrf.mxu1 }
 0x40b   :  { %6205 = vmatpush3.bf16.msra.mxu1 %v6762_v58  ;;  %v4108_v4 = vmax.f32 %v3933_v19, 0.0  ;;  %v4123_v54 = vpack.c.bf16 %v4107_v51, %v4107_v51  ;;  %v6795_v60 = vld [vmem:[%s8366_s4 + $0x268] sm:$0xff]   ;;  %v6824_v51 = vld [vmem:[%s8366_s4 + $0x338] sm:$0xff]  }
 0x40c   :  { %v3935_v62 = vpop.f32.mrf.mxu1  ;;  %6206 = vmatprep.subr.bf16.mxu1 %v6763_v55 }
 0x40d   :  { %v4124_v24 = vpack.c.bf16 %v4108_v4, %v4108_v4  ;;  %v6796_v62 = vld [vmem:[%s8366_s4 + $0x228] sm:$0xff]   ;;  %v6808_v4 = vld [vmem:[%s8366_s4 + $0x2b8] sm:$0xff]  }
 0x40f   :  { %6207 = vmatpush3.bf16.msra.mxu1 %v6764_v61 }
 0x410   :  { %6208 = vmatprep.subr.bf16.mxu1 %v6765_v63 }
 0x413   :  { %6209 = vmatpush3.bf16.msra.mxu1 %v6766_v12  ;;  %v6797_v12 = vld [vmem:[%s8366_s4 + $0x260] sm:$0xff]  }
 0x414   :  { %6210 = vmatprep.subr.bf16.mxu1 %v6767_v0  ;;  %v6798_v0 = vld [vmem:[%s8366_s4 + $0x220] sm:$0xff]  }
 0x417   :  { %6211 = vmatpush3.bf16.msra.mxu1 %v6768_v1  ;;  %v6799_v1 = vld [vmem:[%s8366_s4 + $0x258] sm:$0xff]  }
 0x418   :  { %6212 = vmatprep.subr.bf16.mxu1 %v6769_v6  ;;  %v6800_v6 = vld [vmem:[%s8366_s4 + $0x218] sm:$0xff]  }
 0x41b   :  { %6213 = vmatpush3.bf16.msra.mxu1 %v6770_v9  ;;  %v6801_v9 = vld [vmem:[%s8366_s4 + $0x250] sm:$0xff]  }
 0x41c   :  { %6214 = vmatprep.subr.bf16.mxu1 %v6771_v14  ;;  %v3081_v14 = vrot.slane %v8112_v44, %v3048_v3  ;;  %v6805_v3 = vld [vmem:[%s8366_s4 + $0x240] sm:$0xff]  }
 0x41f   :  { %6215 = vmatpush3.bf16.msra.mxu1 %v6772_v16  ;;  %v3093_v16 = vrot.slane %v8112_v44, %v3060_v7  ;;  %v6807_v7 = vld [vmem:[%s8366_s4 + $0x2f8] sm:$0xff]  }
 0x420   :  { %6216 = vmatprep.subr.bf16.mxu1 %v6773_v18 }
 0x423   :  { %6217 = vmatpush3.bf16.msra.mxu1 %v6774_v20  ;;  %v6806_v20 = vld [vmem:[%s8366_s4 + $0x200] sm:$0xff]  }
 0x424   :  { %6224 = vmatprep.subr.bf16.mxu1 %v6775_v22 }
 0x426   :  { %v8076_v25 = vpop.f32.mrf.mxu1  ;;  %5277 = vmatmul.mubr.bf16.vlgmr.msra.gmra.mxu1 %v4121_v10  ;;  %v6809_v10 = vld [vmem:[%s8366_s4 + $0x2f0] sm:$0xff]  }
 0x427   :  { %6225 = vmatpush3.bf16.msra.mxu1 %v6776_v5  ;;  %5316 = vmatprep.mubr.bf16.mxu1 %v4124_v24  ;;  %v3972_v18 = vadd.f32 %v8076_v25, %v3081_v14  ;;  %v6810_v25 = vld [vmem:[%s8366_s4 + $0x2b0] sm:$0xff]   ;;  %v6836_v14 = vld [vmem:[%s8366_s4 + $0x308] sm:$0xff]  }
 0x428   :  { %v3973_v27 = vpop.f32.mrf.mxu1  ;;  %6226 = vmatprep.subr.bf16.mxu1 %v6777_v23 }
 0x429   :  { %v3974_v49 = vadd.f32 %v3973_v27, %v3085_v46  ;;  %v4109_v21 = vmax.f32 %v3972_v18, 0.0  ;;  %v6811_v27 = vld [vmem:[%s8366_s4 + $0x2e8] sm:$0xff]  }
 0x42a   :  { %v3975_v29 = vpop.f32.mrf.mxu1  ;;  %v6820_v46 = vld [vmem:[%s8366_s4 + $0x288] sm:$0xff]  }
 0x42b   :  { %6227 = vmatpush3.bf16.msra.mxu1 %v6778_v26  ;;  %v4110_v52 = vmax.f32 %v3974_v49, 0.0  ;;  %v4125_v5 = vpack.c.bf16 %v4109_v21, %v4109_v21  ;;  %v6812_v29 = vld [vmem:[%s8366_s4 + $0x2a8] sm:$0xff]   ;;  %v6841_v21 = vld [vmem:[%s8366_s4 + $0x3f0] sm:$0xff]  }
 0x42c   :  { %v3976_v30 = vpop.f32.mrf.mxu1  ;;  %6228 = vmatprep.subr.bf16.mxu1 %v6779_v28 }
 0x42d   :  { %v4126_v57 = vpack.c.bf16 %v4110_v52, %v4110_v52  ;;  %v6813_v30 = vld [vmem:[%s8366_s4 + $0x2e0] sm:$0xff]   ;;  %v6825_v52 = vld [vmem:[%s8366_s4 + $0x370] sm:$0xff]  }
 0x42f   :  { %6229 = vmatpush3.bf16.msra.mxu1 %v6780_v13 }
 0x430   :  { %6230 = vmatprep.subr.bf16.mxu1 %v6781_v31  ;;  %v6814_v31 = vld [vmem:[%s8366_s4 + $0x2a0] sm:$0xff]  }
 0x433   :  { %6231 = vmatpush3.bf16.msra.mxu1 %v6782_v32  ;;  %v6815_v32 = vld [vmem:[%s8366_s4 + $0x2d8] sm:$0xff]  }
 0x434   :  { %6232 = vmatprep.subr.bf16.mxu1 %v6783_v33  ;;  %v6816_v33 = vld [vmem:[%s8366_s4 + $0x298] sm:$0xff]  }
 0x437   :  { %6233 = vmatpush3.bf16.msra.mxu1 %v6784_v35  ;;  %v6817_v35 = vld [vmem:[%s8366_s4 + $0x2d0] sm:$0xff]  }
 0x438   :  { %6234 = vmatprep.subr.bf16.mxu1 %v6785_v40  ;;  %v6818_v40 = vld [vmem:[%s8366_s4 + $0x290] sm:$0xff]  }
 0x43b   :  { %6235 = vmatpush3.bf16.msra.mxu1 %v6786_v41  ;;  %v3089_v41 = vrot.slane %v8112_v44, %v3056_v34  ;;  %v6821_v34 = vld [vmem:[%s8366_s4 + $0x2c0] sm:$0xff]  }
 0x43c   :  { %6236 = vmatprep.subr.bf16.mxu1 %v6787_v45  ;;  %v3101_v45 = vrot.slane %v8112_v44, %v3068_v37  ;;  %v6823_v37 = vld [vmem:[%s8366_s4 + $0x378] sm:$0xff]  }
 0x43f   :  { %6237 = vmatpush3.bf16.msra.mxu1 %v6788_v47 }
 0x440   :  { %6238 = vmatprep.subr.bf16.mxu1 %v6789_v48  ;;  %v6822_v48 = vld [vmem:[%s8366_s4 + $0x280] sm:$0xff]  }
 0x443   :  { %6239 = vmatpush3.bf16.msra.mxu1 %v6790_v50 }
 0x444   :  { %6246 = vmatprep.subr.bf16.mxu1 %v6791_v39 }
 0x446   :  { %v8139_v58 = vpop.f32.mrf.mxu1  ;;  %5317 = vmatmul.mubr.bf16.vlgmr.msra.gmra.mxu1 %v4123_v54 }
 0x447   :  { %6247 = vmatpush3.bf16.msra.mxu1 %v6792_v53  ;;  %5356 = vmatprep.mubr.bf16.mxu1 %v4126_v57  ;;  %v4013_v47 = vadd.f32 %v8139_v58, %v3089_v41  ;;  %v6827_v58 = vld [vmem:[%s8366_s4 + $0x368] sm:$0xff]   ;;  %v6853_v41 = vld [vmem:[%s8366_s4 + $0x3c0] sm:$0xff]  }
 0x448   :  { %v4014_v55 = vpop.f32.mrf.mxu1  ;;  %6248 = vmatprep.subr.bf16.mxu1 %v6793_v56  ;;  %v6826_v56 = vld [vmem:[%s8366_s4 + $0x330] sm:$0xff]  }
 0x449   :  { %v4015_v19 = vadd.f32 %v4014_v55, %v3093_v16  ;;  %v4111_v49 = vmax.f32 %v4013_v47, 0.0  ;;  %v6828_v55 = vld [vmem:[%s8366_s4 + $0x328] sm:$0xff]  }
 0x44a   :  { %v4016_v61 = vpop.f32.mrf.mxu1 }
 0x44b   :  { %6249 = vmatpush3.bf16.msra.mxu1 %v6794_v59  ;;  %v4112_v22 = vmax.f32 %v4015_v19, 0.0  ;;  %v4127_v39 = vpack.c.bf16 %v4111_v49, %v4111_v49  ;;  %v6829_v61 = vld [vmem:[%s8366_s4 + $0x360] sm:$0xff]   ;;  %v6840_v19 = vld [vmem:[%s8366_s4 + $0x3b8] sm:$0xff]  }
 0x44c   :  { %v4017_v63 = vpop.f32.mrf.mxu1  ;;  %6250 = vmatprep.subr.bf16.mxu1 %v6795_v60 }
 0x44d   :  { %v4128_v23 = vpack.c.bf16 %v4112_v22, %v4112_v22  ;;  %v6831_v63 = vld [vmem:[%s8366_s4 + $0x358] sm:$0xff]  }
 0x44f   :  { %6251 = vmatpush3.bf16.msra.mxu1 %v6796_v62  ;;  %v6830_v62 = vld [vmem:[%s8366_s4 + $0x320] sm:$0xff]  }
 0x450   :  { %6252 = vmatprep.subr.bf16.mxu1 %v6797_v12  ;;  %v6832_v12 = vld [vmem:[%s8366_s4 + $0x318] sm:$0xff]  }
 0x453   :  { %6253 = vmatpush3.bf16.msra.mxu1 %v6798_v0  ;;  %v6833_v0 = vld [vmem:[%s8366_s4 + $0x350] sm:$0xff]  }
 0x454   :  { %6254 = vmatprep.subr.bf16.mxu1 %v6799_v1  ;;  %v6834_v1 = vld [vmem:[%s8366_s4 + $0x310] sm:$0xff]  }
 0x457   :  { %6255 = vmatpush3.bf16.msra.mxu1 %v6800_v6  ;;  %v3097_v6 = vrot.slane %v8112_v44, %v3064_v2  ;;  %v6837_v2 = vld [vmem:[%s8366_s4 + $0x340] sm:$0xff]  }
 0x458   :  { %6256 = vmatprep.subr.bf16.mxu1 %v6801_v9  ;;  %v6835_v9 = vld [vmem:[%s8366_s4 + $0x348] sm:$0xff]  }
 0x45b   :  { %6257 = vmatpush3.bf16.msra.mxu1 %v6802_v11  ;;  %v3109_v11 = vrot.slane %v8112_v44, %v3076_v8  ;;  %v6839_v8 = vld [vmem:[%s8366_s4 + $0x3f8] sm:$0xff]  }
 0x45c   :  { %6258 = vmatprep.subr.bf16.mxu1 %v6803_v15 }
 0x45f   :  { %6259 = vmatpush3.bf16.msra.mxu1 %v6804_v17  ;;  %v6838_v17 = vld [vmem:[%s8366_s4 + $0x300] sm:$0xff]  }
 0x460   :  { %6260 = vmatprep.subr.bf16.mxu1 %v6805_v3 }
 0x463   :  { %6261 = vmatpush3.bf16.msra.mxu1 %v6806_v20 }
 0x464   :  { %6268 = vmatprep.subr.bf16.mxu1 %v6807_v7 }
 0x466   :  { %v8196_v24 = vpop.f32.mrf.mxu1  ;;  %5357 = vmatmul.mubr.bf16.vlgmr.msra.gmra.mxu1 %v4125_v5 }
 0x467   :  { %6269 = vmatpush3.bf16.msra.mxu1 %v6808_v4  ;;  %5396 = vmatprep.mubr.bf16.mxu1 %v4128_v23  ;;  %v4054_v15 = vadd.f32 %v8196_v24, %v3097_v6  ;;  %v6842_v4 = vld [vmem:[%s8366_s4 + $0x3b0] sm:$0xff]  }
 0x468   :  { %v4055_v26 = vpop.f32.mrf.mxu1  ;;  %6270 = vmatprep.subr.bf16.mxu1 %v6809_v10  ;;  %v6843_v10 = vld [vmem:[%s8366_s4 + $0x3e8] sm:$0xff]  }
 0x469   :  { %v4056_v43 = vadd.f32 %v4055_v26, %v3101_v45  ;;  %v4113_v18 = vmax.f32 %v4054_v15, 0.0 }
 0x46a   :  { %v4057_v28 = vpop.f32.mrf.mxu1 }
 0x46b   :  { %6271 = vmatpush3.bf16.msra.mxu1 %v6810_v25  ;;  %v4114_v50 = vmax.f32 %v4056_v43, 0.0  ;;  %v4129_v20 = vpack.c.bf16 %v4113_v18, %v4113_v18  ;;  %v6844_v25 = vld [vmem:[%s8366_s4 + $0x3a8] sm:$0xff]   ;;  %v6846_v28 = vld [vmem:[%s8366_s4 + $0x3a0] sm:$0xff]  }
 0x46c   :  { %v4058_v13 = vpop.f32.mrf.mxu1  ;;  %6272 = vmatprep.subr.bf16.mxu1 %v6811_v27  ;;  %v6845_v27 = vld [vmem:[%s8366_s4 + $0x3e0] sm:$0xff]  }
 0x46d   :  { %v4130_v53 = vpack.c.bf16 %v4114_v50, %v4114_v50  ;;  %v6848_v13 = vld [vmem:[%s8366_s4 + $0x398] sm:$0xff]  }
 0x46f   :  { %6273 = vmatpush3.bf16.msra.mxu1 %v6812_v29  ;;  %v6847_v29 = vld [vmem:[%s8366_s4 + $0x3d8] sm:$0xff]  }
 0x470   :  { %6274 = vmatprep.subr.bf16.mxu1 %v6813_v30  ;;  %v6849_v30 = vld [vmem:[%s8366_s4 + $0x3d0] sm:$0xff]  }
 0x473   :  { %6275 = vmatpush3.bf16.msra.mxu1 %v6814_v31  ;;  %v6850_v31 = vld [vmem:[%s8366_s4 + $0x390] sm:$0xff]  }
 0x474   :  { %6276 = vmatprep.subr.bf16.mxu1 %v6815_v32  ;;  %v3105_v32 = vrot.slane %v8112_v44, %v3072_v38 }
 0x477   :  { %6277 = vmatpush3.bf16.msra.mxu1 %v6816_v33  ;;  %v6851_v33 = vld [vmem:[%s8366_s4 + $0x3c8] sm:$0xff]  }
 0x478   :  { %6278 = vmatprep.subr.bf16.mxu1 %v6817_v35  ;;  %v6852_v35 = vld [vmem:[%s8366_s4 + $0x388] sm:$0xff]   ;;  %s6900_s4 = smov [#allocation2]  }
 0x47b   :  { %6279 = vmatpush3.bf16.msra.mxu1 %v6818_v40 }
 0x47c   :  { %6280 = vmatprep.subr.bf16.mxu1 %v6819_v42  ;;  %v5899_v42 = vld [vmem:[%s8367_s5] ss:$0 sm:$0xff]  ;;  %s5491_s5 = sshll.u32 %s6900_s4, 4  ;;  %s5492_s5 = int_to_ptr.vmem [resolvable:$true] %s5491_s5 }
 0x47d   :  { %s6855_s22 = scalar_lea.vmem %s5492_s5, 32  ;;  %p6860_p1 = scmp.lt.s32.totalorder %s5492_s5, %s5492_s5 }
 0x47e   :  { %p6856_p0 = scmp.ne.s32.totalorder %s5492_s5, %s6855_s22  ;;  %p6861_p2 = scmp.lt.s32.totalorder %s6855_s22, %s6855_s22 }
 0x47f   :  { %6281 = vmatpush3.bf16.msra.mxu1 %v6820_v46 }
 0x480   :  { %6282 = vmatprep.subr.bf16.mxu1 %v6821_v34  ;;  %p6862_p3 = por %p6861_p2, %p6860_p1 }
 0x482   :  { %p6863_p4 = pnand %p6862_p3, %p6856_p0 }
 0x483   :  { %6283 = vmatpush3.bf16.msra.mxu1 %v6822_v48 }
 0x484   :  { %6290 = vmatprep.subr.bf16.mxu1 %v6823_v37 }
 0x486   :  { %v8253_v54 = vpop.f32.mrf.mxu1  ;;  %5397 = vmatmul.mubr.bf16.vlgmr.msra.gmra.mxu1 %v4127_v39 }
 0x487   :  { %6291 = vmatpush3.bf16.msra.mxu1 %v6824_v51  ;;  %5436 = vmatprep.mubr.bf16.mxu1 %v4130_v53  ;;  %v4095_v40 = vadd.f32 %v8253_v54, %v3105_v32 }
 0x488   :  { %v4096_v57 = vpop.f32.mrf.mxu1  ;;  %6292 = vmatprep.subr.bf16.mxu1 %v6825_v52 }
 0x489   :  { %v4097_v16 = vadd.f32 %v4096_v57, %v3109_v11  ;;  %v4115_v38 = vmax.f32 %v4095_v40, 0.0 }
 0x48a   :  { %v4098_v59 = vpop.f32.mrf.mxu1 }
 0x48b   :  { %6293 = vmatpush3.bf16.msra.mxu1 %v6826_v56  ;;  %v4116_v3 = vmax.f32 %v4097_v16, 0.0  ;;  %v4131_v44 = vpack.c.bf16 %v4115_v38, %v4115_v38 }
 0x48c   :  { %v4099_v60 = vpop.f32.mrf.mxu1  ;;  %6294 = vmatprep.subr.bf16.mxu1 %v6827_v58 }
 0x48d   :  { %v4132_v7 = vpack.c.bf16 %v4116_v3, %v4116_v3 }
 0x48f   :  { %6295 = vmatpush3.bf16.msra.mxu1 %v6828_v55 }
 0x490   :  { %6296 = vmatprep.subr.bf16.mxu1 %v6829_v61 }
 0x493   :  { %6297 = vmatpush3.bf16.msra.mxu1 %v6830_v62 }
 0x494   :  { %6298 = vmatprep.subr.bf16.mxu1 %v6831_v63 }
 0x497   :  { %6299 = vmatpush3.bf16.msra.mxu1 %v6832_v12 }
 0x498   :  { %6300 = vmatprep.subr.bf16.mxu1 %v6833_v0 }
 0x49b   :  { %6301 = vmatpush3.bf16.msra.mxu1 %v6834_v1 }
 0x49c   :  { %6302 = vmatprep.subr.bf16.mxu1 %v6835_v9 }
 0x49f   :  { %6303 = vmatpush3.bf16.msra.mxu1 %v6836_v14 }
 0x4a0   :  { %6304 = vmatprep.subr.bf16.mxu1 %v6837_v2 }
 0x4a3   :  { %6305 = vmatpush3.bf16.msra.mxu1 %v6838_v17 }
 0x4a4   :  { %6312 = vmatprep.subr.bf16.mxu1 %v6839_v8 }
 0x4a6   :  { %v6174_v22 = vpop.f32.mrf.mxu1  ;;  %5437 = vmatmul.mubr.bf16.vlgmr.msra.gmra.mxu1 %v4129_v20 }
 0x4a7   :  { %6313 = vmatpush3.bf16.msra.mxu1 %v6840_v19  ;;  %5476 = vmatprep.mubr.bf16.mxu1 %v4132_v7 }
 0x4a8   :  { %v6175_v5 = vpop.f32.mrf.mxu1  ;;  %6314 = vmatprep.subr.bf16.mxu1 %v6841_v21 }
 0x4a9   :  { %v6176_v23 = vadd.f32 %v6175_v5, %v6174_v22 }
 0x4aa   :  { %v6177_v24 = vpop.f32.mrf.mxu1 }
 0x4ab   :  { %6315 = vmatpush3.bf16.msra.mxu1 %v6842_v4  ;;  %v5199_v47 = vadd.f32 %v6176_v23, %v5899_v42 }
 0x4ac   :  { %v6178_v26 = vpop.f32.mrf.mxu1  ;;  %6316 = vmatprep.subr.bf16.mxu1 %v6843_v10 }
 0x4af   :  { %6317 = vmatpush3.bf16.msra.mxu1 %v6844_v25 }
 0x4b0   :  { %6318 = vmatprep.subr.bf16.mxu1 %v6845_v27 }
 0x4b3   :  { %6319 = vmatpush3.bf16.msra.mxu1 %v6846_v28 }
 0x4b4   :  { %6320 = vmatprep.subr.bf16.mxu1 %v6847_v29 }
 0x4b7   :  { %6321 = vmatpush3.bf16.msra.mxu1 %v6848_v13 }
 0x4b8   :  { %6322 = vmatprep.subr.bf16.mxu1 %v6849_v30 }
 0x4bb   :  { %6323 = vmatpush3.bf16.msra.mxu1 %v6850_v31 }
 0x4bc   :  { %6324 = vmatprep.subr.bf16.mxu1 %v6851_v33 }
 0x4bf   :  { %6325 = vmatpush3.bf16.msra.mxu1 %v6852_v35 }
 0x4c0   :  { %6326 = vmatprep.subr.bf16.mxu1 %v6853_v41 }
 0x4c3   :  { %6327 = vmatpush3.bf16.msra.mxu1 %v6854_v36 }
 0x4c6   :  { %v6196_v45 = vpop.f32.mrf.mxu1  ;;  %5477 = vmatmul.mubr.bf16.vlgmr.msra.gmra.mxu1 %v4131_v44 }
 0x4c8   :  { %v6197_v46 = vpop.f32.mrf.mxu1 }
 0x4c9   :  { %v6198_v34 = vadd.f32 %v6197_v46, %v6196_v45 }
 0x4ca   :  { %v6199_v43 = vpop.f32.mrf.mxu1 }
 0x4cb   :  { %v5239_v48 = vadd.f32 %v6198_v34, %v5199_v47 }
 0x4cc   :  { %v6200_v49 = vpop.f32.mrf.mxu1 }
 0x4e6   :  { %v6218_v37 = vpop.f32.mrf.mxu1 }
 0x4e8   :  { %v6219_v50 = vpop.f32.mrf.mxu1 }
 0x4e9   :  { %v6220_v51 = vadd.f32 %v6219_v50, %v6218_v37 }
 0x4ea   :  { %v6221_v39 = vpop.f32.mrf.mxu1 }
 0x4eb   :  { %v5279_v52 = vadd.f32 %v6220_v51, %v5239_v48 }
 0x4ec   :  { %v6222_v53 = vpop.f32.mrf.mxu1 }
 0x506   :  { %v6240_v54 = vpop.f32.mrf.mxu1 }
 0x508   :  { %v6241_v56 = vpop.f32.mrf.mxu1 }
 0x509   :  { %v6242_v57 = vadd.f32 %v6241_v56, %v6240_v54 }
 0x50a   :  { %v6243_v58 = vpop.f32.mrf.mxu1 }
 0x50b   :  { %v5319_v59 = vadd.f32 %v6242_v57, %v5279_v52 }
 0x50c   :  { %v6244_v55 = vpop.f32.mrf.mxu1 }
 0x50d   :  { %6866 = shalt.err (!%p6863_p4)
}
 0x50e   :  { %5494 = dma.vmem_to_hbm [thread:$0]  %s5492_s5, 32, %s8368_s6, [#allocation3]  }
 0x50f   :  { %s6901_s6 = smov [#allocation4]  }
 0x510   :  { %s5501_s24 = sshll.u32 %s6901_s6, 4  ;;  %s5502_s24 = int_to_ptr.vmem [resolvable:$true] %s5501_s24 }
 0x511   :  { %s6875_s25 = scalar_lea.vmem %s5502_s24, 32  ;;  %p6880_p6 = scmp.lt.s32.totalorder %s5502_s24, %s5502_s24 }
 0x512   :  { %p6876_p5 = scmp.ne.s32.totalorder %s5502_s24, %s6875_s25  ;;  %p6881_p7 = scmp.lt.s32.totalorder %s6875_s25, %s6875_s25 }
 0x514   :  { %p6882_p8 = por %p6881_p7, %p6880_p6 }
 0x516   :  { %p6883_p9 = pnand %p6882_p8, %p6876_p5 }
 0x526   :  { %v6262_v60 = vpop.f32.mrf.mxu1 }
 0x528   :  { %v6263_v61 = vpop.f32.mrf.mxu1 }
 0x529   :  { %v6264_v62 = vadd.f32 %v6263_v61, %v6262_v60 }
 0x52a   :  { %v6265_v63 = vpop.f32.mrf.mxu1 }
 0x52b   :  { %v5359_v12 = vadd.f32 %v6264_v62, %v5319_v59 }
 0x52c   :  { %v6266_v0 = vpop.f32.mrf.mxu1 }
 0x546   :  { %v6284_v1 = vpop.f32.mrf.mxu1 }
 0x548   :  { %v6285_v6 = vpop.f32.mrf.mxu1 }
 0x549   :  { %v6286_v17 = vadd.f32 %v6285_v6, %v6284_v1 }
 0x54a   :  { %v6287_v9 = vpop.f32.mrf.mxu1 }
 0x54b   :  { %v5399_v3 = vadd.f32 %v6286_v17, %v5359_v12 }
 0x54c   :  { %v6288_v11 = vpop.f32.mrf.mxu1 }
 0x566   :  { %v6306_v14 = vpop.f32.mrf.mxu1 }
 0x568   :  { %v6307_v15 = vpop.f32.mrf.mxu1 }
 0x569   :  { %v6308_v18 = vadd.f32 %v6307_v15, %v6306_v14 }
 0x56a   :  { %v6309_v2 = vpop.f32.mrf.mxu1 }
 0x56b   :  { %v5439_v20 = vadd.f32 %v6308_v18, %v5399_v3 }
 0x56c   :  { %v6310_v16 = vpop.f32.mrf.mxu1 }
 0x586   :  { %v6328_v8 = vpop.f32.mrf.mxu1 }
 0x588   :  { %v6329_v19 = vpop.f32.mrf.mxu1 }
 0x589   :  { %v6330_v21 = vadd.f32 %v6329_v19, %v6328_v8 }
 0x58a   :  { %v6331_v7 = vpop.f32.mrf.mxu1 }
 0x58b   :  { %v5479_v22 = vadd.f32 %v6330_v21, %v5439_v20 }
 0x58c   :  { %v6332_v4 = vpop.f32.mrf.mxu1 }
 0x58d   :  { %5484 = vst [vmem:[#allocation4] sm:$0x3] %v5479_v22 }
 0x58e   :  { %6886 = shalt.err (!%p6883_p9)
}
 0x58f   :  { %5504 = dma.vmem_to_hbm [thread:$0]  %s5502_s24, 32, %s8369_s7, [#allocation5]  }
 0x590   :  { %6895 = dma.done.wait [#allocation3], 32  }
 0x591   :  { %6896 = vsyncadd [#allocation3], 4294967264 }
 0x592   :  { %6897 = dma.done.wait [#allocation5], 32  }
 0x593   :  { %6898 = vsyncadd [#allocation5], 4294967264 }
 0x594   :  { %5511 = vsyncpa [#allocation3], 1 }
 0x595   :  { %5512 = vsyncpa [#allocation5], 1 }

</bundles_post_ra>
